<compile_context>
chip_gen: v6e
topology: v6e:2x2x1
jax: 0.10.0
libtpu: 0.0.40
codegen_flags: <defaults>
</compile_context>

<pallas_src>
import functools

import jax
import jax.numpy as jnp
from jax.experimental import pallas as pl
from jax.experimental.pallas import tpu as pltpu

IN_FEATURES = 1874          # nn.Linear(1874, 64)
HIDDEN = 64
NLABEL = 8                  # nlabel comes from data in the original script; pick a small value

SMALL_BATCH_FASTPATH = 256  # below this, plain XLA fusion beats a kernel launch
TM_MAX = 2048               # 2 x (2048*1874*4B) + weights ~ 31 MiB -> safe on v7x 64 MiB VMEM


def _round_up(x, m):
    return ((x + m - 1) // m) * m


def mlp_kernel(x_ref, w1_ref, b1_ref, w2_ref, b2_ref, o_ref):
    # x tile: (TM, IN_FEATURES) f32; weights/biases f32 and VMEM-resident.
    x = x_ref[...]
    h = jnp.dot(x, w1_ref[...], preferred_element_type=jnp.float32)   # MXU, f32 acc
    h = jnp.maximum(h + b1_ref[...], 0.0)                             # bias + ReLU (VPU)
    o = jnp.dot(h, w2_ref[...], preferred_element_type=jnp.float32)   # MXU, f32 acc
    o_ref[...] = (o + b2_ref[...]).astype(o_ref.dtype)                # (TM, nlabel) store


@functools.partial(jax.jit, static_argnames=("tm",))
def classifier_forward(x, w1, b1, w2, b2, *, tm=1024):
    """x: (batch, IN_FEATURES) f32; w1: (IN_FEATURES, HIDDEN); b1: (1, HIDDEN);
    w2: (HIDDEN, nlabel); b2: (1, nlabel). Returns (batch, nlabel) f32."""
    batch = x.shape[0]
    nlabel = w2.shape[1]
    x = x.astype(jnp.float32)

    # ---- small-batch fast path: the whole op is ~2 MFLOP, XLA fusion wins ----
    if batch < SMALL_BATCH_FASTPATH:
        h = jnp.maximum(jnp.dot(x, w1, preferred_element_type=jnp.float32) + b1, 0.0)
        return jnp.dot(h, w2, preferred_element_type=jnp.float32) + b2

    # ---- tile selection ----
    # * multiple of 8 (sublane alignment of the block's second-to-last dim),
    # * at least 2 grid steps for mid-sized batches (keeps both v7x TCs busy),
    # * capped so double-buffered f32 x tiles fit v7x's 64 MiB VMEM.
    tm_eff = min(tm, _round_up(pl.cdiv(batch, 2), 8), TM_MAX)
    grid = (pl.cdiv(batch, tm_eff),)   # ragged last block is masked by Pallas

    cost = pl.CostEstimate(
        flops=2 * batch * IN_FEATURES * HIDDEN + 2 * batch * HIDDEN * nlabel,
        transcendentals=0,
        bytes_accessed=(batch * IN_FEATURES * 4       # x stream (f32)
                        + IN_FEATURES * HIDDEN * 4    # w1 (resident)
                        + HIDDEN * 4                  # b1
                        + HIDDEN * nlabel * 4         # w2 (resident)
                        + nlabel * 4                  # b2
                        + batch * nlabel * 4),        # output (f32)
    )

    out = pl.pallas_call(
        mlp_kernel,
        out_shape=jax.ShapeDtypeStruct((batch, nlabel), jnp.float32),
        grid_spec=pltpu.PrefetchScalarGridSpec(
            num_scalar_prefetch=0,
            grid=grid,
            in_specs=[
                # x: streamed per batch tile; last dim = full array dim (1874) -> legal.
                pl.BlockSpec((tm_eff, IN_FEATURES), lambda i: (i, 0)),
                pl.BlockSpec((IN_FEATURES, HIDDEN), lambda i: (0, 0)),  # w1: VMEM-resident
                pl.BlockSpec((1, HIDDEN), lambda i: (0, 0)),            # b1: resident
                pl.BlockSpec((HIDDEN, nlabel), lambda i: (0, 0)),       # w2: resident
                pl.BlockSpec((1, nlabel), lambda i: (0, 0)),            # b2: resident
            ],
            # Output at its true width (masked vst; traffic saving dominates).
            out_specs=pl.BlockSpec((tm_eff, nlabel), lambda i: (i, 0)),
        ),
        compiler_params=pltpu.CompilerParams(
            dimension_semantics=("parallel",),        # batch tiles shard across TCs on v7x
            vmem_limit_bytes=48 * 1024 * 1024,        # headroom for tm up to 2048 (f32)
        ),
        cost_estimate=cost,
    )(x, w1, b1, w2, b2)

    return out


def init_params(key, nlabel=NLABEL):
    # Deterministic init mimicking PyTorch nn.Linear: U(-1/sqrt(fan_in), +1/sqrt(fan_in))
    k1, k2, k3, k4 = jax.random.split(key, 4)
    bound1 = 1.0 / jnp.sqrt(IN_FEATURES)
    bound2 = 1.0 / jnp.sqrt(HIDDEN)
    w1 = jax.random.uniform(k1, (IN_FEATURES, HIDDEN), jnp.float32, -bound1, bound1)
    b1 = jax.random.uniform(k2, (1, HIDDEN), jnp.float32, -bound1, bound1)
    w2 = jax.random.uniform(k3, (HIDDEN, nlabel), jnp.float32, -bound2, bound2)
    b2 = jax.random.uniform(k4, (1, nlabel), jnp.float32, -bound2, bound2)
    return w1, b1, w2, b2


def _ref_forward(x, w1, b1, w2, b2):
    return jnp.maximum(x @ w1 + b1, 0.0) @ w2 + b2


if __name__ == "__main__":
    key = jax.random.PRNGKey(0)
    kx1, kx2, kp = jax.random.split(key, 3)
    w1, b1, w2, b2 = init_params(kp)

    # 1) Pallas path: batch large enough to tile (2 grid steps, ragged tail block).
    batch = 300
    x = jax.random.normal(kx1, (batch, IN_FEATURES), jnp.float32)
    out = jax.block_until_ready(classifier_forward(x, w1, b1, w2, b2))
    assert out.shape == (batch, NLABEL)
    ref = _ref_forward(x, w1, b1, w2, b2)
    assert jnp.allclose(out, ref, atol=2e-3, rtol=2e-3), "pallas path mismatch"

    # 2) Deployed-size batch (~8): small-batch fast path (plain XLA fusion).
    xs = jax.random.normal(kx2, (8, IN_FEATURES), jnp.float32)
    outs = jax.block_until_ready(classifier_forward(xs, w1, b1, w2, b2))
    assert outs.shape == (8, NLABEL)
    refs = _ref_forward(xs, w1, b1, w2, b2)
    assert jnp.allclose(outs, refs, atol=2e-3, rtol=2e-3), "fast path mismatch"

    print("KERNEL_OK")
</pallas_src>

<mosaic_0001>
module attributes {stable_mosaic.version = 11 : i64} {
  func.func @mlp_kernel(%arg0: i32, %arg1: memref<152x1874xf32, #tpu.memory_space<vmem>>, %arg2: memref<1874x64xf32, #tpu.memory_space<vmem>>, %arg3: memref<1x64xf32, #tpu.memory_space<vmem>>, %arg4: memref<64x8xf32, #tpu.memory_space<vmem>>, %arg5: memref<1x8xf32, #tpu.memory_space<vmem>>, %arg6: memref<152x8xf32, #tpu.memory_space<vmem>>) attributes {dimension_semantics = [#tpu.dimension_semantics<parallel>], iteration_bounds = array<i64: 2>, scalar_prefetch = 0 : i64, scratch_operands = 0 : i64, tpu.core_type = #tpu.core_type<tc>, window_params = [{transform_indices = @transform_0, window_bounds = array<i64: 152, 1874>}, {pipeline_mode = #tpu.pipeline_mode<synchronous>, transform_indices = @transform_1, window_bounds = array<i64: 1874, 64>}, {pipeline_mode = #tpu.pipeline_mode<synchronous>, transform_indices = @transform_2, window_bounds = array<i64: 1, 64>}, {pipeline_mode = #tpu.pipeline_mode<synchronous>, transform_indices = @transform_3, window_bounds = array<i64: 64, 8>}, {pipeline_mode = #tpu.pipeline_mode<synchronous>, transform_indices = @transform_4, window_bounds = array<i64: 1, 8>}, {transform_indices = @transform_5, window_bounds = array<i64: 152, 8>}]} {
    %c0 = arith.constant 0 : index
    %c0_0 = arith.constant 0 : index
    %0 = vector.load %arg1[%c0, %c0_0] : memref<152x1874xf32, #tpu.memory_space<vmem>>, vector<152x1874xf32>
    %c0_1 = arith.constant 0 : index
    %c0_2 = arith.constant 0 : index
    %1 = vector.load %arg2[%c0_1, %c0_2] : memref<1874x64xf32, #tpu.memory_space<vmem>>, vector<1874x64xf32>
    %cst = arith.constant dense<0.000000e+00> : vector<152x64xf32>
    %2 = tpu.matmul %0, %1, %cst {dimension_numbers = #tpu.dot_dimension_numbers<[1], [0], [0], [1], [0, 0, 1, 1], [], []>} : vector<152x1874xf32>, vector<1874x64xf32>, vector<152x64xf32> -> vector<152x64xf32>
    %c0_3 = arith.constant 0 : index
    %c0_4 = arith.constant 0 : index
    %3 = vector.load %arg3[%c0_3, %c0_4] : memref<1x64xf32, #tpu.memory_space<vmem>>, vector<1x64xf32>
    %4 = vector.broadcast %3 : vector<1x64xf32> to vector<152x64xf32>
    %5 = arith.addf %2, %4 : vector<152x64xf32>
    %cst_5 = arith.constant 0.000000e+00 : f32
    %6 = vector.broadcast %cst_5 : f32 to vector<152x64xf32>
    %7 = arith.maximumf %5, %6 : vector<152x64xf32>
    %c0_6 = arith.constant 0 : index
    %c0_7 = arith.constant 0 : index
    %8 = vector.load %arg4[%c0_6, %c0_7] : memref<64x8xf32, #tpu.memory_space<vmem>>, vector<64x8xf32>
    %cst_8 = arith.constant dense<0.000000e+00> : vector<152x8xf32>
    %9 = tpu.matmul %7, %8, %cst_8 {dimension_numbers = #tpu.dot_dimension_numbers<[1], [0], [0], [1], [0, 0, 1, 1], [], []>} : vector<152x64xf32>, vector<64x8xf32>, vector<152x8xf32> -> vector<152x8xf32>
    %c0_9 = arith.constant 0 : index
    %c0_10 = arith.constant 0 : index
    %10 = vector.load %arg5[%c0_9, %c0_10] : memref<1x8xf32, #tpu.memory_space<vmem>>, vector<1x8xf32>
    %11 = vector.broadcast %10 : vector<1x8xf32> to vector<152x8xf32>
    %12 = arith.addf %9, %11 : vector<152x8xf32>
    %c0_11 = arith.constant 0 : index
    %c0_12 = arith.constant 0 : index
    %13 = vector.load %arg6[%c0_11, %c0_12] : memref<152x8xf32, #tpu.memory_space<vmem>>, vector<152x8xf32>
    tpu.vector_store %arg6[%c0_11, %c0_12], %12 {strides = array<i32>} : memref<152x8xf32, #tpu.memory_space<vmem>>, vector<152x8xf32>,
    return
  }
  func.func @transform_0(%arg0: i32) -> (i32, i32) {
    %c0_i32 = arith.constant 0 : i32
    %c0_i32_0 = arith.constant 0 : i32
    return %arg0, %c0_i32 : i32, i32
  }
  func.func @transform_1(%arg0: i32) -> (i32, i32) {
    %c0_i32 = arith.constant 0 : i32
    %c0_i32_0 = arith.constant 0 : i32
    %c0_i32_1 = arith.constant 0 : i32
    return %c0_i32, %c0_i32_0 : i32, i32
  }
  func.func @transform_2(%arg0: i32) -> (i32, i32) {
    %c0_i32 = arith.constant 0 : i32
    %c0_i32_0 = arith.constant 0 : i32
    %c0_i32_1 = arith.constant 0 : i32
    return %c0_i32, %c0_i32_0 : i32, i32
  }
  func.func @transform_3(%arg0: i32) -> (i32, i32) {
    %c0_i32 = arith.constant 0 : i32
    %c0_i32_0 = arith.constant 0 : i32
    %c0_i32_1 = arith.constant 0 : i32
    return %c0_i32, %c0_i32_0 : i32, i32
  }
  func.func @transform_4(%arg0: i32) -> (i32, i32) {
    %c0_i32 = arith.constant 0 : i32
    %c0_i32_0 = arith.constant 0 : i32
    %c0_i32_1 = arith.constant 0 : i32
    return %c0_i32, %c0_i32_0 : i32, i32
  }
  func.func @transform_5(%arg0: i32) -> (i32, i32) {
    %c0_i32 = arith.constant 0 : i32
    %c0_i32_0 = arith.constant 0 : i32
    return %arg0, %c0_i32 : i32, i32
  }
}

</mosaic_0001>

<bundles_post_ra>
// kernel: classifier_forward.1
= control target key start
LH: loop header
LB: loop body
LE: loop exit
PB: predicated region body
PF: predicated region fallthrough
CT: control target
= control target key end

     0   :  { %10 = vsyncpa [#allocation3], 0  ;;  %s4854_s0 = inlined_call_operand.hbm [shape: f32[300,1874], index: 0, kind: input, shape index: {}]   ;;  %s4855_s1 = inlined_call_operand.vmem [shape: f32[1874,64], index: 1, kind: input, shape index: {}]   ;;  %s4856_s2 = inlined_call_operand.hbm [shape: f32[1,64], index: 2, kind: input, shape index: {}]   ;;  %s4857_s3 = inlined_call_operand.vmem [shape: f32[64,8], index: 3, kind: input, shape index: {}]   ;;  %s4858_s4 = inlined_call_operand.hbm [shape: f32[1,8], index: 4, kind: input, shape index: {}]   ;;  %s4859_s5 = inlined_call_operand.vmem [shape: f32[300,8], index: 5, kind: output, shape index: {}]  }
   0x1   :  { %12 = vsyncpa [#allocation3 + $0x1], 0 }
   0x2   :  { %13 = vsyncpa [#allocation5], 0  ;;  %s3052_s18 = smov 0   ;;  %s3054_s19 = smov 0  }
   0x3   :  { %s3056_s20 = smov 0   ;;  %s3058_s21 = smov 0  }
   0x4 LB: > { %s2500_s22 = sadd.s32 4294967295, %s3013_s21   ;;  %s3072_s23 = sadd.s32 1, %s3013_s21   ;;  %s3013_s21 = sphi %s3058_s21, %s4875_s21   ;;  %s3009_s20 = sphi %s3056_s20, %s4874_s20   ;;  %s3005_s19 = sphi %s3054_s19, %s4873_s19   ;;  %s3001_s18 = sphi %s3052_s18, %s4872_s18  }
   0x5   : > { %s23_s24 = ssub.s32 %s3013_s21, %s3072_s23  ;;  %s26_s25 = sadd.s32 1, %s3009_s20 }
   0x6   : > { %p24_p0 = scmp.eq.s32.totalorder %s23_s24, 0  ;;  %p33_p1 = scmp.ne.s32.totalorder %s3009_s20, %s3005_s19 }
   0x7   : > { %p34_p2 = scmp.eq.s32.totalorder %s3013_s21, 0  ;;  %p39_p3 = scmp.ne.s32.totalorder %s3005_s19, %s3001_s18 }
   0x8   : > { %s3082_s26 = scalar_select %p24_p0, %s3009_s20, %s26_s25  }
   0x9   : > { %p35_p4 = por %p34_p2, %p33_p1  ;;  %p3086_p5 = scmp.eq.s32.totalorder %s2500_s22, 0 }
   0xa   : > { %p2502_p6 = scmp.ge.s32.totalorder %s3013_s21, 1  ;;  %p160_p7 = scmp.lt.s32.totalorder %s3013_s21, 3 }
   0xb   : > { %s4864_s27 = scalar_select %p3086_p5, 1, 0 }
   0xc   : > { %p3094_p8 = por %p3086_p5, %p39_p3  ;;  %p3098_p9 = pnand %p2502_p6, %p160_p7 }
   0xd   : > { %s3015_s30 = smov [#allocation4]   ;;  %p2853_p11 = scmp.lt.s32.totalorder %s3013_s21, 2 }
   0xe   : > { %s4865_s28 = scalar_select %p3094_p8, 1, 0 }
   0xf   : > { %s4866_s29 = scalar_select %p3098_p9, 1, 0 }
  0x10   : > { %s176_s6 = sshll.u32 %s3015_s30, 4  ;;  %p2840_p10 = pneg %p3098_p9  ;;  %s177_s6 = int_to_ptr.vmem [resolvable:$true] %s176_s6 }
  0x11   : > { %p3111_p13 = pnand %p2853_p11, %p35_p4  ;;  %s3016_s9 = smov [#allocation6]  }
  0x12   : > { %p3107_p12 = pnand %p2840_p10, %p3086_p5  ;;  %s190_s10 = sshll.u32 %s3016_s9, 4  ;;  %s191_s10 = int_to_ptr.vmem [resolvable:$true] %s190_s10 }
  0x13   : > { %s2906_s11 = scalar_lea.vmem %s177_s6, 16  ;;  %s2913_s12 = scalar_lea.vmem %s177_s6, 32 }
  0x14   : > { %p2897_p0 = pneg %p3107_p12  ;;  %p2907_p1 = scmp.ne.s32.totalorder %s177_s6, %s2906_s11 }
  0x15   : > { %p2914_p6 = scmp.lt.s32.totalorder %s177_s6, %s177_s6  ;;  %p2915_p7 = scmp.lt.s32.totalorder %s2913_s12, %s2906_s11 }
  0x16   : > { %p2909_p2 = pnand %p2907_p1, %p2897_p0 }
  0x17   : > { %p2916_p10 = por %p2915_p7, %p2914_p6 }
  0x18   : > { %p2910_p3 = pneg %p2909_p2 }
  0x1a   : > { %p2917_p5 = pnand %p2916_p10, %p2910_p3 }
  0x1c   : > { %2920 = shalt.err (!%p2917_p5)
}
  0x1d   : > { %2843 = dma.hbm_to_vmem [thread:$0]  (!%p3107_p12), %s4856_s2, 16, %s177_s6, [#allocation5]  }
  0x1e   : > { %s201_s15 = sand.u32 1, %s3009_s20   ;;  %s2932_s16 = scalar_lea.vmem %s191_s10, 16 }
  0x1f   : > { %p2933_p4 = scmp.ne.s32.totalorder %s191_s10, %s2932_s16  ;;  %s2939_s17 = scalar_lea.vmem %s191_s10, 32 }
  0x20   : > { %p2940_p2 = scmp.lt.s32.totalorder %s191_s10, %s191_s10  ;;  %p2941_p6 = scmp.lt.s32.totalorder %s2939_s17, %s2932_s16 }
  0x21   : > { %p2935_p11 = pnand %p2933_p4, %p2897_p0 }
  0x22   : > { %p2942_p3 = por %p2941_p6, %p2940_p2 }
  0x23   : > { %p2936_p1 = pneg %p2935_p11 }
  0x25   : > { %p2943_p5 = pnand %p2942_p3, %p2936_p1 }
  0x27   : > { %2946 = shalt.err (!%p2943_p5)
}
  0x28   : > { %2846 = dma.hbm_to_vmem [thread:$0]  (!%p3107_p12), %s4858_s4, 16, %s191_s10, [#allocation5]  }
  0x29   : > { %s2827_s25 = smul.u32 2280, %s201_s15  ;;  %s3142_s7 = scalar_lea.sflag [#allocation3], %s201_s15 }
  0x2a   : > { %s2854_s30 = smul.u32 36480, %s3013_s21  ;;  %p2949_p12 = pneg %p3111_p13 }
  0x2b   : > { %s205_s12 = scalar_lea.vmem [#allocation2], %s2827_s25  ;;  %s2952_s17 = scalar_lea.hbm %s4854_s0, 72960 }
  0x2c   : > { %s3138_s11 = scalar_lea.hbm %s4854_s0, %s2854_s30  ;;  %s213_s13 = sshll.u32 %s205_s12, 4  ;;  %s3140_s13 = int_to_ptr.vmem [resolvable:$true] %s213_s13 }
  0x2d   : > { %s2947_s14 = scalar_lea.hbm %s3138_s11, 36480  ;;  %p2953_p4 = scmp.lt.s32.totalorder %s3138_s11, %s4854_s0 }
  0x2e   : > { %p2948_p0 = scmp.ne.s32.totalorder %s3138_s11, %s2947_s14  ;;  %p2954_p11 = scmp.lt.s32.totalorder %s2952_s17, %s2947_s14 }
  0x30   : > { %p2950_p7 = pnand %p2949_p12, %p2948_p0  ;;  %p2955_p1 = por %p2954_p11, %p2953_p4 }
  0x32   : > { %p2951_p10 = pneg %p2950_p7 }
  0x34   : > { %p2956_p2 = pnand %p2955_p1, %p2951_p10 }
  0x36   : > { %2959 = shalt.err (!%p2956_p2)
}
  0x37   : > { %s2960_s15 = scalar_lea.vmem %s3140_s13, 36480  ;;  %s3017_s25 = smov [#allocation2]  }
  0x38   : > { %p2961_p6 = scmp.ne.s32.totalorder %s3140_s13, %s2960_s15  ;;  %s2965_s30 = sshll.u32 %s3017_s25, 4  ;;  %s2966_s30 = int_to_ptr.vmem [resolvable:$false] %s2965_s30 }
  0x39   : > { %s2967_s6 = scalar_lea.vmem %s2966_s30, 72960  ;;  %p2968_p0 = scmp.lt.s32.totalorder %s3140_s13, %s2966_s30 }
  0x3a   : > { %p2963_p3 = pnand %p2961_p6, %p2949_p12  ;;  %p2969_p7 = scmp.lt.s32.totalorder %s2967_s6, %s2960_s15 }
  0x3c   : > { %p2964_p5 = pneg %p2963_p3  ;;  %p2970_p8 = por %p2969_p7, %p2968_p0 }
  0x3e   : > { %p2971_p9 = pnand %p2970_p8, %p2964_p5 }
  0x40   : > { %2974 = shalt.err (!%p2971_p9)
}
  0x41   : > { %s3018_s9 = smov 1920   ;;  %s3019_s12 = smov 120  }
  0x42   : > { %2850 = dma.hbm_to_vmem [thread:$0]  (!%p3111_p13), %s3138_s11, 36480, %s3140_s13, %s3142_s7, %s3018_s9, %s3018_s9, %s3019_s12  }
  0x43   : > { %p4869_p12 = scmp.ne.s32.totalorder %s4866_s29, 0 }
  0x44   : > { %s227_s14 = sand.u32 (!%p4869_p12), 1, %s3005_s19   ;;  %p4870_p8 = scmp.ne.s32.totalorder (!%p4869_p12), %s4865_s28, 0 }
  0x45   : > { %225 = sbr.rel (%p4869_p12) target bundleno = 951 (0x3b7), region = 40  ;;  %s228_s16 = scalar_lea.sflag (!%p4869_p12), [#allocation3], %s227_s14 }
  0x46   : > { %s2829_s10 = smul.u32 (!%p4869_p12), 2280, %s227_s14 }
  0x48   : > { %s3166_s17 = scalar_lea.vmem (!%p4869_p12), [#allocation2], %s2829_s10 }
  0x4a   : > { %2992 = dma.done.wait (%p4870_p8), %s228_s16, 36480  }
  0x4b   : > { %2994 = vsyncadd (%p4870_p8), %s228_s16, 4294930816  ;;  %p4871_p9 = scmp.ne.s32.totalorder %s4864_s27, 0 }
  0x4d   : > { %2996 = dma.done.wait (%p4871_p9), [#allocation5], 32  }
  0x4e   : > { %2998 = vsyncadd (%p4871_p9), [#allocation5], 4294967264  ;;  %v3020_v0 = vmov 0.0   ;;  %v573_v1 = vld [vmem:[%s4855_s1 + $0x78] sm:$0xff]  ;;  %v572_v3 = vld [vmem:[%s4855_s1 + $0x70] sm:$0xff]  ;;  %vm858_vm0 = vcmask 1041408  }
  0x4f   : > { %862 = vmatprep.subr.mxu0 %v3020_v0  ;;  %1022 = vmatprep.subr.mxu1 %v3020_v0  ;;  %v605_v2 = vld [vmem:[%s4855_s1 + $0x178] sm:$0xff]  ;;  %v604_v4 = vld [vmem:[%s4855_s1 + $0x170] sm:$0xff]  ;;  %v571_v5 = vld [vmem:[%s4855_s1 + $0x68] sm:$0xff]  ;;  %vm800_vm1 = vcmask 670720   ;;  %vm3021_vm2 = vmmov 0   ;;  %vm2176_vm3 = vcmask 523264  }
  0x50   : > { %863 = vmatpush1.msra.mxu0 %v573_v1  ;;  %1023 = vmatpush1.msra.mxu1 %v605_v2  ;;  %v603_v6 = vld [vmem:[%s4855_s1 + $0x168] sm:$0xff]  ;;  %v570_v7 = vld [vmem:[%s4855_s1 + $0x60] sm:$0xff]  ;;  %v569_v9 = vld [vmem:[%s4855_s1 + $0x58] sm:$0xff]  ;;  %vm2394_vm4 = vcmask 64512  }
  0x51   : > { %864 = vmatprep.subr.mxu0 %v3020_v0  ;;  %1024 = vmatprep.subr.mxu1 %v3020_v0  ;;  %v602_v8 = vld [vmem:[%s4855_s1 + $0x160] sm:$0xff]  ;;  %v601_v10 = vld [vmem:[%s4855_s1 + $0x158] sm:$0xff]  ;;  %v568_v11 = vld [vmem:[%s4855_s1 + $0x50] sm:$0xff] }
  0x52   : > { %865 = vmatpush1.msra.mxu0 %v572_v3  ;;  %1025 = vmatpush1.msra.mxu1 %v604_v4  ;;  %v600_v12 = vld [vmem:[%s4855_s1 + $0x150] sm:$0xff]  ;;  %v567_v13 = vld [vmem:[%s4855_s1 + $0x48] sm:$0xff]  ;;  %v566_v15 = vld [vmem:[%s4855_s1 + $0x40] sm:$0xff] }
  0x53   : > { %866 = vmatprep.subr.mxu0 %v3020_v0  ;;  %1026 = vmatprep.subr.mxu1 %v3020_v0  ;;  %v599_v14 = vld [vmem:[%s4855_s1 + $0x148] sm:$0xff]  ;;  %v598_v16 = vld [vmem:[%s4855_s1 + $0x140] sm:$0xff]  ;;  %v565_v17 = vld [vmem:[%s4855_s1 + $0x38] sm:$0xff] }
  0x54   : > { %867 = vmatpush1.msra.mxu0 %v571_v5  ;;  %1027 = vmatpush1.msra.mxu1 %v603_v6  ;;  %v597_v18 = vld [vmem:[%s4855_s1 + $0x138] sm:$0xff]  ;;  %v564_v19 = vld [vmem:[%s4855_s1 + $0x30] sm:$0xff]  ;;  %v563_v21 = vld [vmem:[%s4855_s1 + $0x28] sm:$0xff] }
  0x55   : > { %868 = vmatprep.subr.mxu0 %v3020_v0  ;;  %1028 = vmatprep.subr.mxu1 %v3020_v0  ;;  %v596_v20 = vld [vmem:[%s4855_s1 + $0x130] sm:$0xff]  ;;  %v595_v22 = vld [vmem:[%s4855_s1 + $0x128] sm:$0xff]  ;;  %v562_v23 = vld [vmem:[%s4855_s1 + $0x20] sm:$0xff] }
  0x56   : > { %869 = vmatpush1.msra.mxu0 %v570_v7  ;;  %1029 = vmatpush1.msra.mxu1 %v602_v8  ;;  %v594_v24 = vld [vmem:[%s4855_s1 + $0x120] sm:$0xff]  ;;  %v561_v25 = vld [vmem:[%s4855_s1 + $0x18] sm:$0xff]  ;;  %v560_v27 = vld [vmem:[%s4855_s1 + $0x10] sm:$0xff] }
  0x57   : > { %870 = vmatprep.subr.mxu0 %v3020_v0  ;;  %1030 = vmatprep.subr.mxu1 %v3020_v0  ;;  %v593_v26 = vld [vmem:[%s4855_s1 + $0x118] sm:$0xff]  ;;  %v592_v28 = vld [vmem:[%s4855_s1 + $0x110] sm:$0xff]  ;;  %v559_v29 = vld [vmem:[%s4855_s1 + $0x8] sm:$0xff] }
  0x58   : > { %871 = vmatpush1.msra.mxu0 %v569_v9  ;;  %1031 = vmatpush1.msra.mxu1 %v601_v10  ;;  %v591_v30 = vld [vmem:[%s4855_s1 + $0x108] sm:$0xff]  ;;  %v558_v31 = vld [vmem:[%s4855_s1] sm:$0xff]  ;;  %v589_v33 = vld [vmem:[%s4855_s1 + $0xf8] sm:$0xff] }
  0x59   : > { %872 = vmatprep.subr.mxu0 %v3020_v0  ;;  %1032 = vmatprep.subr.mxu1 %v3020_v0  ;;  %v590_v32 = vld [vmem:[%s4855_s1 + $0x100] sm:$0xff]  ;;  %v621_v34 = vld [vmem:[%s4855_s1 + $0x1f8] sm:$0xff]  ;;  %v588_v35 = vld [vmem:[%s4855_s1 + $0xf0] sm:$0xff] }
  0x5a   : > { %873 = vmatpush1.msra.mxu0 %v568_v11  ;;  %1033 = vmatpush1.msra.mxu1 %v600_v12  ;;  %v620_v36 = vld [vmem:[%s4855_s1 + $0x1f0] sm:$0xff]  ;;  %v587_v37 = vld [vmem:[%s4855_s1 + $0xe8] sm:$0xff]  ;;  %v586_v39 = vld [vmem:[%s4855_s1 + $0xe0] sm:$0xff] }
  0x5b   : > { %874 = vmatprep.subr.mxu0 %v3020_v0  ;;  %1034 = vmatprep.subr.mxu1 %v3020_v0  ;;  %v619_v38 = vld [vmem:[%s4855_s1 + $0x1e8] sm:$0xff]  ;;  %v618_v40 = vld [vmem:[%s4855_s1 + $0x1e0] sm:$0xff]  ;;  %v585_v41 = vld [vmem:[%s4855_s1 + $0xd8] sm:$0xff] }
  0x5c   : > { %875 = vmatpush1.msra.mxu0 %v567_v13  ;;  %1035 = vmatpush1.msra.mxu1 %v599_v14  ;;  %v617_v42 = vld [vmem:[%s4855_s1 + $0x1d8] sm:$0xff]  ;;  %v584_v43 = vld [vmem:[%s4855_s1 + $0xd0] sm:$0xff]  ;;  %v583_v45 = vld [vmem:[%s4855_s1 + $0xc8] sm:$0xff] }
  0x5d   : > { %876 = vmatprep.subr.mxu0 %v3020_v0  ;;  %1036 = vmatprep.subr.mxu1 %v3020_v0  ;;  %v616_v44 = vld [vmem:[%s4855_s1 + $0x1d0] sm:$0xff]  ;;  %v615_v46 = vld [vmem:[%s4855_s1 + $0x1c8] sm:$0xff]  ;;  %v582_v47 = vld [vmem:[%s4855_s1 + $0xc0] sm:$0xff] }
  0x5e   : > { %877 = vmatpush1.msra.mxu0 %v566_v15  ;;  %1037 = vmatpush1.msra.mxu1 %v598_v16  ;;  %v614_v48 = vld [vmem:[%s4855_s1 + $0x1c0] sm:$0xff]  ;;  %v581_v49 = vld [vmem:[%s4855_s1 + $0xb8] sm:$0xff]  ;;  %v580_v51 = vld [vmem:[%s4855_s1 + $0xb0] sm:$0xff] }
  0x5f   : > { %878 = vmatprep.subr.mxu0 %v3020_v0  ;;  %1038 = vmatprep.subr.mxu1 %v3020_v0  ;;  %v613_v50 = vld [vmem:[%s4855_s1 + $0x1b8] sm:$0xff]  ;;  %v612_v52 = vld [vmem:[%s4855_s1 + $0x1b0] sm:$0xff]  ;;  %v579_v53 = vld [vmem:[%s4855_s1 + $0xa8] sm:$0xff] }
  0x60   : > { %879 = vmatpush1.msra.mxu0 %v565_v17  ;;  %1039 = vmatpush1.msra.mxu1 %v597_v18  ;;  %v611_v54 = vld [vmem:[%s4855_s1 + $0x1a8] sm:$0xff]  ;;  %v578_v55 = vld [vmem:[%s4855_s1 + $0xa0] sm:$0xff]  ;;  %v577_v57 = vld [vmem:[%s4855_s1 + $0x98] sm:$0xff] }
  0x61   : > { %880 = vmatprep.subr.mxu0 %v3020_v0  ;;  %1040 = vmatprep.subr.mxu1 %v3020_v0  ;;  %v610_v56 = vld [vmem:[%s4855_s1 + $0x1a0] sm:$0xff]  ;;  %v609_v58 = vld [vmem:[%s4855_s1 + $0x198] sm:$0xff]  ;;  %v576_v59 = vld [vmem:[%s4855_s1 + $0x90] sm:$0xff] }
  0x62   : > { %881 = vmatpush1.msra.mxu0 %v564_v19  ;;  %1041 = vmatpush1.msra.mxu1 %v596_v20  ;;  %v608_v60 = vld [vmem:[%s4855_s1 + $0x190] sm:$0xff]  ;;  %v575_v61 = vld [vmem:[%s4855_s1 + $0x88] sm:$0xff]  ;;  %v574_v63 = vld [vmem:[%s4855_s1 + $0x80] sm:$0xff] }
  0x63   : > { %882 = vmatprep.subr.mxu0 %v3020_v0  ;;  %1042 = vmatprep.subr.mxu1 %v3020_v0  ;;  %v607_v62 = vld [vmem:[%s4855_s1 + $0x188] sm:$0xff]  ;;  %v606_v2 = vld [vmem:[%s4855_s1 + $0x180] sm:$0xff]  ;;  %v275_v5 = vld [vmem:[%s3166_s17 + $0x10] sm:$0xff] }
  0x64   : > { %883 = vmatpush1.msra.mxu0 %v563_v21  ;;  %1043 = vmatpush1.msra.mxu1 %v595_v22  ;;  %v274_v1 = vld [vmem:[%s3166_s17 + $0x8] sm:$0xff]  ;;  %v276_v3 = vld [vmem:[%s3166_s17 + $0x18] sm:$0xff]  ;;  %v273_v4 = vld [vmem:[%s3166_s17] sm:$0xff] }
  0x65   : > { %884 = vmatprep.subr.mxu0 %v3020_v0  ;;  %1044 = vmatprep.subr.mxu1 %v3020_v0  ;;  %v289_v6 = vld [vmem:[%s3166_s17 + $0x80] sm:$0xff]  ;;  %v669_v7 = vld [vmem:[%s4855_s1 + $0x378] sm:$0xff]  ;;  %v290_v10 = vld [vmem:[%s3166_s17 + $0x88] sm:$0xff] }
  0x66   : > { %885 = vmatpush1.msra.mxu0 %v562_v23  ;;  %1045 = vmatpush1.msra.mxu1 %v594_v24  ;;  %v291_v8 = vld [vmem:[%s3166_s17 + $0x90] sm:$0xff]  ;;  %v288_v9 = vld [vmem:[%s3166_s17 + $0x78] sm:$0xff]  ;;  %v306_v13 = vld [vmem:[%s3166_s17 + $0x108] sm:$0xff] }
  0x67   : > { %886 = vmatprep.subr.mxu0 %v3020_v0  ;;  %1046 = vmatprep.subr.mxu1 %v3020_v0  ;;  %v668_v11 = vld [vmem:[%s4855_s1 + $0x370] sm:$0xff]  ;;  %v304_v12 = vld [vmem:[%s3166_s17 + $0xf8] sm:$0xff]  ;;  %v667_v14 = vld [vmem:[%s4855_s1 + $0x368] sm:$0xff] }
  0x68   : > { %887 = vmatpush1.msra.mxu0 %v561_v25  ;;  %1047 = vmatpush1.msra.mxu1 %v593_v26  ;;  %v637_v15 = vld [vmem:[%s4855_s1 + $0x278] sm:$0xff]  ;;  %v305_v17 = vld [vmem:[%s3166_s17 + $0x100] sm:$0xff]  ;;  %v318_v22 = vld [vmem:[%s3166_s17 + $0x168] sm:$0xff] }
  0x69   : > { %888 = vmatprep.subr.mxu0 %v3020_v0  ;;  %1048 = vmatprep.subr.mxu1 %v3020_v0  ;;  %v303_v16 = vld [vmem:[%s3166_s17 + $0xf0] sm:$0xff]  ;;  %v666_v19 = vld [vmem:[%s4855_s1 + $0x360] sm:$0xff]  ;;  %v334_v25 = vld [vmem:[%s3166_s17 + $0x1e8] sm:$0xff] }
  0x6a   : > { %889 = vmatpush1.msra.mxu0 %v560_v27  ;;  %1049 = vmatpush1.msra.mxu1 %v592_v28  ;;  %v319_v18 = vld [vmem:[%s3166_s17 + $0x170] sm:$0xff]  ;;  %v321_v20 = vld [vmem:[%s3166_s17 + $0x180] sm:$0xff]  ;;  %v320_v23 = vld [vmem:[%s3166_s17 + $0x178] sm:$0xff] }
  0x6b   : > { %890 = vmatprep.subr.mxu0 %v3020_v0  ;;  %1050 = vmatprep.subr.mxu1 %v3020_v0  ;;  %v665_v21 = vld [vmem:[%s4855_s1 + $0x358] sm:$0xff]  ;;  %v664_v24 = vld [vmem:[%s4855_s1 + $0x350] sm:$0xff]  ;;  %v333_v28 = vld [vmem:[%s3166_s17 + $0x1e0] sm:$0xff] }
  0x6c   : > { %891 = vmatpush1.msra.mxu0 %v559_v29  ;;  %1051 = vmatpush1.msra.mxu1 %v591_v30  ;;  %v336_v26 = vld [vmem:[%s3166_s17 + $0x1f8] sm:$0xff]  ;;  %v636_v27 = vld [vmem:[%s4855_s1 + $0x270] sm:$0xff]  ;;  %v663_v30 = vld [vmem:[%s4855_s1 + $0x348] sm:$0xff] }
  0x6d   : > { %892 = vmatprep.subr.mxu0 %v3020_v0  ;;  %1052 = vmatprep.subr.mxu1 %v3020_v0  ;;  %v335_v29 = vld [vmem:[%s3166_s17 + $0x1f0] sm:$0xff] }
  0x6e   : > { %893 = vmatpush1.msra.mxu0 %v558_v31  ;;  %1053 = vmatpush1.msra.mxu1 %v590_v32  ;;  %v635_v31 = vld [vmem:[%s4855_s1 + $0x268] sm:$0xff]  ;;  %v662_v32 = vld [vmem:[%s4855_s1 + $0x340] sm:$0xff] }
  0x6f   : > { %894 = vmatprep.subr.mxu0 %v3020_v0  ;;  %1054 = vmatprep.subr.mxu1 %v3020_v0 }
  0x70   : > { %895 = vmatpush2.msra.mxu0 %v589_v33  ;;  %1055 = vmatpush2.msra.mxu1 %v621_v34  ;;  %v349_v33 = vld [vmem:[%s3166_s17 + $0x260] sm:$0xff]  ;;  %v351_v34 = vld [vmem:[%s3166_s17 + $0x270] sm:$0xff] }
  0x71   : > { %896 = vmatprep.subr.mxu0 %v3020_v0  ;;  %1056 = vmatprep.subr.mxu1 %v3020_v0 }
  0x72   : > { %897 = vmatpush2.msra.mxu0 %v588_v35  ;;  %1057 = vmatpush2.msra.mxu1 %v620_v36  ;;  %v634_v35 = vld [vmem:[%s4855_s1 + $0x260] sm:$0xff] }
  0x73   : > { %898 = vmatprep.subr.mxu0 %v3020_v0  ;;  %1058 = vmatprep.subr.mxu1 %v3020_v0  ;;  %v348_v36 = vld [vmem:[%s3166_s17 + $0x258] sm:$0xff] }
  0x74   : > { %899 = vmatpush2.msra.mxu0 %v587_v37  ;;  %1059 = vmatpush2.msra.mxu1 %v619_v38  ;;  %v350_v37 = vld [vmem:[%s3166_s17 + $0x268] sm:$0xff]  ;;  %v661_v38 = vld [vmem:[%s4855_s1 + $0x338] sm:$0xff] }
  0x75   : > { %900 = vmatprep.subr.mxu0 %v3020_v0  ;;  %1060 = vmatprep.subr.mxu1 %v3020_v0 }
  0x76   : > { %901 = vmatpush2.msra.mxu0 %v586_v39  ;;  %1061 = vmatpush2.msra.mxu1 %v618_v40  ;;  %v633_v39 = vld [vmem:[%s4855_s1 + $0x258] sm:$0xff] }
  0x77   : > { %902 = vmatprep.subr.mxu0 %v3020_v0  ;;  %1062 = vmatprep.subr.mxu1 %v3020_v0  ;;  %v364_v40 = vld [vmem:[%s3166_s17 + $0x2d8] sm:$0xff] }
  0x78   : > { %903 = vmatpush2.msra.mxu0 %v585_v41  ;;  %1063 = vmatpush2.msra.mxu1 %v617_v42  ;;  %v366_v41 = vld [vmem:[%s3166_s17 + $0x2e8] sm:$0xff] }
  0x79   : > { %904 = vmatprep.subr.mxu0 %v3020_v0  ;;  %1064 = vmatprep.subr.mxu1 %v3020_v0  ;;  %v632_v42 = vld [vmem:[%s4855_s1 + $0x250] sm:$0xff] }
  0x7a   : > { %905 = vmatpush2.msra.mxu0 %v584_v43  ;;  %1065 = vmatpush2.msra.mxu1 %v616_v44  ;;  %v660_v43 = vld [vmem:[%s4855_s1 + $0x330] sm:$0xff] }
  0x7b   : > { %906 = vmatprep.subr.mxu0 %v3020_v0  ;;  %1066 = vmatprep.subr.mxu1 %v3020_v0  ;;  %v363_v44 = vld [vmem:[%s3166_s17 + $0x2d0] sm:$0xff] }
  0x7c   : > { %907 = vmatpush2.msra.mxu0 %v583_v45  ;;  %1067 = vmatpush2.msra.mxu1 %v615_v46  ;;  %v365_v45 = vld [vmem:[%s3166_s17 + $0x2e0] sm:$0xff] }
  0x7d   : > { %908 = vmatprep.subr.mxu0 %v3020_v0  ;;  %1068 = vmatprep.subr.mxu1 %v3020_v0  ;;  %v631_v46 = vld [vmem:[%s4855_s1 + $0x248] sm:$0xff] }
  0x7e   : > { %909 = vmatpush2.msra.mxu0 %v582_v47  ;;  %1069 = vmatpush2.msra.mxu1 %v614_v48  ;;  %v659_v47 = vld [vmem:[%s4855_s1 + $0x328] sm:$0xff]  ;;  %v379_v48 = vld [vmem:[%s3166_s17 + $0x350] sm:$0xff] }
  0x7f   : > { %910 = vmatprep.subr.mxu0 %v3020_v0  ;;  %1070 = vmatprep.subr.mxu1 %v3020_v0 }
  0x80   : > { %911 = vmatpush2.msra.mxu0 %v581_v49  ;;  %1071 = vmatpush2.msra.mxu1 %v613_v50  ;;  %v381_v49 = vld [vmem:[%s3166_s17 + $0x360] sm:$0xff] }
  0x81   : > { %912 = vmatprep.subr.mxu0 %v3020_v0  ;;  %1072 = vmatprep.subr.mxu1 %v3020_v0  ;;  %v630_v50 = vld [vmem:[%s4855_s1 + $0x240] sm:$0xff] }
  0x82   : > { %913 = vmatpush2.msra.mxu0 %v580_v51  ;;  %1073 = vmatpush2.msra.mxu1 %v612_v52  ;;  %v378_v51 = vld [vmem:[%s3166_s17 + $0x348] sm:$0xff]  ;;  %v380_v52 = vld [vmem:[%s3166_s17 + $0x358] sm:$0xff] }
  0x83   : > { %914 = vmatprep.subr.mxu0 %v3020_v0  ;;  %1074 = vmatprep.subr.mxu1 %v3020_v0 }
  0x84   : > { %915 = vmatpush2.msra.mxu0 %v579_v53  ;;  %1075 = vmatpush2.msra.mxu1 %v611_v54  ;;  %v658_v53 = vld [vmem:[%s4855_s1 + $0x320] sm:$0xff]  ;;  %v629_v54 = vld [vmem:[%s4855_s1 + $0x238] sm:$0xff] }
  0x85   : > { %916 = vmatprep.subr.mxu0 %v3020_v0  ;;  %1076 = vmatprep.subr.mxu1 %v3020_v0 }
  0x86   : > { %917 = vmatpush2.msra.mxu0 %v578_v55  ;;  %1077 = vmatpush2.msra.mxu1 %v610_v56  ;;  %v657_v55 = vld [vmem:[%s4855_s1 + $0x318] sm:$0xff]  ;;  %v394_v56 = vld [vmem:[%s3166_s17 + $0x3c8] sm:$0xff] }
  0x87   : > { %918 = vmatprep.subr.mxu0 %v3020_v0  ;;  %1078 = vmatprep.subr.mxu1 %v3020_v0 }
  0x88   : > { %919 = vmatpush2.msra.mxu0 %v577_v57  ;;  %1079 = vmatpush2.msra.mxu1 %v609_v58  ;;  %v396_v57 = vld [vmem:[%s3166_s17 + $0x3d8] sm:$0xff]  ;;  %v628_v58 = vld [vmem:[%s4855_s1 + $0x230] sm:$0xff] }
  0x89   : > { %920 = vmatprep.subr.mxu0 %v3020_v0  ;;  %1080 = vmatprep.subr.mxu1 %v3020_v0 }
  0x8a   : > { %921 = vmatpush2.msra.mxu0 %v576_v59  ;;  %1081 = vmatpush2.msra.mxu1 %v608_v60  ;;  %v393_v59 = vld [vmem:[%s3166_s17 + $0x3c0] sm:$0xff]  ;;  %v395_v60 = vld [vmem:[%s3166_s17 + $0x3d0] sm:$0xff] }
  0x8b   : > { %922 = vmatprep.subr.mxu0 %v3020_v0  ;;  %1082 = vmatprep.subr.mxu1 %v3020_v0 }
  0x8c   : > { %923 = vmatpush2.msra.mxu0 %v575_v61  ;;  %1083 = vmatpush2.msra.mxu1 %v607_v62  ;;  %v656_v61 = vld [vmem:[%s4855_s1 + $0x310] sm:$0xff]  ;;  %v627_v62 = vld [vmem:[%s4855_s1 + $0x228] sm:$0xff] }
  0x8d   : > { %924 = vmatprep.subr.mxu0 %v3020_v0  ;;  %1084 = vmatprep.subr.mxu1 %v3020_v0 }
  0x8e   : > { %925 = vmatpush2.msra.mxu0 %v574_v63  ;;  %926 = vmatprep.mubr.f32.mxu0 %v274_v1  ;;  %v409_v63 = vld [vmem:[%s3166_s17 + $0x440] sm:$0xff]  ;;  %v411_v1 = vld [vmem:[%s3166_s17 + $0x450] sm:$0xff] }
  0x8f   : > { %1085 = vmatpush2.msra.mxu1 %v606_v2  ;;  %1086 = vmatprep.mubr.f32.mxu1 %v276_v3  ;;  %v626_v2 = vld [vmem:[%s4855_s1 + $0x220] sm:$0xff]  ;;  %v655_v3 = vld [vmem:[%s4855_s1 + $0x308] sm:$0xff] }
  0x90   : > { %927 = vmatmul.mubr.f32.vlgmr.msra.gmra.mxu0 %v273_v4  ;;  %1087 = vmatmul.mubr.f32.vlgmr.msra.gmra.mxu1 %v275_v5  ;;  %v408_v4 = vld [vmem:[%s3166_s17 + $0x438] sm:$0xff]  ;;  %v410_v5 = vld [vmem:[%s3166_s17 + $0x448] sm:$0xff] }
  0x91   : > { %1342 = vmatprep.subr.mxu1 %v3020_v0  ;;  %931 = vmatprep.mubr.f32.mxu0 %v289_v6  ;;  %v625_v6 = vld [vmem:[%s4855_s1 + $0x218] sm:$0xff] }
  0x92   : > { %1343 = vmatpush1.msra.mxu1 %v669_v7  ;;  %1091 = vmatprep.mubr.f32.mxu1 %v291_v8  ;;  %v654_v7 = vld [vmem:[%s4855_s1 + $0x300] sm:$0xff] }
  0x93   : > { %1344 = vmatprep.subr.mxu1 %v3020_v0  ;;  %1182 = vmatprep.subr.mxu0 %v3020_v0  ;;  %v424_v8 = vld [vmem:[%s3166_s17 + $0x4b8] sm:$0xff] }
  0x94   : > { %932 = vmatmul.mubr.f32.gmra.mxu0 %v288_v9  ;;  %1092 = vmatmul.mubr.f32.gmra.mxu1 %v290_v10  ;;  %v426_v9 = vld [vmem:[%s3166_s17 + $0x4c8] sm:$0xff] }
  0x95   : > { %1345 = vmatpush1.msra.mxu1 %v668_v11  ;;  %936 = vmatprep.mubr.f32.mxu0 %v304_v12  ;;  %v624_v10 = vld [vmem:[%s4855_s1 + $0x210] sm:$0xff]  ;;  %v685_v11 = vld [vmem:[%s4855_s1 + $0x3f8] sm:$0xff] }
  0x96   : > { %1346 = vmatprep.subr.mxu1 %v3020_v0  ;;  %1096 = vmatprep.mubr.f32.mxu1 %v306_v13  ;;  %v423_v12 = vld [vmem:[%s3166_s17 + $0x4b0] sm:$0xff]  ;;  %v425_v13 = vld [vmem:[%s3166_s17 + $0x4c0] sm:$0xff] }
  0x97   : > { %1347 = vmatpush1.msra.mxu1 %v667_v14  ;;  %1183 = vmatpush1.msra.mxu0 %v637_v15  ;;  %v623_v14 = vld [vmem:[%s4855_s1 + $0x208] sm:$0xff]  ;;  %v684_v15 = vld [vmem:[%s4855_s1 + $0x3f0] sm:$0xff] }
  0x98   : > { %937 = vmatmul.mubr.f32.gmra.mxu0 %v303_v16  ;;  %1097 = vmatmul.mubr.f32.gmra.mxu1 %v305_v17  ;;  %v439_v16 = vld [vmem:[%s3166_s17 + $0x530] sm:$0xff]  ;;  %v441_v17 = vld [vmem:[%s3166_s17 + $0x540] sm:$0xff] }
  0x99   : > { %1348 = vmatprep.subr.mxu1 %v3020_v0  ;;  %941 = vmatprep.mubr.f32.mxu0 %v319_v18  ;;  %v622_v18 = vld [vmem:[%s4855_s1 + $0x200] sm:$0xff] }
  0x9a   : > { %1349 = vmatpush1.msra.mxu1 %v666_v19  ;;  %1101 = vmatprep.mubr.f32.mxu1 %v321_v20  ;;  %v438_v19 = vld [vmem:[%s3166_s17 + $0x528] sm:$0xff]  ;;  %v440_v20 = vld [vmem:[%s3166_s17 + $0x538] sm:$0xff] }
  0x9b   : > { %1350 = vmatprep.subr.mxu1 %v3020_v0  ;;  %1184 = vmatprep.subr.mxu0 %v3020_v0 }
  0x9c   : > { %1351 = vmatpush1.msra.mxu1 %v665_v21  ;;  %942 = vmatmul.mubr.f32.gmra.mxu0 %v318_v22  ;;  %v683_v21 = vld [vmem:[%s4855_s1 + $0x3e8] sm:$0xff]  ;;  %v653_v22 = vld [vmem:[%s4855_s1 + $0x2f8] sm:$0xff] }
  0x9d   : > { %1102 = vmatmul.mubr.f32.gmra.mxu1 %v320_v23  ;;  %1352 = vmatprep.subr.mxu1 %v3020_v0  ;;  %v454_v23 = vld [vmem:[%s3166_s17 + $0x5a8] sm:$0xff] }
  0x9e   : > { %1353 = vmatpush1.msra.mxu1 %v664_v24  ;;  %946 = vmatprep.mubr.f32.mxu0 %v334_v25  ;;  %v456_v24 = vld [vmem:[%s3166_s17 + $0x5b8] sm:$0xff]  ;;  %v652_v25 = vld [vmem:[%s4855_s1 + $0x2f0] sm:$0xff] }
  0x9f   : > { %1106 = vmatprep.mubr.f32.mxu1 %v336_v26  ;;  %1185 = vmatpush1.msra.mxu0 %v636_v27  ;;  %v682_v26 = vld [vmem:[%s4855_s1 + $0x3e0] sm:$0xff] }
  0xa0   : > { %1354 = vmatprep.subr.mxu1 %v3020_v0  ;;  %947 = vmatmul.mubr.f32.gmra.mxu0 %v333_v28  ;;  %v453_v27 = vld [vmem:[%s3166_s17 + $0x5a0] sm:$0xff]  ;;  %v455_v28 = vld [vmem:[%s3166_s17 + $0x5b0] sm:$0xff] }
  0xa1   : > { %1107 = vmatmul.mubr.f32.gmra.mxu1 %v335_v29  ;;  %1186 = vmatprep.subr.mxu0 %v3020_v0  ;;  %v651_v29 = vld [vmem:[%s4855_s1 + $0x2e8] sm:$0xff] }
  0xa2   : > { %1355 = vmatpush1.msra.mxu1 %v663_v30  ;;  %1187 = vmatpush1.msra.mxu0 %v635_v31  ;;  %v681_v30 = vld [vmem:[%s4855_s1 + $0x3d8] sm:$0xff]  ;;  %v469_v31 = vld [vmem:[%s3166_s17 + $0x620] sm:$0xff] }
  0xa3   : > { %1356 = vmatprep.subr.mxu1 %v3020_v0  ;;  %1188 = vmatprep.subr.mxu0 %v3020_v0 }
  0xa4   : > { %1357 = vmatpush1.msra.mxu1 %v662_v32  ;;  %951 = vmatprep.mubr.f32.mxu0 %v349_v33  ;;  %v471_v32 = vld [vmem:[%s3166_s17 + $0x630] sm:$0xff]  ;;  %v650_v33 = vld [vmem:[%s4855_s1 + $0x2e0] sm:$0xff] }
  0xa5   : > { %1111 = vmatprep.mubr.f32.mxu1 %v351_v34  ;;  %1189 = vmatpush1.msra.mxu0 %v634_v35  ;;  %v680_v34 = vld [vmem:[%s4855_s1 + $0x3d0] sm:$0xff]  ;;  %v468_v35 = vld [vmem:[%s3166_s17 + $0x618] sm:$0xff] }
  0xa6   : > { %1358 = vmatprep.subr.mxu1 %v3020_v0  ;;  %952 = vmatmul.mubr.f32.gmra.mxu0 %v348_v36  ;;  %v470_v36 = vld [vmem:[%s3166_s17 + $0x628] sm:$0xff] }
  0xa7   : > { %1112 = vmatmul.mubr.f32.gmra.mxu1 %v350_v37  ;;  %1190 = vmatprep.subr.mxu0 %v3020_v0  ;;  %v649_v37 = vld [vmem:[%s4855_s1 + $0x2d8] sm:$0xff] }
  0xa8   : > { %1359 = vmatpush1.msra.mxu1 %v661_v38  ;;  %1191 = vmatpush1.msra.mxu0 %v633_v39  ;;  %v679_v38 = vld [vmem:[%s4855_s1 + $0x3c8] sm:$0xff]  ;;  %v484_v39 = vld [vmem:[%s3166_s17 + $0x698] sm:$0xff] }
  0xa9   : > { %1192 = vmatprep.subr.mxu0 %v3020_v0  ;;  %1360 = vmatprep.subr.mxu1 %v3020_v0 }
  0xaa   : > { %956 = vmatprep.mubr.f32.mxu0 %v364_v40  ;;  %1116 = vmatprep.mubr.f32.mxu1 %v366_v41  ;;  %v486_v40 = vld [vmem:[%s3166_s17 + $0x6a8] sm:$0xff] }
  0xab   : > { %1193 = vmatpush1.msra.mxu0 %v632_v42  ;;  %1361 = vmatpush1.msra.mxu1 %v660_v43  ;;  %v648_v41 = vld [vmem:[%s4855_s1 + $0x2d0] sm:$0xff]  ;;  %v485_v43 = vld [vmem:[%s3166_s17 + $0x6a0] sm:$0xff] }
  0xac   : > { %957 = vmatmul.mubr.f32.gmra.mxu0 %v363_v44  ;;  %1117 = vmatmul.mubr.f32.gmra.mxu1 %v365_v45  ;;  %v483_v42 = vld [vmem:[%s3166_s17 + $0x690] sm:$0xff]  ;;  %v678_v44 = vld [vmem:[%s4855_s1 + $0x3c0] sm:$0xff]  ;;  %v647_v45 = vld [vmem:[%s4855_s1 + $0x2c8] sm:$0xff] }
  0xad   : > { %1194 = vmatprep.subr.mxu0 %v3020_v0  ;;  %1362 = vmatprep.subr.mxu1 %v3020_v0 }
  0xae   : > { %1195 = vmatpush1.msra.mxu0 %v631_v46  ;;  %1363 = vmatpush1.msra.mxu1 %v659_v47  ;;  %v677_v46 = vld [vmem:[%s4855_s1 + $0x3b8] sm:$0xff] }
  0xaf   : > { %1196 = vmatprep.subr.mxu0 %v3020_v0  ;;  %961 = vmatprep.mubr.f32.mxu0 %v379_v48  ;;  %v499_v47 = vld [vmem:[%s3166_s17 + $0x710] sm:$0xff]  ;;  %v501_v48 = vld [vmem:[%s3166_s17 + $0x720] sm:$0xff] }
  0xb0   : > { %1121 = vmatprep.mubr.f32.mxu1 %v381_v49  ;;  %1197 = vmatpush1.msra.mxu0 %v630_v50  ;;  %v646_v49 = vld [vmem:[%s4855_s1 + $0x2c0] sm:$0xff]  ;;  %v498_v50 = vld [vmem:[%s3166_s17 + $0x708] sm:$0xff] }
  0xb1   : > { %1364 = vmatprep.subr.mxu1 %v3020_v0  ;;  %962 = vmatmul.mubr.f32.gmra.mxu0 %v378_v51  ;;  %v500_v51 = vld [vmem:[%s3166_s17 + $0x718] sm:$0xff] }
  0xb2   : > { %1122 = vmatmul.mubr.f32.gmra.mxu1 %v380_v52  ;;  %1198 = vmatprep.subr.mxu0 %v3020_v0  ;;  %v645_v52 = vld [vmem:[%s4855_s1 + $0x2b8] sm:$0xff] }
  0xb3   : > { %1365 = vmatpush1.msra.mxu1 %v658_v53  ;;  %1199 = vmatpush1.msra.mxu0 %v629_v54  ;;  %v676_v53 = vld [vmem:[%s4855_s1 + $0x3b0] sm:$0xff] }
  0xb4   : > { %1366 = vmatprep.subr.mxu1 %v3020_v0  ;;  %1200 = vmatprep.subr.mxu0 %v3020_v0  ;;  %v514_v54 = vld [vmem:[%s3166_s17 + $0x788] sm:$0xff] }
  0xb5   : > { %1367 = vmatpush1.msra.mxu1 %v657_v55  ;;  %966 = vmatprep.mubr.f32.mxu0 %v394_v56  ;;  %v516_v55 = vld [vmem:[%s3166_s17 + $0x798] sm:$0xff]  ;;  %v644_v56 = vld [vmem:[%s4855_s1 + $0x2b0] sm:$0xff] }
  0xb6   : > { %1126 = vmatprep.mubr.f32.mxu1 %v396_v57  ;;  %1201 = vmatpush1.msra.mxu0 %v628_v58  ;;  %v675_v57 = vld [vmem:[%s4855_s1 + $0x3a8] sm:$0xff] }
  0xb7   : > { %1368 = vmatprep.subr.mxu1 %v3020_v0  ;;  %967 = vmatmul.mubr.f32.gmra.mxu0 %v393_v59  ;;  %v513_v58 = vld [vmem:[%s3166_s17 + $0x780] sm:$0xff]  ;;  %v515_v59 = vld [vmem:[%s3166_s17 + $0x790] sm:$0xff] }
  0xb8   : > { %1127 = vmatmul.mubr.f32.gmra.mxu1 %v395_v60  ;;  %1202 = vmatprep.subr.mxu0 %v3020_v0  ;;  %v643_v60 = vld [vmem:[%s4855_s1 + $0x2a8] sm:$0xff] }
  0xb9   : > { %1369 = vmatpush1.msra.mxu1 %v656_v61  ;;  %1203 = vmatpush1.msra.mxu0 %v627_v62  ;;  %v674_v61 = vld [vmem:[%s4855_s1 + $0x3a0] sm:$0xff] }
  0xba   : > { %1204 = vmatprep.subr.mxu0 %v3020_v0  ;;  %1370 = vmatprep.subr.mxu1 %v3020_v0  ;;  %v529_v62 = vld [vmem:[%s3166_s17 + $0x800] sm:$0xff] }
  0xbb   : > { %971 = vmatprep.mubr.f32.mxu0 %v409_v63  ;;  %1131 = vmatprep.mubr.f32.mxu1 %v411_v1  ;;  %v531_v63 = vld [vmem:[%s3166_s17 + $0x810] sm:$0xff]  ;;  %v642_v1 = vld [vmem:[%s4855_s1 + $0x2a0] sm:$0xff] }
  0xbc   : > { %1205 = vmatpush1.msra.mxu0 %v626_v2  ;;  %1371 = vmatpush1.msra.mxu1 %v655_v3  ;;  %v528_v2 = vld [vmem:[%s3166_s17 + $0x7f8] sm:$0xff]  ;;  %v530_v3 = vld [vmem:[%s3166_s17 + $0x808] sm:$0xff] }
  0xbd   : > { %972 = vmatmul.mubr.f32.gmra.mxu0 %v408_v4  ;;  %1132 = vmatmul.mubr.f32.gmra.mxu1 %v410_v5  ;;  %v673_v4 = vld [vmem:[%s4855_s1 + $0x398] sm:$0xff] }
  0xbe   : > { %1206 = vmatprep.subr.mxu0 %v3020_v0  ;;  %1372 = vmatprep.subr.mxu1 %v3020_v0  ;;  %v641_v5 = vld [vmem:[%s4855_s1 + $0x298] sm:$0xff] }
  0xbf   : > { %1207 = vmatpush1.msra.mxu0 %v625_v6  ;;  %1373 = vmatpush1.msra.mxu1 %v654_v7  ;;  %v672_v6 = vld [vmem:[%s4855_s1 + $0x390] sm:$0xff]  ;;  %v544_v7 = vld [vmem:[%s3166_s17 + $0x878] sm:$0xff] }
  0xc0   : > { %1208 = vmatprep.subr.mxu0 %v3020_v0  ;;  %1374 = vmatprep.subr.mxu1 %v3020_v0 }
  0xc1   : > { %976 = vmatprep.mubr.f32.mxu0 %v424_v8  ;;  %1136 = vmatprep.mubr.f32.mxu1 %v426_v9  ;;  %v546_v8 = vld [vmem:[%s3166_s17 + $0x888] sm:$0xff] }
  0xc2   : > { %1209 = vmatpush1.msra.mxu0 %v624_v10  ;;  %1375 = vmatpush2.msra.mxu1 %v685_v11  ;;  %v640_v9 = vld [vmem:[%s4855_s1 + $0x290] sm:$0xff]  ;;  %v545_v11 = vld [vmem:[%s3166_s17 + $0x880] sm:$0xff] }
  0xc3   : > { %977 = vmatmul.mubr.f32.gmra.mxu0 %v423_v12  ;;  %1137 = vmatmul.mubr.f32.gmra.mxu1 %v425_v13  ;;  %v543_v10 = vld [vmem:[%s3166_s17 + $0x870] sm:$0xff]  ;;  %v639_v12 = vld [vmem:[%s4855_s1 + $0x288] sm:$0xff] }
  0xc4   : > { %1210 = vmatprep.subr.mxu0 %v3020_v0  ;;  %1376 = vmatprep.subr.mxu1 %v3020_v0  ;;  %v671_v13 = vld [vmem:[%s4855_s1 + $0x388] sm:$0xff] }
  0xc5   : > { %1211 = vmatpush1.msra.mxu0 %v623_v14  ;;  %1377 = vmatpush2.msra.mxu1 %v684_v15  ;;  %v638_v14 = vld [vmem:[%s4855_s1 + $0x280] sm:$0xff]  ;;  %v278_v15 = vld [vmem:[%s3166_s17 + $0x28] sm:$0xff] }
  0xc6   : > { %1212 = vmatprep.subr.mxu0 %v3020_v0  ;;  %981 = vmatprep.mubr.f32.mxu0 %v439_v16  ;;  %v670_v16 = vld [vmem:[%s4855_s1 + $0x380] sm:$0xff] }
  0xc7   : > { %1141 = vmatprep.mubr.f32.mxu1 %v441_v17  ;;  %1213 = vmatpush1.msra.mxu0 %v622_v18  ;;  %v280_v17 = vld [vmem:[%s3166_s17 + $0x38] sm:$0xff]  ;;  %v277_v18 = vld [vmem:[%s3166_s17 + $0x20] sm:$0xff] }
  0xc8   : > { %1378 = vmatprep.subr.mxu1 %v3020_v0  ;;  %982 = vmatmul.mubr.f32.gmra.mxu0 %v438_v19  ;;  %v279_v19 = vld [vmem:[%s3166_s17 + $0x30] sm:$0xff] }
  0xc9   : > { %1142 = vmatmul.mubr.f32.gmra.mxu1 %v440_v20  ;;  %1214 = vmatprep.subr.mxu0 %v3020_v0  ;;  %v293_v20 = vld [vmem:[%s3166_s17 + $0xa0] sm:$0xff] }
  0xca   : > { %1379 = vmatpush2.msra.mxu1 %v683_v21  ;;  %1215 = vmatpush2.msra.mxu0 %v653_v22  ;;  %v733_v21 = vld [vmem:[%s4855_s1 + $0x578] sm:$0xff] }
  0xcb   : > { %1216 = vmatprep.subr.mxu0 %v3020_v0  ;;  %1380 = vmatprep.subr.mxu1 %v3020_v0  ;;  %v295_v22 = vld [vmem:[%s3166_s17 + $0xb0] sm:$0xff] }
  0xcc   : > { %986 = vmatprep.mubr.f32.mxu0 %v454_v23  ;;  %1146 = vmatprep.mubr.f32.mxu1 %v456_v24  ;;  %v292_v23 = vld [vmem:[%s3166_s17 + $0x98] sm:$0xff]  ;;  %v294_v24 = vld [vmem:[%s3166_s17 + $0xa8] sm:$0xff] }
  0xcd   : > { %1217 = vmatpush2.msra.mxu0 %v652_v25  ;;  %1381 = vmatpush2.msra.mxu1 %v682_v26  ;;  %v732_v25 = vld [vmem:[%s4855_s1 + $0x570] sm:$0xff]  ;;  %v308_v26 = vld [vmem:[%s3166_s17 + $0x118] sm:$0xff] }
  0xce   : > { %987 = vmatmul.mubr.f32.gmra.mxu0 %v453_v27  ;;  %1147 = vmatmul.mubr.f32.gmra.mxu1 %v455_v28  ;;  %v310_v27 = vld [vmem:[%s3166_s17 + $0x128] sm:$0xff] }
  0xcf   : > { %1218 = vmatprep.subr.mxu0 %v3020_v0  ;;  %1382 = vmatprep.subr.mxu1 %v3020_v0  ;;  %v731_v28 = vld [vmem:[%s4855_s1 + $0x568] sm:$0xff] }
  0xd0   : > { %1219 = vmatpush2.msra.mxu0 %v651_v29  ;;  %1383 = vmatpush2.msra.mxu1 %v681_v30  ;;  %v701_v29 = vld [vmem:[%s4855_s1 + $0x478] sm:$0xff] }
  0xd1   : > { %1220 = vmatprep.subr.mxu0 %v3020_v0  ;;  %1384 = vmatprep.subr.mxu1 %v3020_v0  ;;  %v307_v30 = vld [vmem:[%s3166_s17 + $0x110] sm:$0xff] }
  0xd2   : > { %991 = vmatprep.mubr.f32.mxu0 %v469_v31  ;;  %1151 = vmatprep.mubr.f32.mxu1 %v471_v32  ;;  %v309_v31 = vld [vmem:[%s3166_s17 + $0x120] sm:$0xff]  ;;  %v323_v32 = vld [vmem:[%s3166_s17 + $0x190] sm:$0xff] }
  0xd3   : > { %1221 = vmatpush2.msra.mxu0 %v650_v33  ;;  %1385 = vmatpush2.msra.mxu1 %v680_v34  ;;  %v730_v33 = vld [vmem:[%s4855_s1 + $0x560] sm:$0xff] }
  0xd4   : > { %992 = vmatmul.mubr.f32.gmra.mxu0 %v468_v35  ;;  %1152 = vmatmul.mubr.f32.gmra.mxu1 %v470_v36  ;;  %v325_v34 = vld [vmem:[%s3166_s17 + $0x1a0] sm:$0xff]  ;;  %v729_v35 = vld [vmem:[%s4855_s1 + $0x558] sm:$0xff]  ;;  %v322_v36 = vld [vmem:[%s3166_s17 + $0x188] sm:$0xff] }
  0xd5   : > { %1222 = vmatprep.subr.mxu0 %v3020_v0  ;;  %1386 = vmatprep.subr.mxu1 %v3020_v0 }
  0xd6   : > { %1223 = vmatpush2.msra.mxu0 %v649_v37  ;;  %1387 = vmatpush2.msra.mxu1 %v679_v38  ;;  %v324_v37 = vld [vmem:[%s3166_s17 + $0x198] sm:$0xff]  ;;  %v728_v38 = vld [vmem:[%s4855_s1 + $0x550] sm:$0xff] }
  0xd7   : > { %1224 = vmatprep.subr.mxu0 %v3020_v0  ;;  %996 = vmatprep.mubr.f32.mxu0 %v484_v39  ;;  %v338_v39 = vld [vmem:[%s3166_s17 + $0x208] sm:$0xff] }
  0xd8   : > { %1156 = vmatprep.mubr.f32.mxu1 %v486_v40  ;;  %1225 = vmatpush2.msra.mxu0 %v648_v41  ;;  %v340_v40 = vld [vmem:[%s3166_s17 + $0x218] sm:$0xff]  ;;  %v700_v41 = vld [vmem:[%s4855_s1 + $0x470] sm:$0xff] }
  0xd9   : > { %1388 = vmatprep.subr.mxu1 %v3020_v0  ;;  %997 = vmatmul.mubr.f32.gmra.mxu0 %v483_v42  ;;  %v337_v42 = vld [vmem:[%s3166_s17 + $0x200] sm:$0xff] }
  0xda   : > { %1157 = vmatmul.mubr.f32.gmra.mxu1 %v485_v43  ;;  %1226 = vmatprep.subr.mxu0 %v3020_v0  ;;  %v339_v43 = vld [vmem:[%s3166_s17 + $0x210] sm:$0xff] }
  0xdb   : > { %1389 = vmatpush2.msra.mxu1 %v678_v44  ;;  %1227 = vmatpush2.msra.mxu0 %v647_v45  ;;  %v727_v44 = vld [vmem:[%s4855_s1 + $0x548] sm:$0xff] }
  0xdc   : > { %1390 = vmatprep.subr.mxu1 %v3020_v0  ;;  %1228 = vmatprep.subr.mxu0 %v3020_v0  ;;  %v699_v45 = vld [vmem:[%s4855_s1 + $0x468] sm:$0xff] }
  0xdd   : > { %1391 = vmatpush2.msra.mxu1 %v677_v46  ;;  %1001 = vmatprep.mubr.f32.mxu0 %v499_v47  ;;  %v726_v46 = vld [vmem:[%s4855_s1 + $0x540] sm:$0xff] }
  0xde   : > { %1161 = vmatprep.mubr.f32.mxu1 %v501_v48  ;;  %1229 = vmatpush2.msra.mxu0 %v646_v49  ;;  %v353_v47 = vld [vmem:[%s3166_s17 + $0x280] sm:$0xff]  ;;  %v355_v48 = vld [vmem:[%s3166_s17 + $0x290] sm:$0xff] }
  0xdf   : > { %1002 = vmatmul.mubr.f32.gmra.mxu0 %v498_v50  ;;  %1162 = vmatmul.mubr.f32.gmra.mxu1 %v500_v51  ;;  %v698_v49 = vld [vmem:[%s4855_s1 + $0x460] sm:$0xff]  ;;  %v354_v51 = vld [vmem:[%s3166_s17 + $0x288] sm:$0xff] }
  0xe0   : > { %1230 = vmatprep.subr.mxu0 %v3020_v0  ;;  %1392 = vmatprep.subr.mxu1 %v3020_v0  ;;  %v352_v50 = vld [vmem:[%s3166_s17 + $0x278] sm:$0xff] }
  0xe1   : > { %1231 = vmatpush2.msra.mxu0 %v645_v52  ;;  %1393 = vmatpush2.msra.mxu1 %v676_v53  ;;  %v725_v52 = vld [vmem:[%s4855_s1 + $0x538] sm:$0xff] }
  0xe2   : > { %1232 = vmatprep.subr.mxu0 %v3020_v0  ;;  %1394 = vmatprep.subr.mxu1 %v3020_v0  ;;  %v697_v53 = vld [vmem:[%s4855_s1 + $0x458] sm:$0xff] }
  0xe3   : > { %1006 = vmatprep.mubr.f32.mxu0 %v514_v54  ;;  %1166 = vmatprep.mubr.f32.mxu1 %v516_v55  ;;  %v368_v54 = vld [vmem:[%s3166_s17 + $0x2f8] sm:$0xff]  ;;  %v370_v55 = vld [vmem:[%s3166_s17 + $0x308] sm:$0xff] }
  0xe4   : > { %1233 = vmatpush2.msra.mxu0 %v644_v56  ;;  %1395 = vmatpush2.msra.mxu1 %v675_v57  ;;  %v696_v56 = vld [vmem:[%s4855_s1 + $0x450] sm:$0xff] }
  0xe5   : > { %1007 = vmatmul.mubr.f32.gmra.mxu0 %v513_v58  ;;  %1167 = vmatmul.mubr.f32.gmra.mxu1 %v515_v59  ;;  %v724_v57 = vld [vmem:[%s4855_s1 + $0x530] sm:$0xff]  ;;  %v369_v59 = vld [vmem:[%s3166_s17 + $0x300] sm:$0xff] }
  0xe6   : > { %1234 = vmatprep.subr.mxu0 %v3020_v0  ;;  %1396 = vmatprep.subr.mxu1 %v3020_v0  ;;  %v367_v58 = vld [vmem:[%s3166_s17 + $0x2f0] sm:$0xff] }
  0xe7   : > { %1235 = vmatpush2.msra.mxu0 %v643_v60  ;;  %1397 = vmatpush2.msra.mxu1 %v674_v61  ;;  %v695_v60 = vld [vmem:[%s4855_s1 + $0x448] sm:$0xff] }
  0xe8   : > { %1236 = vmatprep.subr.mxu0 %v3020_v0  ;;  %1011 = vmatprep.mubr.f32.mxu0 %v529_v62  ;;  %v723_v61 = vld [vmem:[%s4855_s1 + $0x528] sm:$0xff]  ;;  %v383_v62 = vld [vmem:[%s3166_s17 + $0x370] sm:$0xff] }
  0xe9   : > { %1171 = vmatprep.mubr.f32.mxu1 %v531_v63  ;;  %1237 = vmatpush2.msra.mxu0 %v642_v1  ;;  %v385_v63 = vld [vmem:[%s3166_s17 + $0x380] sm:$0xff] }
  0xea   : > { %1398 = vmatprep.subr.mxu1 %v3020_v0  ;;  %1012 = vmatmul.mubr.f32.gmra.mxu0 %v528_v2  ;;  %v694_v1 = vld [vmem:[%s4855_s1 + $0x440] sm:$0xff]  ;;  %v382_v2 = vld [vmem:[%s3166_s17 + $0x368] sm:$0xff] }
  0xeb   : > { %1172 = vmatmul.mubr.f32.gmra.mxu1 %v530_v3  ;;  %1238 = vmatprep.subr.mxu0 %v3020_v0  ;;  %v384_v3 = vld [vmem:[%s3166_s17 + $0x378] sm:$0xff] }
  0xec   : > { %1399 = vmatpush2.msra.mxu1 %v673_v4  ;;  %1239 = vmatpush2.msra.mxu0 %v641_v5  ;;  %v722_v4 = vld [vmem:[%s4855_s1 + $0x520] sm:$0xff]  ;;  %v693_v5 = vld [vmem:[%s4855_s1 + $0x438] sm:$0xff] }
  0xed   : > { %1400 = vmatprep.subr.mxu1 %v3020_v0  ;;  %1240 = vmatprep.subr.mxu0 %v3020_v0 }
  0xee   : > { %1401 = vmatpush2.msra.mxu1 %v672_v6  ;;  %1016 = vmatprep.mubr.f32.mxu0 %v544_v7  ;;  %v721_v6 = vld [vmem:[%s4855_s1 + $0x518] sm:$0xff]  ;;  %v398_v7 = vld [vmem:[%s3166_s17 + $0x3e8] sm:$0xff] }
  0xef   : > { %1176 = vmatprep.mubr.f32.mxu1 %v546_v8  ;;  %1241 = vmatpush2.msra.mxu0 %v640_v9  ;;  %v400_v8 = vld [vmem:[%s3166_s17 + $0x3f8] sm:$0xff]  ;;  %v692_v9 = vld [vmem:[%s4855_s1 + $0x430] sm:$0xff] }
  0xf0   : > { %1017 = vmatmul.mubr.f32.gmra.mxu0 %v543_v10  ;;  %1177 = vmatmul.mubr.f32.gmra.mxu1 %v545_v11  ;;  %v397_v10 = vld [vmem:[%s3166_s17 + $0x3e0] sm:$0xff]  ;;  %v399_v11 = vld [vmem:[%s3166_s17 + $0x3f0] sm:$0xff] }
  0xf1   : > { %1242 = vmatprep.subr.mxu0 %v3020_v0  ;;  %1402 = vmatprep.subr.mxu1 %v3020_v0 }
  0xf2   : > { %1243 = vmatpush2.msra.mxu0 %v639_v12  ;;  %1403 = vmatpush2.msra.mxu1 %v671_v13  ;;  %v720_v12 = vld [vmem:[%s4855_s1 + $0x510] sm:$0xff]  ;;  %v691_v13 = vld [vmem:[%s4855_s1 + $0x428] sm:$0xff] }
  0xf3   : > { %1244 = vmatprep.subr.mxu0 %v3020_v0  ;;  %1404 = vmatprep.subr.mxu1 %v3020_v0 }
  0xf4   : > { %1245 = vmatpush2.msra.mxu0 %v638_v14  ;;  %1246 = vmatprep.mubr.f32.mxu0 %v278_v15  ;;  %v413_v14 = vld [vmem:[%s3166_s17 + $0x460] sm:$0xff]  ;;  %v415_v15 = vld [vmem:[%s3166_s17 + $0x470] sm:$0xff] }
  0xf5   : > { %1405 = vmatpush2.msra.mxu1 %v670_v16  ;;  %1406 = vmatprep.mubr.f32.mxu1 %v280_v17  ;;  %v690_v16 = vld [vmem:[%s4855_s1 + $0x420] sm:$0xff]  ;;  %v719_v17 = vld [vmem:[%s4855_s1 + $0x508] sm:$0xff] }
  0xf6   : > { %1247 = vmatmul.mubr.f32.vlgmr.msra.gmra.mxu0 %v277_v18  ;;  %1407 = vmatmul.mubr.f32.vlgmr.msra.gmra.mxu1 %v279_v19  ;;  %v412_v18 = vld [vmem:[%s3166_s17 + $0x458] sm:$0xff]  ;;  %v414_v19 = vld [vmem:[%s3166_s17 + $0x468] sm:$0xff] }
  0xf7   : > { %1662 = vmatprep.subr.mxu1 %v3020_v0  ;;  %1251 = vmatprep.mubr.f32.mxu0 %v293_v20  ;;  %v689_v20 = vld [vmem:[%s4855_s1 + $0x418] sm:$0xff] }
  0xf8   : > { %1663 = vmatpush1.msra.mxu1 %v733_v21  ;;  %1411 = vmatprep.mubr.f32.mxu1 %v295_v22  ;;  %v718_v21 = vld [vmem:[%s4855_s1 + $0x500] sm:$0xff] }
  0xf9   : > { %1664 = vmatprep.subr.mxu1 %v3020_v0  ;;  %1502 = vmatprep.subr.mxu0 %v3020_v0  ;;  %v428_v22 = vld [vmem:[%s3166_s17 + $0x4d8] sm:$0xff] }
  0xfa   : > { %1252 = vmatmul.mubr.f32.gmra.mxu0 %v292_v23  ;;  %1412 = vmatmul.mubr.f32.gmra.mxu1 %v294_v24  ;;  %v430_v23 = vld [vmem:[%s3166_s17 + $0x4e8] sm:$0xff] }
  0xfb   : > { %1665 = vmatpush1.msra.mxu1 %v732_v25  ;;  %1256 = vmatprep.mubr.f32.mxu0 %v308_v26  ;;  %v688_v24 = vld [vmem:[%s4855_s1 + $0x410] sm:$0xff]  ;;  %v749_v25 = vld [vmem:[%s4855_s1 + $0x5f8] sm:$0xff] }
  0xfc   : > { %1666 = vmatprep.subr.mxu1 %v3020_v0  ;;  %1416 = vmatprep.mubr.f32.mxu1 %v310_v27  ;;  %v427_v26 = vld [vmem:[%s3166_s17 + $0x4d0] sm:$0xff]  ;;  %v429_v27 = vld [vmem:[%s3166_s17 + $0x4e0] sm:$0xff] }
  0xfd   : > { %1667 = vmatpush1.msra.mxu1 %v731_v28  ;;  %1503 = vmatpush1.msra.mxu0 %v701_v29  ;;  %v687_v28 = vld [vmem:[%s4855_s1 + $0x408] sm:$0xff]  ;;  %v748_v29 = vld [vmem:[%s4855_s1 + $0x5f0] sm:$0xff] }
  0xfe   : > { %1257 = vmatmul.mubr.f32.gmra.mxu0 %v307_v30  ;;  %1417 = vmatmul.mubr.f32.gmra.mxu1 %v309_v31  ;;  %v443_v30 = vld [vmem:[%s3166_s17 + $0x550] sm:$0xff]  ;;  %v445_v31 = vld [vmem:[%s3166_s17 + $0x560] sm:$0xff] }
  0xff   : > { %1668 = vmatprep.subr.mxu1 %v3020_v0  ;;  %1261 = vmatprep.mubr.f32.mxu0 %v323_v32  ;;  %v686_v32 = vld [vmem:[%s4855_s1 + $0x400] sm:$0xff] }
 0x100   : > { %1669 = vmatpush1.msra.mxu1 %v730_v33  ;;  %1421 = vmatprep.mubr.f32.mxu1 %v325_v34  ;;  %v442_v33 = vld [vmem:[%s3166_s17 + $0x548] sm:$0xff]  ;;  %v444_v34 = vld [vmem:[%s3166_s17 + $0x558] sm:$0xff] }
 0x101   : > { %1670 = vmatprep.subr.mxu1 %v3020_v0  ;;  %1504 = vmatprep.subr.mxu0 %v3020_v0 }
 0x102   : > { %1671 = vmatpush1.msra.mxu1 %v729_v35  ;;  %1262 = vmatmul.mubr.f32.gmra.mxu0 %v322_v36  ;;  %v747_v35 = vld [vmem:[%s4855_s1 + $0x5e8] sm:$0xff]  ;;  %v717_v36 = vld [vmem:[%s4855_s1 + $0x4f8] sm:$0xff] }
 0x103   : > { %1422 = vmatmul.mubr.f32.gmra.mxu1 %v324_v37  ;;  %1672 = vmatprep.subr.mxu1 %v3020_v0  ;;  %v458_v37 = vld [vmem:[%s3166_s17 + $0x5c8] sm:$0xff] }
 0x104   : > { %1673 = vmatpush1.msra.mxu1 %v728_v38  ;;  %1266 = vmatprep.mubr.f32.mxu0 %v338_v39  ;;  %v460_v38 = vld [vmem:[%s3166_s17 + $0x5d8] sm:$0xff]  ;;  %v716_v39 = vld [vmem:[%s4855_s1 + $0x4f0] sm:$0xff] }
 0x105   : > { %1426 = vmatprep.mubr.f32.mxu1 %v340_v40  ;;  %1505 = vmatpush1.msra.mxu0 %v700_v41  ;;  %v746_v40 = vld [vmem:[%s4855_s1 + $0x5e0] sm:$0xff] }
 0x106   : > { %1674 = vmatprep.subr.mxu1 %v3020_v0  ;;  %1267 = vmatmul.mubr.f32.gmra.mxu0 %v337_v42  ;;  %v457_v41 = vld [vmem:[%s3166_s17 + $0x5c0] sm:$0xff]  ;;  %v459_v42 = vld [vmem:[%s3166_s17 + $0x5d0] sm:$0xff] }
 0x107   : > { %1427 = vmatmul.mubr.f32.gmra.mxu1 %v339_v43  ;;  %1506 = vmatprep.subr.mxu0 %v3020_v0  ;;  %v715_v43 = vld [vmem:[%s4855_s1 + $0x4e8] sm:$0xff] }
 0x108   : > { %1675 = vmatpush1.msra.mxu1 %v727_v44  ;;  %1507 = vmatpush1.msra.mxu0 %v699_v45  ;;  %v745_v44 = vld [vmem:[%s4855_s1 + $0x5d8] sm:$0xff]  ;;  %v473_v45 = vld [vmem:[%s3166_s17 + $0x640] sm:$0xff] }
 0x109   : > { %1676 = vmatprep.subr.mxu1 %v3020_v0  ;;  %1508 = vmatprep.subr.mxu0 %v3020_v0 }
 0x10a   : > { %1677 = vmatpush1.msra.mxu1 %v726_v46  ;;  %1271 = vmatprep.mubr.f32.mxu0 %v353_v47  ;;  %v475_v46 = vld [vmem:[%s3166_s17 + $0x650] sm:$0xff]  ;;  %v714_v47 = vld [vmem:[%s4855_s1 + $0x4e0] sm:$0xff] }
 0x10b   : > { %1431 = vmatprep.mubr.f32.mxu1 %v355_v48  ;;  %1509 = vmatpush1.msra.mxu0 %v698_v49  ;;  %v744_v48 = vld [vmem:[%s4855_s1 + $0x5d0] sm:$0xff]  ;;  %v472_v49 = vld [vmem:[%s3166_s17 + $0x638] sm:$0xff] }
 0x10c   : > { %1678 = vmatprep.subr.mxu1 %v3020_v0  ;;  %1272 = vmatmul.mubr.f32.gmra.mxu0 %v352_v50  ;;  %v474_v50 = vld [vmem:[%s3166_s17 + $0x648] sm:$0xff] }
 0x10d   : > { %1432 = vmatmul.mubr.f32.gmra.mxu1 %v354_v51  ;;  %1510 = vmatprep.subr.mxu0 %v3020_v0  ;;  %v713_v51 = vld [vmem:[%s4855_s1 + $0x4d8] sm:$0xff] }
 0x10e   : > { %1679 = vmatpush1.msra.mxu1 %v725_v52  ;;  %1511 = vmatpush1.msra.mxu0 %v697_v53  ;;  %v743_v52 = vld [vmem:[%s4855_s1 + $0x5c8] sm:$0xff]  ;;  %v488_v53 = vld [vmem:[%s3166_s17 + $0x6b8] sm:$0xff] }
 0x10f   : > { %1512 = vmatprep.subr.mxu0 %v3020_v0  ;;  %1680 = vmatprep.subr.mxu1 %v3020_v0 }
 0x110   : > { %1276 = vmatprep.mubr.f32.mxu0 %v368_v54  ;;  %1436 = vmatprep.mubr.f32.mxu1 %v370_v55  ;;  %v490_v54 = vld [vmem:[%s3166_s17 + $0x6c8] sm:$0xff] }
 0x111   : > { %1513 = vmatpush1.msra.mxu0 %v696_v56  ;;  %1681 = vmatpush1.msra.mxu1 %v724_v57  ;;  %v712_v55 = vld [vmem:[%s4855_s1 + $0x4d0] sm:$0xff]  ;;  %v489_v57 = vld [vmem:[%s3166_s17 + $0x6c0] sm:$0xff] }
 0x112   : > { %1277 = vmatmul.mubr.f32.gmra.mxu0 %v367_v58  ;;  %1437 = vmatmul.mubr.f32.gmra.mxu1 %v369_v59  ;;  %v487_v56 = vld [vmem:[%s3166_s17 + $0x6b0] sm:$0xff]  ;;  %v742_v58 = vld [vmem:[%s4855_s1 + $0x5c0] sm:$0xff]  ;;  %v711_v59 = vld [vmem:[%s4855_s1 + $0x4c8] sm:$0xff] }
 0x113   : > { %1514 = vmatprep.subr.mxu0 %v3020_v0  ;;  %1682 = vmatprep.subr.mxu1 %v3020_v0 }
 0x114   : > { %1515 = vmatpush1.msra.mxu0 %v695_v60  ;;  %1683 = vmatpush1.msra.mxu1 %v723_v61  ;;  %v741_v60 = vld [vmem:[%s4855_s1 + $0x5b8] sm:$0xff] }
 0x115   : > { %1516 = vmatprep.subr.mxu0 %v3020_v0  ;;  %1281 = vmatprep.mubr.f32.mxu0 %v383_v62  ;;  %v503_v61 = vld [vmem:[%s3166_s17 + $0x730] sm:$0xff]  ;;  %v505_v62 = vld [vmem:[%s3166_s17 + $0x740] sm:$0xff] }
 0x116   : > { %1441 = vmatprep.mubr.f32.mxu1 %v385_v63  ;;  %1517 = vmatpush1.msra.mxu0 %v694_v1  ;;  %v710_v63 = vld [vmem:[%s4855_s1 + $0x4c0] sm:$0xff]  ;;  %v502_v1 = vld [vmem:[%s3166_s17 + $0x728] sm:$0xff] }
 0x117   : > { %1684 = vmatprep.subr.mxu1 %v3020_v0  ;;  %1282 = vmatmul.mubr.f32.gmra.mxu0 %v382_v2  ;;  %v504_v2 = vld [vmem:[%s3166_s17 + $0x738] sm:$0xff] }
 0x118   : > { %1442 = vmatmul.mubr.f32.gmra.mxu1 %v384_v3  ;;  %1518 = vmatprep.subr.mxu0 %v3020_v0  ;;  %v709_v3 = vld [vmem:[%s4855_s1 + $0x4b8] sm:$0xff] }
 0x119   : > { %1685 = vmatpush1.msra.mxu1 %v722_v4  ;;  %1519 = vmatpush1.msra.mxu0 %v693_v5  ;;  %v740_v4 = vld [vmem:[%s4855_s1 + $0x5b0] sm:$0xff] }
 0x11a   : > { %1686 = vmatprep.subr.mxu1 %v3020_v0  ;;  %1520 = vmatprep.subr.mxu0 %v3020_v0  ;;  %v518_v5 = vld [vmem:[%s3166_s17 + $0x7a8] sm:$0xff] }
 0x11b   : > { %1687 = vmatpush1.msra.mxu1 %v721_v6  ;;  %1286 = vmatprep.mubr.f32.mxu0 %v398_v7  ;;  %v520_v6 = vld [vmem:[%s3166_s17 + $0x7b8] sm:$0xff]  ;;  %v708_v7 = vld [vmem:[%s4855_s1 + $0x4b0] sm:$0xff] }
 0x11c   : > { %1446 = vmatprep.mubr.f32.mxu1 %v400_v8  ;;  %1521 = vmatpush1.msra.mxu0 %v692_v9  ;;  %v739_v8 = vld [vmem:[%s4855_s1 + $0x5a8] sm:$0xff] }
 0x11d   : > { %1688 = vmatprep.subr.mxu1 %v3020_v0  ;;  %1287 = vmatmul.mubr.f32.gmra.mxu0 %v397_v10  ;;  %v517_v9 = vld [vmem:[%s3166_s17 + $0x7a0] sm:$0xff]  ;;  %v519_v10 = vld [vmem:[%s3166_s17 + $0x7b0] sm:$0xff] }
 0x11e   : > { %1447 = vmatmul.mubr.f32.gmra.mxu1 %v399_v11  ;;  %1522 = vmatprep.subr.mxu0 %v3020_v0  ;;  %v707_v11 = vld [vmem:[%s4855_s1 + $0x4a8] sm:$0xff] }
 0x11f   : > { %1689 = vmatpush1.msra.mxu1 %v720_v12  ;;  %1523 = vmatpush1.msra.mxu0 %v691_v13  ;;  %v738_v12 = vld [vmem:[%s4855_s1 + $0x5a0] sm:$0xff] }
 0x120   : > { %1524 = vmatprep.subr.mxu0 %v3020_v0  ;;  %1690 = vmatprep.subr.mxu1 %v3020_v0  ;;  %v533_v13 = vld [vmem:[%s3166_s17 + $0x820] sm:$0xff] }
 0x121   : > { %1291 = vmatprep.mubr.f32.mxu0 %v413_v14  ;;  %1451 = vmatprep.mubr.f32.mxu1 %v415_v15  ;;  %v535_v14 = vld [vmem:[%s3166_s17 + $0x830] sm:$0xff]  ;;  %v706_v15 = vld [vmem:[%s4855_s1 + $0x4a0] sm:$0xff] }
 0x122   : > { %1525 = vmatpush1.msra.mxu0 %v690_v16  ;;  %1691 = vmatpush1.msra.mxu1 %v719_v17  ;;  %v532_v16 = vld [vmem:[%s3166_s17 + $0x818] sm:$0xff]  ;;  %v534_v17 = vld [vmem:[%s3166_s17 + $0x828] sm:$0xff] }
 0x123   : > { %1292 = vmatmul.mubr.f32.gmra.mxu0 %v412_v18  ;;  %1452 = vmatmul.mubr.f32.gmra.mxu1 %v414_v19  ;;  %v4060_v18 = vld [vmem:[#allocation4] ss:$0 sm:$0xff]  ;;  %v737_v19 = vld [vmem:[%s4855_s1 + $0x598] sm:$0xff] }
 0x124   : > { %1526 = vmatprep.subr.mxu0 %v3020_v0  ;;  %1692 = vmatprep.subr.mxu1 %v3020_v0 }
 0x125   : > { %1527 = vmatpush1.msra.mxu0 %v689_v20  ;;  %1693 = vmatpush1.msra.mxu1 %v718_v21  ;;  %v705_v20 = vld [vmem:[%s4855_s1 + $0x498] sm:$0xff] }
 0x126   : > { %1528 = vmatprep.subr.mxu0 %v3020_v0  ;;  %1694 = vmatprep.subr.mxu1 %v3020_v0 }
 0x127   : > { %1296 = vmatprep.mubr.f32.mxu0 %v428_v22  ;;  %1456 = vmatprep.mubr.f32.mxu1 %v430_v23  ;;  %v736_v23 = vld [vmem:[%s4855_s1 + $0x590] sm:$0xff] }
 0x128   : > { %1529 = vmatpush1.msra.mxu0 %v688_v24  ;;  %1695 = vmatpush2.msra.mxu1 %v749_v25  ;;  %v548_v24 = vld [vmem:[%s3166_s17 + $0x898] sm:$0xff] }
 0x129   : > { %1297 = vmatmul.mubr.f32.gmra.mxu0 %v427_v26  ;;  %1457 = vmatmul.mubr.f32.gmra.mxu1 %v429_v27  ;;  %v550_v26 = vld [vmem:[%s3166_s17 + $0x8a8] sm:$0xff] }
 0x12a   : > { %1530 = vmatprep.subr.mxu0 %v3020_v0  ;;  %1696 = vmatprep.subr.mxu1 %v3020_v0  ;;  %v704_v27 = vld [vmem:[%s4855_s1 + $0x490] sm:$0xff] }
 0x12b   : > { %1531 = vmatpush1.msra.mxu0 %v687_v28  ;;  %1697 = vmatpush2.msra.mxu1 %v748_v29 }
 0x12c   : > { %1532 = vmatprep.subr.mxu0 %v3020_v0  ;;  %1301 = vmatprep.mubr.f32.mxu0 %v443_v30  ;;  %v547_v30 = vld [vmem:[%s3166_s17 + $0x890] sm:$0xff] }
 0x12d   : > { %1461 = vmatprep.mubr.f32.mxu1 %v445_v31  ;;  %1533 = vmatpush1.msra.mxu0 %v686_v32  ;;  %v549_v31 = vld [vmem:[%s3166_s17 + $0x8a0] sm:$0xff] }
 0x12e   : > { %1698 = vmatprep.subr.mxu1 %v3020_v0  ;;  %1302 = vmatmul.mubr.f32.gmra.mxu0 %v442_v33 }
 0x12f   : > { %1462 = vmatmul.mubr.f32.gmra.mxu1 %v444_v34  ;;  %1534 = vmatprep.subr.mxu0 %v3020_v0 }
 0x130   : > { %1699 = vmatpush2.msra.mxu1 %v747_v35  ;;  %1535 = vmatpush2.msra.mxu0 %v717_v36  ;;  %v703_v35 = vld [vmem:[%s4855_s1 + $0x488] sm:$0xff] }
 0x131   : > { %1536 = vmatprep.subr.mxu0 %v3020_v0  ;;  %1700 = vmatprep.subr.mxu1 %v3020_v0  ;;  %v735_v36 = vld [vmem:[%s4855_s1 + $0x588] sm:$0xff] }
 0x132   : > { %1306 = vmatprep.mubr.f32.mxu0 %v458_v37  ;;  %1466 = vmatprep.mubr.f32.mxu1 %v460_v38 }
 0x133   : > { %1537 = vmatpush2.msra.mxu0 %v716_v39  ;;  %1701 = vmatpush2.msra.mxu1 %v746_v40  ;;  %v702_v40 = vld [vmem:[%s4855_s1 + $0x480] sm:$0xff] }
 0x134   : > { %1307 = vmatmul.mubr.f32.gmra.mxu0 %v457_v41  ;;  %1467 = vmatmul.mubr.f32.gmra.mxu1 %v459_v42  ;;  %v282_v41 = vld [vmem:[%s3166_s17 + $0x48] sm:$0xff] }
 0x135   : > { %1538 = vmatprep.subr.mxu0 %v3020_v0  ;;  %1702 = vmatprep.subr.mxu1 %v3020_v0 }
 0x136   : > { %1539 = vmatpush2.msra.mxu0 %v715_v43  ;;  %1703 = vmatpush2.msra.mxu1 %v745_v44  ;;  %v734_v43 = vld [vmem:[%s4855_s1 + $0x580] sm:$0xff] }
 0x137   : > { %1540 = vmatprep.subr.mxu0 %v3020_v0  ;;  %1704 = vmatprep.subr.mxu1 %v3020_v0  ;;  %v284_v44 = vld [vmem:[%s3166_s17 + $0x58] sm:$0xff] }
 0x138   : > { %1311 = vmatprep.mubr.f32.mxu0 %v473_v45  ;;  %1471 = vmatprep.mubr.f32.mxu1 %v475_v46 }
 0x139   : > { %1541 = vmatpush2.msra.mxu0 %v714_v47  ;;  %1705 = vmatpush2.msra.mxu1 %v744_v48  ;;  %v281_v47 = vld [vmem:[%s3166_s17 + $0x40] sm:$0xff]  ;;  %v283_v48 = vld [vmem:[%s3166_s17 + $0x50] sm:$0xff] }
 0x13a   : > { %1312 = vmatmul.mubr.f32.gmra.mxu0 %v472_v49  ;;  %1472 = vmatmul.mubr.f32.gmra.mxu1 %v474_v50  ;;  %v297_v50 = vld [vmem:[%s3166_s17 + $0xc0] sm:$0xff] }
 0x13b   : > { %1542 = vmatprep.subr.mxu0 %v3020_v0  ;;  %1706 = vmatprep.subr.mxu1 %v3020_v0 }
 0x13c   : > { %1543 = vmatpush2.msra.mxu0 %v713_v51  ;;  %1707 = vmatpush2.msra.mxu1 %v743_v52 }
 0x13d   : > { %1544 = vmatprep.subr.mxu0 %v3020_v0  ;;  %1316 = vmatprep.mubr.f32.mxu0 %v488_v53  ;;  %v765_v53 = vld [vmem:[%s4855_s1 + $0x678] sm:$0xff] }
 0x13e   : > { %1476 = vmatprep.mubr.f32.mxu1 %v490_v54  ;;  %1545 = vmatpush2.msra.mxu0 %v712_v55  ;;  %v299_v54 = vld [vmem:[%s3166_s17 + $0xd0] sm:$0xff] }
 0x13f   : > { %1708 = vmatprep.subr.mxu1 %v3020_v0  ;;  %1317 = vmatmul.mubr.f32.gmra.mxu0 %v487_v56 }
 0x140   : > { %1477 = vmatmul.mubr.f32.gmra.mxu1 %v489_v57  ;;  %1546 = vmatprep.subr.mxu0 %v3020_v0  ;;  %v296_v57 = vld [vmem:[%s3166_s17 + $0xb8] sm:$0xff] }
 0x141   : > { %1709 = vmatpush2.msra.mxu1 %v742_v58  ;;  %1547 = vmatpush2.msra.mxu0 %v711_v59  ;;  %v298_v58 = vld [vmem:[%s3166_s17 + $0xc8] sm:$0xff] }
 0x142   : > { %1710 = vmatprep.subr.mxu1 %v3020_v0  ;;  %1548 = vmatprep.subr.mxu0 %v3020_v0 }
 0x143   : > { %1711 = vmatpush2.msra.mxu1 %v741_v60  ;;  %1321 = vmatprep.mubr.f32.mxu0 %v503_v61  ;;  %v764_v61 = vld [vmem:[%s4855_s1 + $0x670] sm:$0xff] }
 0x144   : > { %1481 = vmatprep.mubr.f32.mxu1 %v505_v62  ;;  %1549 = vmatpush2.msra.mxu0 %v710_v63  ;;  %v312_v62 = vld [vmem:[%s3166_s17 + $0x138] sm:$0xff] }
 0x145   : > { %1322 = vmatmul.mubr.f32.gmra.mxu0 %v502_v1  ;;  %1482 = vmatmul.mubr.f32.gmra.mxu1 %v504_v2  ;;  %v314_v1 = vld [vmem:[%s3166_s17 + $0x148] sm:$0xff] }
 0x146   : > { %1550 = vmatprep.subr.mxu0 %v3020_v0  ;;  %1712 = vmatprep.subr.mxu1 %v3020_v0 }
 0x147   : > { %1551 = vmatpush2.msra.mxu0 %v709_v3  ;;  %1713 = vmatpush2.msra.mxu1 %v740_v4  ;;  %v763_v4 = vld [vmem:[%s4855_s1 + $0x668] sm:$0xff] }
 0x148   : > { %1552 = vmatprep.subr.mxu0 %v3020_v0  ;;  %1714 = vmatprep.subr.mxu1 %v3020_v0 }
 0x149   : > { %1326 = vmatprep.mubr.f32.mxu0 %v518_v5  ;;  %1486 = vmatprep.mubr.f32.mxu1 %v520_v6  ;;  %v311_v6 = vld [vmem:[%s3166_s17 + $0x130] sm:$0xff] }
 0x14a   : > { %1553 = vmatpush2.msra.mxu0 %v708_v7  ;;  %1715 = vmatpush2.msra.mxu1 %v739_v8  ;;  %v313_v7 = vld [vmem:[%s3166_s17 + $0x140] sm:$0xff] }
 0x14b   : > { %1327 = vmatmul.mubr.f32.gmra.mxu0 %v517_v9  ;;  %1487 = vmatmul.mubr.f32.gmra.mxu1 %v519_v10  ;;  %v327_v10 = vld [vmem:[%s3166_s17 + $0x1b0] sm:$0xff] }
 0x14c   : > { %1554 = vmatprep.subr.mxu0 %v3020_v0  ;;  %1716 = vmatprep.subr.mxu1 %v3020_v0 }
 0x14d   : > { %1555 = vmatpush2.msra.mxu0 %v707_v11  ;;  %1717 = vmatpush2.msra.mxu1 %v738_v12  ;;  %v762_v12 = vld [vmem:[%s4855_s1 + $0x660] sm:$0xff] }
 0x14e   : > { %1556 = vmatprep.subr.mxu0 %v3020_v0  ;;  %1331 = vmatprep.mubr.f32.mxu0 %v533_v13  ;;  %v329_v13 = vld [vmem:[%s3166_s17 + $0x1c0] sm:$0xff] }
 0x14f   : > { %1491 = vmatprep.mubr.f32.mxu1 %v535_v14  ;;  %1557 = vmatpush2.msra.mxu0 %v706_v15 }
 0x150   : > { %1718 = vmatprep.subr.mxu1 %v3020_v0  ;;  %1332 = vmatmul.mubr.f32.gmra.mxu0 %v532_v16  ;;  %v928_v21 = vpop.f32.mrf.mxu0  ;;  %v1088_v22 = vpop.f32.mrf.mxu1  ;;  %v761_v16 = vld [vmem:[%s4855_s1 + $0x658] sm:$0xff] }
 0x151   : > { %1492 = vmatmul.mubr.f32.gmra.mxu1 %v534_v17  ;;  %1558 = vmatprep.subr.mxu0 %v3020_v0  ;;  %v929_v25 = vadd.f32 %v4060_v18, %v928_v21  ;;  %v326_v17 = vld [vmem:[%s3166_s17 + $0x1a8] sm:$0xff] }
 0x152   : > { %1719 = vmatpush2.msra.mxu1 %v737_v19  ;;  %1559 = vmatpush2.msra.mxu0 %v705_v20  ;;  %v930_v28 = vpop.f32.mrf.mxu0  ;;  %v1090_v29 = vpop.f32.mrf.mxu1  ;;  %v328_v19 = vld [vmem:[%s3166_s17 + $0x1b8] sm:$0xff]  ;;  %v4153_v21 = vld [vmem:[%s4855_s1 + $0x650] sm:$0xff] }
 0x153   : > { %1720 = vmatprep.subr.mxu1 %v3020_v0  ;;  %1560 = vmatprep.subr.mxu0 %v3020_v0  ;;  %v4083_v32 = vadd.f32 %v1088_v22, %v929_v25  ;;  %v342_v22 = vld [vmem:[%s3166_s17 + $0x228] sm:$0xff]  ;;  %v344_v25 = vld [vmem:[%s3166_s17 + $0x238] sm:$0xff] }
 0x154   : > { %1721 = vmatpush2.msra.mxu1 %v736_v23  ;;  %1336 = vmatprep.mubr.f32.mxu0 %v548_v24  ;;  %v933_v33 = vpop.f32.mrf.mxu0  ;;  %v1093_v34 = vpop.f32.mrf.mxu1 }
 0x155   : > { %1496 = vmatprep.mubr.f32.mxu1 %v550_v26  ;;  %1561 = vmatpush2.msra.mxu0 %v704_v27  ;;  %v934_v37 = vadd.f32 %v4060_v18, %v933_v33  ;;  %v341_v27 = vld [vmem:[%s3166_s17 + $0x220] sm:$0xff] }
 0x156   : > { %1337 = vmatmul.mubr.f32.gmra.mxu0 %v547_v30  ;;  %1497 = vmatmul.mubr.f32.gmra.mxu1 %v549_v31  ;;  %v935_v38 = vpop.f32.mrf.mxu0  ;;  %v1095_v39 = vpop.f32.mrf.mxu1  ;;  %v343_v30 = vld [vmem:[%s3166_s17 + $0x230] sm:$0xff]  ;;  %v759_v31 = vld [vmem:[%s4855_s1 + $0x648] sm:$0xff] }
 0x157   : > { %1562 = vmatprep.subr.mxu0 %v3020_v0  ;;  %1722 = vmatprep.subr.mxu1 %v3020_v0  ;;  %v4098_v42 = vadd.f32 %v1093_v34, %v934_v37  ;;  %v359_v38 = vld [vmem:[%s3166_s17 + $0x2b0] sm:$0xff] }
 0x158   : > { %1563 = vmatpush2.msra.mxu0 %v703_v35  ;;  %1723 = vmatpush2.msra.mxu1 %v735_v36  ;;  %v938_v45 = vpop.f32.mrf.mxu0  ;;  %v1098_v46 = vpop.f32.mrf.mxu1  ;;  %v758_v35 = vld [vmem:[%s4855_s1 + $0x640] sm:$0xff] }
 0x159   : > { %1564 = vmatprep.subr.mxu0 %v3020_v0  ;;  %1724 = vmatprep.subr.mxu1 %v3020_v0  ;;  %v939_v49 = vadd.f32 %v4060_v18, %v938_v45  ;;  %v357_v36 = vld [vmem:[%s3166_s17 + $0x2a0] sm:$0xff]  ;;  %v757_v45 = vld [vmem:[%s4855_s1 + $0x638] sm:$0xff] }
 0x15a   : > { %1565 = vmatpush2.msra.mxu0 %v702_v40  ;;  %1566 = vmatprep.mubr.f32.mxu0 %v282_v41  ;;  %v940_v51 = vpop.f32.mrf.mxu0  ;;  %v1100_v52 = vpop.f32.mrf.mxu1  ;;  %v356_v41 = vld [vmem:[%s3166_s17 + $0x298] sm:$0xff] }
 0x15b   : > { %1725 = vmatpush2.msra.mxu1 %v734_v43  ;;  %1726 = vmatprep.mubr.f32.mxu1 %v284_v44  ;;  %v4114_v55 = vadd.f32 %v1098_v46, %v939_v49  ;;  %v358_v44 = vld [vmem:[%s3166_s17 + $0x2a8] sm:$0xff]  ;;  %v372_v49 = vld [vmem:[%s3166_s17 + $0x318] sm:$0xff] }
 0x15c   : > { %1567 = vmatmul.mubr.f32.vlgmr.msra.gmra.mxu0 %v281_v47  ;;  %1727 = vmatmul.mubr.f32.vlgmr.msra.gmra.mxu1 %v283_v48  ;;  %v943_v56 = vpop.f32.mrf.mxu0  ;;  %v756_v52 = vld [vmem:[%s4855_s1 + $0x630] sm:$0xff] }
 0x15d   : > { %2763 = vmatprep.subr.mxu1 %v3020_v0  ;;  %1571 = vmatprep.mubr.f32.mxu0 %v297_v50  ;;  %v944_v59 = vadd.f32 %v4060_v18, %v943_v56  ;;  %v1103_v60 = vpop.f32.mrf.mxu1  ;;  %v374_v50 = vld [vmem:[%s3166_s17 + $0x328] sm:$0xff]  ;;  %v371_v56 = vld [vmem:[%s3166_s17 + $0x310] sm:$0xff] }
 0x15e   : > { %2795 = vmatpush1.msra.mxu1 %v765_v53  ;;  %1731 = vmatprep.mubr.f32.mxu1 %v299_v54  ;;  %v945_v63 = vpop.f32.mrf.mxu0 }
 0x15f   : > { %2764 = vmatprep.subr.mxu1 %v3020_v0  ;;  %1822 = vmatprep.subr.mxu0 %v3020_v0  ;;  %v4127_v2 = vadd.f32 %v1103_v60, %v944_v59  ;;  %v1105_v3 = vpop.f32.mrf.mxu1  ;;  %v387_v60 = vld [vmem:[%s3166_s17 + $0x390] sm:$0xff]  ;;  %v389_v63 = vld [vmem:[%s3166_s17 + $0x3a0] sm:$0xff] }
 0x160   : > { %1572 = vmatmul.mubr.f32.gmra.mxu0 %v296_v57  ;;  %1732 = vmatmul.mubr.f32.gmra.mxu1 %v298_v58  ;;  %v948_v5 = vpop.f32.mrf.mxu0  ;;  %v373_v57 = vld [vmem:[%s3166_s17 + $0x320] sm:$0xff]  ;;  %v386_v3 = vld [vmem:[%s3166_s17 + $0x388] sm:$0xff] }
 0x161   : > { %2796 = vmatpush1.msra.mxu1 %v764_v61  ;;  %1576 = vmatprep.mubr.f32.mxu0 %v312_v62  ;;  %v949_v8 = vadd.f32 %v4060_v18, %v948_v5  ;;  %v1108_v9 = vpop.f32.mrf.mxu1  ;;  %v755_v58 = vld [vmem:[%s4855_s1 + $0x628] sm:$0xff] }
 0x162   : > { %2765 = vmatprep.subr.mxu1 %v3020_v0  ;;  %1736 = vmatprep.mubr.f32.mxu1 %v314_v1  ;;  %v950_v11 = vpop.f32.mrf.mxu0 }
 0x163   : > { %2797 = vmatpush1.msra.mxu1 %v763_v4  ;;  %1823 = vmatpush1.msra.mxu0 %v765_v53  ;;  %v4141_v14 = vadd.f32 %v1108_v9, %v949_v8  ;;  %v1110_v15 = vpop.f32.mrf.mxu1  ;;  %v402_v11 = vld [vmem:[%s3166_s17 + $0x408] sm:$0xff] }
 0x164   : > { %1577 = vmatmul.mubr.f32.gmra.mxu0 %v311_v6  ;;  %1737 = vmatmul.mubr.f32.gmra.mxu1 %v313_v7  ;;  %v388_v6 = vld [vmem:[%s3166_s17 + $0x398] sm:$0xff] }
 0x165   : > { %2766 = vmatprep.subr.mxu1 %v3020_v0  ;;  %1581 = vmatprep.mubr.f32.mxu0 %v327_v10  ;;  %v754_v7 = vld [vmem:[%s4855_s1 + $0x620] sm:$0xff]  ;;  %v753_v10 = vld [vmem:[%s4855_s1 + $0x618] sm:$0xff] }
 0x166   : > { %2798 = vmatpush1.msra.mxu1 %v762_v12  ;;  %1741 = vmatprep.mubr.f32.mxu1 %v329_v13  ;;  %v953_v20 = vpop.f32.mrf.mxu0  ;;  %v404_v13 = vld [vmem:[%s3166_s17 + $0x418] sm:$0xff] }
 0x167   : > { %2767 = vmatprep.subr.mxu1 %v3020_v0  ;;  %1824 = vmatprep.subr.mxu0 %v3020_v0  ;;  %v954_v23 = vadd.f32 %v4060_v18, %v953_v20  ;;  %v1113_v24 = vpop.f32.mrf.mxu1  ;;  %v403_v20 = vld [vmem:[%s3166_s17 + $0x410] sm:$0xff] }
 0x168   : > { %2799 = vmatpush1.msra.mxu1 %v761_v16  ;;  %1582 = vmatmul.mubr.f32.gmra.mxu0 %v326_v17  ;;  %v955_v26 = vpop.f32.mrf.mxu0  ;;  %v401_v17 = vld [vmem:[%s3166_s17 + $0x400] sm:$0xff] }
 0x169   : > { %1742 = vmatmul.mubr.f32.gmra.mxu1 %v328_v19  ;;  %2768 = vmatprep.subr.mxu1 %v3020_v0  ;;  %v4161_v28 = vadd.f32 %v1113_v24, %v954_v23  ;;  %v1115_v29 = vpop.f32.mrf.mxu1  ;;  %v417_v24 = vld [vmem:[%s3166_s17 + $0x480] sm:$0xff] }
 0x16a   : > { %2800 = vmatpush1.msra.mxu1 %v4153_v21  ;;  %1586 = vmatprep.mubr.f32.mxu0 %v342_v22 }
 0x16b   : > { %1746 = vmatprep.mubr.f32.mxu1 %v344_v25  ;;  %1825 = vmatpush1.msra.mxu0 %v764_v61  ;;  %v419_v25 = vld [vmem:[%s3166_s17 + $0x490] sm:$0xff] }
 0x16c   : > { %2769 = vmatprep.subr.mxu1 %v3020_v0  ;;  %1587 = vmatmul.mubr.f32.gmra.mxu0 %v341_v27  ;;  %v958_v33 = vpop.f32.mrf.mxu0  ;;  %v1118_v34 = vpop.f32.mrf.mxu1  ;;  %v751_v27 = vld [vmem:[%s4855_s1 + $0x608] sm:$0xff] }
 0x16d   : > { %1747 = vmatmul.mubr.f32.gmra.mxu1 %v343_v30  ;;  %1826 = vmatprep.subr.mxu0 %v3020_v0  ;;  %v959_v37 = vadd.f32 %v4060_v18, %v958_v33  ;;  %v418_v33 = vld [vmem:[%s3166_s17 + $0x488] sm:$0xff] }
 0x16e   : > { %2801 = vmatpush1.msra.mxu1 %v759_v31  ;;  %1827 = vmatpush1.msra.mxu0 %v763_v4  ;;  %v960_v39 = vpop.f32.mrf.mxu0  ;;  %v1120_v40 = vpop.f32.mrf.mxu1 }
 0x16f   : > { %2770 = vmatprep.subr.mxu1 %v3020_v0  ;;  %1828 = vmatprep.subr.mxu0 %v3020_v0  ;;  %v4179_v43 = vadd.f32 %v1118_v34, %v959_v37  ;;  %v432_v39 = vld [vmem:[%s3166_s17 + $0x4f8] sm:$0xff]  ;;  %v434_v40 = vld [vmem:[%s3166_s17 + $0x508] sm:$0xff] }
 0x170   : > { %2802 = vmatpush1.msra.mxu1 %v758_v35  ;;  %1591 = vmatprep.mubr.f32.mxu0 %v357_v36 }
 0x171   : > { %1751 = vmatprep.mubr.f32.mxu1 %v359_v38  ;;  %1829 = vmatpush1.msra.mxu0 %v762_v12  ;;  %v963_v46 = vpop.f32.mrf.mxu0 }
 0x172   : > { %2771 = vmatprep.subr.mxu1 %v3020_v0  ;;  %1592 = vmatmul.mubr.f32.gmra.mxu0 %v356_v41  ;;  %v964_v47 = vadd.f32 %v4060_v18, %v963_v46  ;;  %v1123_v48 = vpop.f32.mrf.mxu1 }
 0x173   : > { %1752 = vmatmul.mubr.f32.gmra.mxu1 %v358_v44  ;;  %1830 = vmatprep.subr.mxu0 %v3020_v0  ;;  %v965_v51 = vpop.f32.mrf.mxu0  ;;  %v781_v44 = vld [vmem:[%s4855_s1 + $0x6f8] sm:$0xff] }
 0x174   : > { %2803 = vmatpush1.msra.mxu1 %v757_v45  ;;  %1831 = vmatpush1.msra.mxu0 %v761_v16  ;;  %v4193_v53 = vadd.f32 %v1123_v48, %v964_v47  ;;  %v1125_v54 = vpop.f32.mrf.mxu1  ;;  %v431_v47 = vld [vmem:[%s3166_s17 + $0x4f0] sm:$0xff]  ;;  %v433_v48 = vld [vmem:[%s3166_s17 + $0x500] sm:$0xff] }
 0x175   : > { %1832 = vmatprep.subr.mxu0 %v3020_v0  ;;  %2772 = vmatprep.subr.mxu1 %v3020_v0 }
 0x176   : > { %1596 = vmatprep.mubr.f32.mxu0 %v372_v49  ;;  %1756 = vmatprep.mubr.f32.mxu1 %v374_v50  ;;  %v780_v49 = vld [vmem:[%s4855_s1 + $0x6f0] sm:$0xff] }
 0x177   : > { %1833 = vmatpush1.msra.mxu0 %v4153_v21  ;;  %2804 = vmatpush1.msra.mxu1 %v756_v52  ;;  %v968_v59 = vpop.f32.mrf.mxu0  ;;  %v752_v21 = vld [vmem:[%s4855_s1 + $0x610] sm:$0xff] }
 0x178   : > { %1597 = vmatmul.mubr.f32.gmra.mxu0 %v371_v56  ;;  %1757 = vmatmul.mubr.f32.gmra.mxu1 %v373_v57  ;;  %v969_v61 = vadd.f32 %v4060_v18, %v968_v59  ;;  %v1128_v62 = vpop.f32.mrf.mxu1  ;;  %v449_v56 = vld [vmem:[%s3166_s17 + $0x580] sm:$0xff]  ;;  %v446_v59 = vld [vmem:[%s3166_s17 + $0x568] sm:$0xff] }
 0x179   : > { %1834 = vmatprep.subr.mxu0 %v3020_v0  ;;  %2773 = vmatprep.subr.mxu1 %v3020_v0  ;;  %v970_v1 = vpop.f32.mrf.mxu0 }
 0x17a   : > { %1835 = vmatpush1.msra.mxu0 %v759_v31  ;;  %2805 = vmatpush1.msra.mxu1 %v755_v58  ;;  %v4209_v4 = vadd.f32 %v1128_v62, %v969_v61  ;;  %v1130_v5 = vpop.f32.mrf.mxu1  ;;  %v416_v31 = vld [vmem:[%s3166_s17 + $0x478] sm:$0xff]  ;;  %v779_v62 = vld [vmem:[%s4855_s1 + $0x6e8] sm:$0xff] }
 0x17b   : > { %1836 = vmatprep.subr.mxu0 %v3020_v0  ;;  %1601 = vmatprep.mubr.f32.mxu0 %v387_v60  ;;  %v448_v61 = vld [vmem:[%s3166_s17 + $0x578] sm:$0xff] }
 0x17c   : > { %1761 = vmatprep.mubr.f32.mxu1 %v389_v63  ;;  %1837 = vmatpush1.msra.mxu0 %v758_v35  ;;  %v750_v35 = vld [vmem:[%s4855_s1 + $0x600] sm:$0xff] }
 0x17d   : > { %2774 = vmatprep.subr.mxu1 %v3020_v0  ;;  %1602 = vmatmul.mubr.f32.gmra.mxu0 %v386_v3  ;;  %v973_v8 = vpop.f32.mrf.mxu0  ;;  %v1133_v9 = vpop.f32.mrf.mxu1  ;;  %v462_v3 = vld [vmem:[%s3166_s17 + $0x5e8] sm:$0xff]  ;;  %v464_v5 = vld [vmem:[%s3166_s17 + $0x5f8] sm:$0xff] }
 0x17e   : > { %1762 = vmatmul.mubr.f32.gmra.mxu1 %v388_v6  ;;  %1838 = vmatprep.subr.mxu0 %v3020_v0  ;;  %v974_v12 = vadd.f32 %v4060_v18, %v973_v8 }
 0x17f   : > { %2806 = vmatpush1.msra.mxu1 %v754_v7  ;;  %1839 = vmatpush1.msra.mxu0 %v757_v45  ;;  %v975_v15 = vpop.f32.mrf.mxu0  ;;  %v1135_v16 = vpop.f32.mrf.mxu1 }
 0x180   : > { %2775 = vmatprep.subr.mxu1 %v3020_v0  ;;  %1840 = vmatprep.subr.mxu0 %v3020_v0  ;;  %v4227_v19 = vadd.f32 %v1133_v9, %v974_v12 }
 0x181   : > { %2807 = vmatpush1.msra.mxu1 %v753_v10  ;;  %1606 = vmatprep.mubr.f32.mxu0 %v402_v11  ;;  %v463_v11 = vld [vmem:[%s3166_s17 + $0x5f0] sm:$0xff] }
 0x182   : > { %1766 = vmatprep.mubr.f32.mxu1 %v404_v13  ;;  %1841 = vmatpush1.msra.mxu0 %v756_v52  ;;  %v447_v52 = vld [vmem:[%s3166_s17 + $0x570] sm:$0xff] }
 0x183   : > { %2776 = vmatprep.subr.mxu1 %v3020_v0  ;;  %1607 = vmatmul.mubr.f32.gmra.mxu0 %v401_v17  ;;  %v978_v22 = vpop.f32.mrf.mxu0  ;;  %v1138_v23 = vpop.f32.mrf.mxu1  ;;  %v777_v13 = vld [vmem:[%s4855_s1 + $0x6d8] sm:$0xff] }
 0x184   : > { %1767 = vmatmul.mubr.f32.gmra.mxu1 %v403_v20  ;;  %1842 = vmatprep.subr.mxu0 %v3020_v0  ;;  %v979_v26 = vadd.f32 %v4060_v18, %v978_v22  ;;  %v477_v20 = vld [vmem:[%s3166_s17 + $0x660] sm:$0xff] }
 0x185   : > { %2808 = vmatpush1.msra.mxu1 %v752_v21  ;;  %1843 = vmatpush1.msra.mxu0 %v755_v58  ;;  %v980_v29 = vpop.f32.mrf.mxu0  ;;  %v1140_v30 = vpop.f32.mrf.mxu1 }
 0x186   : > { %1844 = vmatprep.subr.mxu0 %v3020_v0  ;;  %2777 = vmatprep.subr.mxu1 %v3020_v0  ;;  %v4245_v34 = vadd.f32 %v1138_v23, %v979_v26  ;;  %v776_v23 = vld [vmem:[%s4855_s1 + $0x6d0] sm:$0xff]  ;;  %v476_v26 = vld [vmem:[%s3166_s17 + $0x658] sm:$0xff]  ;;  %v775_v29 = vld [vmem:[%s4855_s1 + $0x6c8] sm:$0xff] }
 0x187   : > { %1611 = vmatprep.mubr.f32.mxu0 %v417_v24  ;;  %1771 = vmatprep.mubr.f32.mxu1 %v419_v25 }
 0x188   : > { %1845 = vmatpush1.msra.mxu0 %v754_v7  ;;  %2809 = vmatpush1.msra.mxu1 %v751_v27  ;;  %v983_v36 = vpop.f32.mrf.mxu0  ;;  %v778_v7 = vld [vmem:[%s4855_s1 + $0x6e0] sm:$0xff] }
 0x189   : > { %1612 = vmatmul.mubr.f32.gmra.mxu0 %v416_v31  ;;  %1772 = vmatmul.mubr.f32.gmra.mxu1 %v418_v33  ;;  %v984_v37 = vadd.f32 %v4060_v18, %v983_v36  ;;  %v1143_v38 = vpop.f32.mrf.mxu1  ;;  %v492_v33 = vld [vmem:[%s3166_s17 + $0x6d8] sm:$0xff]  ;;  %v494_v36 = vld [vmem:[%s3166_s17 + $0x6e8] sm:$0xff] }
 0x18a   : > { %1846 = vmatprep.subr.mxu0 %v3020_v0  ;;  %2778 = vmatprep.subr.mxu1 %v3020_v0  ;;  %v985_v41 = vpop.f32.mrf.mxu0 }
 0x18b   : > { %1847 = vmatpush1.msra.mxu0 %v753_v10  ;;  %2810 = vmatpush1.msra.mxu1 %v750_v35  ;;  %v4258_v45 = vadd.f32 %v1143_v38, %v984_v37  ;;  %v1145_v46 = vpop.f32.mrf.mxu1  ;;  %v461_v10 = vld [vmem:[%s3166_s17 + $0x5e0] sm:$0xff] }
 0x18c   : > { %1848 = vmatprep.subr.mxu0 %v3020_v0  ;;  %2779 = vmatprep.subr.mxu1 %v3020_v0  ;;  %v493_v41 = vld [vmem:[%s3166_s17 + $0x6e0] sm:$0xff] }
 0x18d   : > { %1616 = vmatprep.mubr.f32.mxu0 %v432_v39  ;;  %1776 = vmatprep.mubr.f32.mxu1 %v434_v40  ;;  %v491_v39 = vld [vmem:[%s3166_s17 + $0x6d0] sm:$0xff] }
 0x18e   : > { %1849 = vmatpush1.msra.mxu0 %v752_v21  ;;  %2811 = vmatpush2.msra.mxu1 %v781_v44  ;;  %v988_v50 = vpop.f32.mrf.mxu0  ;;  %v1148_v51 = vpop.f32.mrf.mxu1  ;;  %v479_v21 = vld [vmem:[%s3166_s17 + $0x670] sm:$0xff] }
 0x18f   : > { %1617 = vmatmul.mubr.f32.gmra.mxu0 %v431_v47  ;;  %1777 = vmatmul.mubr.f32.gmra.mxu1 %v433_v48  ;;  %v989_v54 = vadd.f32 %v4060_v18, %v988_v50  ;;  %v773_v48 = vld [vmem:[%s4855_s1 + $0x6b8] sm:$0xff] }
 0x190   : > { %1850 = vmatprep.subr.mxu0 %v3020_v0  ;;  %2780 = vmatprep.subr.mxu1 %v3020_v0  ;;  %v990_v57 = vpop.f32.mrf.mxu0  ;;  %v1150_v58 = vpop.f32.mrf.mxu1 }
 0x191   : > { %1851 = vmatpush1.msra.mxu0 %v751_v27  ;;  %2812 = vmatpush2.msra.mxu1 %v780_v49  ;;  %v4273_v60 = vadd.f32 %v1148_v51, %v989_v54  ;;  %v478_v27 = vld [vmem:[%s3166_s17 + $0x668] sm:$0xff]  ;;  %v509_v51 = vld [vmem:[%s3166_s17 + $0x760] sm:$0xff]  ;;  %v508_v57 = vld [vmem:[%s3166_s17 + $0x758] sm:$0xff] }
 0x192   : > { %1852 = vmatprep.subr.mxu0 %v3020_v0  ;;  %1621 = vmatprep.mubr.f32.mxu0 %v447_v52 }
 0x193   : > { %1781 = vmatprep.mubr.f32.mxu1 %v449_v56  ;;  %1853 = vmatpush1.msra.mxu0 %v750_v35  ;;  %v506_v56 = vld [vmem:[%s3166_s17 + $0x748] sm:$0xff] }
 0x194   : > { %2781 = vmatprep.subr.mxu1 %v3020_v0  ;;  %1622 = vmatmul.mubr.f32.gmra.mxu0 %v446_v59  ;;  %v993_v63 = vpop.f32.mrf.mxu0  ;;  %v1153_v1 = vpop.f32.mrf.mxu1  ;;  %v772_v59 = vld [vmem:[%s4855_s1 + $0x6b0] sm:$0xff] }
 0x195   : > { %1782 = vmatmul.mubr.f32.gmra.mxu1 %v448_v61  ;;  %1854 = vmatprep.subr.mxu0 %v3020_v0  ;;  %v994_v6 = vadd.f32 %v4060_v18, %v993_v63 }
 0x196   : > { %2813 = vmatpush2.msra.mxu1 %v779_v62  ;;  %1855 = vmatpush2.msra.mxu0 %v781_v44  ;;  %v995_v8 = vpop.f32.mrf.mxu0  ;;  %v1155_v9 = vpop.f32.mrf.mxu1  ;;  %v774_v44 = vld [vmem:[%s4855_s1 + $0x6c0] sm:$0xff] }
 0x197   : > { %1856 = vmatprep.subr.mxu0 %v3020_v0  ;;  %2782 = vmatprep.subr.mxu1 %v3020_v0  ;;  %v4292_v12 = vadd.f32 %v1153_v1, %v994_v6  ;;  %v522_v1 = vld [vmem:[%s3166_s17 + $0x7c8] sm:$0xff]  ;;  %v521_v9 = vld [vmem:[%s3166_s17 + $0x7c0] sm:$0xff] }
 0x198   : > { %1626 = vmatprep.mubr.f32.mxu0 %v462_v3  ;;  %1786 = vmatprep.mubr.f32.mxu1 %v464_v5  ;;  %v524_v3 = vld [vmem:[%s3166_s17 + $0x7d8] sm:$0xff]  ;;  %v771_v6 = vld [vmem:[%s4855_s1 + $0x6a8] sm:$0xff] }
 0x199   : > { %1857 = vmatpush2.msra.mxu0 %v780_v49  ;;  %2814 = vmatpush2.msra.mxu1 %v778_v7  ;;  %v998_v15 = vpop.f32.mrf.mxu0  ;;  %v507_v49 = vld [vmem:[%s3166_s17 + $0x750] sm:$0xff] }
 0x19a   : > { %1627 = vmatmul.mubr.f32.gmra.mxu0 %v461_v10  ;;  %1787 = vmatmul.mubr.f32.gmra.mxu1 %v463_v11  ;;  %v999_v16 = vadd.f32 %v4060_v18, %v998_v15  ;;  %v1158_v17 = vpop.f32.mrf.mxu1  ;;  %v523_v10 = vld [vmem:[%s3166_s17 + $0x7d0] sm:$0xff]  ;;  %v770_v11 = vld [vmem:[%s4855_s1 + $0x6a0] sm:$0xff] }
 0x19b   : > { %1858 = vmatprep.subr.mxu0 %v3020_v0  ;;  %2783 = vmatprep.subr.mxu1 %v3020_v0  ;;  %v1000_v22 = vpop.f32.mrf.mxu0 }
 0x19c   : > { %1859 = vmatpush2.msra.mxu0 %v779_v62  ;;  %2815 = vmatpush2.msra.mxu1 %v777_v13  ;;  %v4305_v24 = vadd.f32 %v1158_v17, %v999_v16  ;;  %v1160_v25 = vpop.f32.mrf.mxu1  ;;  %v537_v16 = vld [vmem:[%s3166_s17 + $0x840] sm:$0xff] }
 0x19d   : > { %1860 = vmatprep.subr.mxu0 %v3020_v0  ;;  %2784 = vmatprep.subr.mxu1 %v3020_v0 }
 0x19e   : > { %1631 = vmatprep.mubr.f32.mxu0 %v477_v20  ;;  %1791 = vmatprep.mubr.f32.mxu1 %v479_v21  ;;  %v539_v20 = vld [vmem:[%s3166_s17 + $0x850] sm:$0xff] }
 0x19f   : > { %1861 = vmatpush2.msra.mxu0 %v778_v7  ;;  %2816 = vmatpush2.msra.mxu1 %v776_v23  ;;  %v1003_v30 = vpop.f32.mrf.mxu0  ;;  %v1163_v31 = vpop.f32.mrf.mxu1 }
 0x1a0   : > { %1632 = vmatmul.mubr.f32.gmra.mxu0 %v476_v26  ;;  %1792 = vmatmul.mubr.f32.gmra.mxu1 %v478_v27  ;;  %v1004_v35 = vadd.f32 %v4060_v18, %v1003_v30  ;;  %v538_v26 = vld [vmem:[%s3166_s17 + $0x848] sm:$0xff] }
 0x1a1   : > { %1862 = vmatprep.subr.mxu0 %v3020_v0  ;;  %2785 = vmatprep.subr.mxu1 %v3020_v0  ;;  %v1005_v37 = vpop.f32.mrf.mxu0  ;;  %v1165_v38 = vpop.f32.mrf.mxu1  ;;  %v768_v30 = vld [vmem:[%s4855_s1 + $0x690] sm:$0xff] }
 0x1a2   : > { %1863 = vmatpush2.msra.mxu0 %v777_v13  ;;  %2817 = vmatpush2.msra.mxu1 %v775_v29  ;;  %v4320_v40 = vadd.f32 %v1163_v31, %v1004_v35  ;;  %v552_v31 = vld [vmem:[%s3166_s17 + $0x8b8] sm:$0xff]  ;;  %v554_v35 = vld [vmem:[%s3166_s17 + $0x8c8] sm:$0xff]  ;;  %v551_v38 = vld [vmem:[%s3166_s17 + $0x8b0] sm:$0xff] }
 0x1a3   : > { %1864 = vmatprep.subr.mxu0 %v3020_v0  ;;  %1636 = vmatprep.mubr.f32.mxu0 %v492_v33 }
 0x1a4   : > { %1796 = vmatprep.mubr.f32.mxu1 %v494_v36  ;;  %1865 = vmatpush2.msra.mxu0 %v776_v23  ;;  %v536_v23 = vld [vmem:[%s3166_s17 + $0x838] sm:$0xff] }
 0x1a5   : > { %2786 = vmatprep.subr.mxu1 %v3020_v0  ;;  %1637 = vmatmul.mubr.f32.gmra.mxu0 %v491_v39  ;;  %v1008_v46 = vpop.f32.mrf.mxu0  ;;  %v1168_v47 = vpop.f32.mrf.mxu1  ;;  %v553_v39 = vld [vmem:[%s3166_s17 + $0x8c0] sm:$0xff] }
 0x1a6   : > { %1797 = vmatmul.mubr.f32.gmra.mxu1 %v493_v41  ;;  %1866 = vmatprep.subr.mxu0 %v3020_v0  ;;  %v1009_v50 = vadd.f32 %v4060_v18, %v1008_v46 }
 0x1a7   : > { %2818 = vmatpush2.msra.mxu1 %v774_v44  ;;  %1867 = vmatpush2.msra.mxu0 %v775_v29  ;;  %v1010_v52 = vpop.f32.mrf.mxu0  ;;  %v1170_v54 = vpop.f32.mrf.mxu1 }
 0x1a8   : > { %2787 = vmatprep.subr.mxu1 %v3020_v0  ;;  %1868 = vmatprep.subr.mxu0 %v3020_v0  ;;  %v4339_v58 = vadd.f32 %v1168_v47, %v1009_v50  ;;  %v766_v50 = vld [vmem:[%s4855_s1 + $0x680] sm:$0xff] }
 0x1a9   : > { %2819 = vmatpush2.msra.mxu1 %v773_v48  ;;  %1641 = vmatprep.mubr.f32.mxu0 %v507_v49  ;;  %v436_v52 = vld [vmem:[%s3166_s17 + $0x518] sm:$0xff] }
 0x1aa   : > { %1801 = vmatprep.mubr.f32.mxu1 %v509_v51  ;;  %1869 = vmatpush2.msra.mxu0 %v774_v44  ;;  %v1013_v61 = vpop.f32.mrf.mxu0 }
 0x1ab   : > { %1642 = vmatmul.mubr.f32.gmra.mxu0 %v506_v56  ;;  %1802 = vmatmul.mubr.f32.gmra.mxu1 %v508_v57  ;;  %v1014_v62 = vadd.f32 %v4060_v18, %v1013_v61  ;;  %v1173_v63 = vpop.f32.mrf.mxu1  ;;  %v285_v57 = vld [vmem:[%s3166_s17 + $0x60] sm:$0xff] }
 0x1ac   : > { %1870 = vmatprep.subr.mxu0 %v3020_v0  ;;  %2788 = vmatprep.subr.mxu1 %v3020_v0  ;;  %v1015_v5 = vpop.f32.mrf.mxu0 }
 0x1ad   : > { %1871 = vmatpush2.msra.mxu0 %v773_v48  ;;  %2820 = vmatpush2.msra.mxu1 %v772_v59  ;;  %v4352_v7 = vadd.f32 %v1173_v63, %v1014_v62  ;;  %v1175_v8 = vpop.f32.mrf.mxu1  ;;  %v301_v62 = vld [vmem:[%s3166_s17 + $0xe0] sm:$0xff]  ;;  %v451_v5 = vld [vmem:[%s3166_s17 + $0x590] sm:$0xff] }
 0x1ae   : > { %1872 = vmatprep.subr.mxu0 %v3020_v0  ;;  %2789 = vmatprep.subr.mxu1 %v3020_v0  ;;  %v300_v8 = vld [vmem:[%s3166_s17 + $0xd8] sm:$0xff] }
 0x1af   : > { %1646 = vmatprep.mubr.f32.mxu0 %v522_v1  ;;  %1806 = vmatprep.mubr.f32.mxu1 %v524_v3  ;;  %v792_v3 = vld [vmem:[%s4855_s1 + $0x750] sm:$0x3] }
 0x1b0   : > { %1873 = vmatpush2.msra.mxu0 %v772_v59  ;;  %2821 = vmatpush2.msra.mxu1 %v771_v6  ;;  %v1018_v13 = vpop.f32.mrf.mxu0  ;;  %v1178_v15 = vpop.f32.mrf.mxu1  ;;  %v435_v59 = vld [vmem:[%s3166_s17 + $0x510] sm:$0xff] }
 0x1b1   : > { %1647 = vmatmul.mubr.f32.gmra.mxu0 %v521_v9  ;;  %1807 = vmatmul.mubr.f32.gmra.mxu1 %v523_v10  ;;  %v1019_v17 = vadd.f32 %v4060_v18, %v1018_v13  ;;  %v769_v18 = vld [vmem:[%s4855_s1 + $0x698] sm:$0xff]  ;;  %v450_v9 = vld [vmem:[%s3166_s17 + $0x588] sm:$0xff] }
 0x1b2   : > { %1874 = vmatprep.subr.mxu0 %v3020_v0  ;;  %2790 = vmatprep.subr.mxu1 %v3020_v0  ;;  %v1020_v21 = vpop.f32.mrf.mxu0  ;;  %v1180_v22 = vpop.f32.mrf.mxu1  ;;  %v791_v13 = vld [vmem:[%s4855_s1 + $0x748] sm:$0xff] }
 0x1b3   : > { %1875 = vmatpush2.msra.mxu0 %v771_v6  ;;  %2822 = vmatpush2.msra.mxu1 %v770_v11  ;;  %v4367_v25 = vadd.f32 %v1178_v15, %v1019_v17  ;;  %v316_v15 = vld [vmem:[%s3166_s17 + $0x158] sm:$0xff]  ;;  %v466_v17 = vld [vmem:[%s3166_s17 + $0x608] sm:$0xff] }
 0x1b4   : > { %1876 = vmatprep.subr.mxu0 %v3020_v0  ;;  %1651 = vmatprep.mubr.f32.mxu0 %v537_v16 }
 0x1b5   : > { %1811 = vmatprep.mubr.f32.mxu1 %v539_v20  ;;  %1877 = vmatpush2.msra.mxu0 %v770_v11 }
 0x1b6   : > { %2791 = vmatprep.subr.mxu1 %v3020_v0  ;;  %1652 = vmatmul.mubr.f32.gmra.mxu0 %v536_v23  ;;  %v1248_v27 = vpop.f32.mrf.mxu0  ;;  %v1408_v29 = vpop.f32.mrf.mxu1  ;;  %v315_v23 = vld [vmem:[%s3166_s17 + $0x150] sm:$0xff] }
 0x1b7   : > { %1812 = vmatmul.mubr.f32.gmra.mxu1 %v538_v26  ;;  %1878 = vmatprep.subr.mxu0 %v3020_v0  ;;  %v1249_v33 = vadd.f32 %v1248_v27, %v4083_v32  ;;  %v767_v32 = vld [vmem:[%s4855_s1 + $0x688] sm:$0xff] }
 0x1b8   : > { %2823 = vmatpush2.msra.mxu1 %v769_v18  ;;  %1879 = vmatpush2.msra.mxu0 %v769_v18  ;;  %v1250_v36 = vpop.f32.mrf.mxu0  ;;  %v1410_v37 = vpop.f32.mrf.mxu1  ;;  %v465_v26 = vld [vmem:[%s3166_s17 + $0x600] sm:$0xff] }
 0x1b9   : > { %2792 = vmatprep.subr.mxu1 %v3020_v0  ;;  %1880 = vmatprep.subr.mxu0 %v3020_v0  ;;  %v4386_v41 = vadd.f32 %v1408_v29, %v1249_v33  ;;  %v331_v29 = vld [vmem:[%s3166_s17 + $0x1d0] sm:$0xff]  ;;  %v480_v37 = vld [vmem:[%s3166_s17 + $0x678] sm:$0xff] }
 0x1ba   : > { %2824 = vmatpush2.msra.mxu1 %v768_v30  ;;  %1656 = vmatprep.mubr.f32.mxu0 %v552_v31  ;;  %v1253_v44 = vpop.f32.mrf.mxu0  ;;  %v1413_v46 = vpop.f32.mrf.mxu1  ;;  %v481_v31 = vld [vmem:[%s3166_s17 + $0x680] sm:$0xff]  ;;  %v789_v33 = vld [vmem:[%s4855_s1 + $0x738] sm:$0xff] }
 0x1bb   : > { %1816 = vmatprep.mubr.f32.mxu1 %v554_v35  ;;  %1881 = vmatpush2.msra.mxu0 %v768_v30  ;;  %v1254_v47 = vadd.f32 %v1253_v44, %v4098_v42  ;;  %v286_v42 = vld [vmem:[%s3166_s17 + $0x68] sm:$0xff] }
 0x1bc   : > { %1657 = vmatmul.mubr.f32.gmra.mxu0 %v551_v38  ;;  %1817 = vmatmul.mubr.f32.gmra.mxu1 %v553_v39  ;;  %v1255_v48 = vpop.f32.mrf.mxu0  ;;  %v1415_v49 = vpop.f32.mrf.mxu1  ;;  %v346_v38 = vld [vmem:[%s3166_s17 + $0x248] sm:$0xff]  ;;  %v496_v39 = vld [vmem:[%s3166_s17 + $0x6f8] sm:$0xff] }
 0x1bd   : > { %1882 = vmatprep.subr.mxu0 %v3020_v0  ;;  %2793 = vmatprep.subr.mxu1 %v3020_v0  ;;  %v4397_v51 = vadd.f32 %v1413_v46, %v1254_v47  ;;  %v788_v46 = vld [vmem:[%s4855_s1 + $0x730] sm:$0xff]  ;;  %v345_v49 = vld [vmem:[%s3166_s17 + $0x240] sm:$0xff] }
 0x1be   : > { %1883 = vmatpush2.msra.mxu0 %v767_v32  ;;  %2825 = vmatpush2.msra.mxu1 %v767_v32  ;;  %v1258_v54 = vpop.f32.mrf.mxu0  ;;  %v1418_v56 = vpop.f32.mrf.mxu1 }
 0x1bf   : > { %1884 = vmatprep.subr.mxu0 %v3020_v0  ;;  %2794 = vmatprep.subr.mxu1 %v3020_v0  ;;  %v1259_v61 = vadd.f32 %v1258_v54, %v4114_v55  ;;  %v787_v54 = vld [vmem:[%s4855_s1 + $0x728] sm:$0xff] }
 0x1c0   : > { %1885 = vmatpush2.msra.mxu0 %v766_v50  ;;  %2826 = vmatpush2.msra.mxu1 %v766_v50  ;;  %v1260_v63 = vpop.f32.mrf.mxu0  ;;  %v1420_v1 = vpop.f32.mrf.mxu1  ;;  %v495_v50 = vld [vmem:[%s3166_s17 + $0x6f0] sm:$0xff] }
 0x1c1   : > { %1886 = vmatprep.mubr.f32.mxu0 %v286_v42  ;;  %1936 = vmatprep.mubr.f32.mxu1 %v436_v52  ;;  %v4411_v6 = vadd.f32 %v1418_v56, %v1259_v61  ;;  %v511_v56 = vld [vmem:[%s3166_s17 + $0x770] sm:$0xff]  ;;  %v510_v63 = vld [vmem:[%s3166_s17 + $0x768] sm:$0xff] }
 0x1c2   : > { %1887 = vmatmul.mubr.f32.vlgmr.msra.gmra.mxu0 %v285_v57  ;;  %1937 = vmatmul.mubr.f32.vlgmr.msra.gmra.mxu1 %v435_v59  ;;  %v1263_v55 = vpop.f32.mrf.mxu0  ;;  %v786_v57 = vld [vmem:[%s4855_s1 + $0x720] sm:$0xff] }
 0x1c3   : > { %2611 = vmatprep.subr.mxu1 %v3020_v0  ;;  %1891 = vmatprep.mubr.f32.mxu0 %v301_v62  ;;  %v1264_v10 = vadd.f32 %v1263_v55, %v4127_v2  ;;  %v1423_v11 = vpop.f32.mrf.mxu1  ;;  %v790_v2 = vld [vmem:[%s4855_s1 + $0x740] sm:$0xff] }
 0x1c4   : > { %2612 = vmatpush3.msk.msra.mxu1 %vm858_vm0, %v792_v3  ;;  %1941 = vmatprep.mubr.f32.mxu1 %v451_v5  ;;  %v1265_v16 = vpop.f32.mrf.mxu0  ;;  %v360_v62 = vld [vmem:[%s3166_s17 + $0x2b8] sm:$0xff]  ;;  %v526_v5 = vld [vmem:[%s3166_s17 + $0x7e8] sm:$0xff] }
 0x1c5   : > { %2613 = vmatprep.subr.mxu1 %v3020_v0  ;;  %v4423_v20 = vadd.f32 %v1423_v11, %v1264_v10  ;;  %v1425_v21 = vpop.f32.mrf.mxu1  ;;  %2690 = vmatprep.subr.mxu0 %v3020_v0  ;;  %v376_v3 = vld [vmem:[%s3166_s17 + $0x338] sm:$0xff]  ;;  %v525_v11 = vld [vmem:[%s3166_s17 + $0x7e0] sm:$0xff] }
 0x1c6   : > { %1892 = vmatmul.mubr.f32.gmra.mxu0 %v300_v8  ;;  %1942 = vmatmul.mubr.f32.gmra.mxu1 %v450_v9  ;;  %v1268_v22 = vpop.f32.mrf.mxu0  ;;  %v785_v10 = vld [vmem:[%s4855_s1 + $0x718] sm:$0xff]  ;;  %v541_v16 = vld [vmem:[%s3166_s17 + $0x860] sm:$0xff] }
 0x1c7   : > { %2614 = vmatpush3.msra.mxu1 %v791_v13  ;;  %1896 = vmatprep.mubr.f32.mxu0 %v316_v15  ;;  %v1269_v18 = vadd.f32 %v1268_v22, %v4141_v14  ;;  %v1428_v27 = vpop.f32.mrf.mxu1  ;;  %v330_v14 = vld [vmem:[%s3166_s17 + $0x1c8] sm:$0xff]  ;;  %v391_v15 = vld [vmem:[%s3166_s17 + $0x3b0] sm:$0xff] }
 0x1c8   : > { %1946 = vmatprep.mubr.f32.mxu1 %v466_v17  ;;  %2615 = vmatprep.subr.mxu1 %v3020_v0  ;;  %v1270_v30 = vpop.f32.mrf.mxu0  ;;  %v784_v22 = vld [vmem:[%s4855_s1 + $0x710] sm:$0xff] }
 0x1c9   : > { %2616 = vmatpush3.msra.mxu1 %v790_v2  ;;  %v4438_v35 = vadd.f32 %v1428_v27, %v1269_v18  ;;  %v1430_v36 = vpop.f32.mrf.mxu1  ;;  %v390_v18 = vld [vmem:[%s3166_s17 + $0x3a8] sm:$0xff]  ;;  %v540_v27 = vld [vmem:[%s3166_s17 + $0x858] sm:$0xff] }
 0x1ca   : > { %1897 = vmatmul.mubr.f32.gmra.mxu0 %v315_v23  ;;  %1947 = vmatmul.mubr.f32.gmra.mxu1 %v465_v26  ;;  %v783_v30 = vld [vmem:[%s4855_s1 + $0x708] sm:$0xff] }
 0x1cb   : > { %2617 = vmatprep.subr.mxu1 %v3020_v0  ;;  %1901 = vmatprep.mubr.f32.mxu0 %v331_v29  ;;  %v556_v29 = vld [vmem:[%s3166_s17 + $0x8d8] sm:$0xff] }
 0x1cc   : > { %1951 = vmatprep.mubr.f32.mxu1 %v481_v31  ;;  %2618 = vmatpush3.msra.mxu1 %v789_v33  ;;  %v1273_v44 = vpop.f32.mrf.mxu0 }
 0x1cd   : > { %2619 = vmatprep.subr.mxu1 %v3020_v0  ;;  %v1274_v32 = vadd.f32 %v1273_v44, %v4161_v28  ;;  %v1433_v47 = vpop.f32.mrf.mxu1  ;;  %v361_v28 = vld [vmem:[%s3166_s17 + $0x2c0] sm:$0xff] }
 0x1ce   : > { %1902 = vmatmul.mubr.f32.gmra.mxu0 %v330_v14  ;;  %1952 = vmatmul.mubr.f32.gmra.mxu1 %v480_v37  ;;  %v1275_v48 = vpop.f32.mrf.mxu0  ;;  %v405_v14 = vld [vmem:[%s3166_s17 + $0x420] sm:$0xff]  ;;  %v555_v37 = vld [vmem:[%s3166_s17 + $0x8d0] sm:$0xff] }
 0x1cf   : > { %1906 = vmatprep.mubr.f32.mxu0 %v346_v38  ;;  %1956 = vmatprep.mubr.f32.mxu1 %v496_v39  ;;  %v4452_v42 = vadd.f32 %v1433_v47, %v1274_v32  ;;  %v1435_v52 = vpop.f32.mrf.mxu1  ;;  %v782_v39 = vld [vmem:[%s4855_s1 + $0x700] sm:$0xff]  ;;  %v287_v47 = vld [vmem:[%s3166_s17 + $0x70] sm:$0xff] }
 0x1d0   : > { %2620 = vmatpush3.msra.mxu1 %v788_v46  ;;  %v421_v44 = vld [vmem:[%s3166_s17 + $0x4a0] sm:$0xff] }
 0x1d1   : > { %2621 = vmatprep.subr.mxu1 %v3020_v0 }
 0x1d2   : > { %1907 = vmatmul.mubr.f32.gmra.mxu0 %v345_v49  ;;  %1957 = vmatmul.mubr.f32.gmra.mxu1 %v495_v50  ;;  %v1278_v59 = vpop.f32.mrf.mxu0  ;;  %v1438_v61 = vpop.f32.mrf.mxu1 }
 0x1d3   : > { %2622 = vmatpush3.msra.mxu1 %v787_v54  ;;  %1911 = vmatprep.mubr.f32.mxu0 %v361_v28  ;;  %v1279_v1 = vadd.f32 %v1278_v59, %v4179_v43  ;;  %v375_v43 = vld [vmem:[%s3166_s17 + $0x330] sm:$0xff] }
 0x1d4   : > { %1961 = vmatprep.mubr.f32.mxu1 %v511_v56  ;;  %2623 = vmatprep.subr.mxu1 %v3020_v0  ;;  %v1280_v55 = vpop.f32.mrf.mxu0  ;;  %v1440_v8 = vpop.f32.mrf.mxu1  ;;  %v302_v56 = vld [vmem:[%s3166_s17 + $0xe8] sm:$0xff] }
 0x1d5   : > { %2624 = vmatpush3.msra.mxu1 %v786_v57  ;;  %v4469_v9 = vadd.f32 %v1438_v61, %v1279_v1  ;;  %v317_v61 = vld [vmem:[%s3166_s17 + $0x160] sm:$0xff] }
 0x1d6   : > { %1912 = vmatmul.mubr.f32.gmra.mxu0 %v360_v62  ;;  %1962 = vmatmul.mubr.f32.gmra.mxu1 %v510_v63 }
 0x1d7   : > { %1916 = vmatprep.mubr.f32.mxu0 %v376_v3  ;;  %1966 = vmatprep.mubr.f32.mxu1 %v526_v5  ;;  %v1283_v13 = vpop.f32.mrf.mxu0  ;;  %v332_v5 = vld [vmem:[%s3166_s17 + $0x1d8] sm:$0xff] }
 0x1d8   : > { %2625 = vmatprep.subr.mxu1 %v3020_v0  ;;  %v1284_v17 = vadd.f32 %v1283_v13, %v4193_v53  ;;  %v1443_v21 = vpop.f32.mrf.mxu1  ;;  %v406_v53 = vld [vmem:[%s3166_s17 + $0x428] sm:$0xff] }
 0x1d9   : > { %2626 = vmatpush3.msra.mxu1 %v785_v10  ;;  %v1285_v2 = vpop.f32.mrf.mxu0 }
 0x1da   : > { %1917 = vmatmul.mubr.f32.gmra.mxu0 %v375_v43  ;;  %1967 = vmatmul.mubr.f32.gmra.mxu1 %v525_v11  ;;  %v4483_v23 = vadd.f32 %v1443_v21, %v1284_v17  ;;  %v1445_v26 = vpop.f32.mrf.mxu1  ;;  %v347_v11 = vld [vmem:[%s3166_s17 + $0x250] sm:$0xff]  ;;  %v362_v21 = vld [vmem:[%s3166_s17 + $0x2c8] sm:$0xff] }
 0x1db   : > { %1921 = vmatprep.mubr.f32.mxu0 %v391_v15  ;;  %1971 = vmatprep.mubr.f32.mxu1 %v541_v16 }
 0x1dc   : > { %2627 = vmatprep.subr.mxu1 %v3020_v0 }
 0x1dd   : > { %2628 = vmatpush3.msra.mxu1 %v784_v22  ;;  %v1288_v31 = vpop.f32.mrf.mxu0 }
 0x1de   : > { %1922 = vmatmul.mubr.f32.gmra.mxu0 %v390_v18  ;;  %1972 = vmatmul.mubr.f32.gmra.mxu1 %v540_v27  ;;  %v1289_v33 = vadd.f32 %v1288_v31, %v4209_v4  ;;  %v1448_v36 = vpop.f32.mrf.mxu1  ;;  %v420_v4 = vld [vmem:[%s3166_s17 + $0x498] sm:$0xff]  ;;  %v377_v18 = vld [vmem:[%s3166_s17 + $0x340] sm:$0xff] }
 0x1df   : > { %2629 = vmatprep.subr.mxu1 %v3020_v0  ;;  %1926 = vmatprep.mubr.f32.mxu0 %v406_v53  ;;  %v1290_v38 = vpop.f32.mrf.mxu0 }
 0x1e0   : > { %1976 = vmatprep.mubr.f32.mxu1 %v556_v29  ;;  %2630 = vmatpush3.msra.mxu1 %v783_v30  ;;  %v4501_v46 = vadd.f32 %v1448_v36, %v1289_v33  ;;  %v1450_v32 = vpop.f32.mrf.mxu1  ;;  %v392_v30 = vld [vmem:[%s3166_s17 + $0x3b8] sm:$0xff]  ;;  %v407_v38 = vld [vmem:[%s3166_s17 + $0x430] sm:$0xff] }
 0x1e1   : > { %2631 = vmatprep.subr.mxu1 %v3020_v0 }
 0x1e2   : > { %1927 = vmatmul.mubr.f32.gmra.mxu0 %v405_v14  ;;  %1977 = vmatmul.mubr.f32.gmra.mxu1 %v555_v37 }
 0x1e3   : > { %2632 = vmatpush3.msra.mxu1 %v782_v39  ;;  %1931 = vmatprep.mubr.f32.mxu0 %v421_v44  ;;  %v1293_v48 = vpop.f32.mrf.mxu0  ;;  %v1453_v49 = vpop.f32.mrf.mxu1  ;;  %v2168_v39 = vld [vmem:[%s4857_s3 + $0x38] sm:$0xff] }
 0x1e4   : > { %2633 = vmatprep.mubr.msk.f32.mxu1 %vm3021_vm2, %v3020_v0  ;;  %v1294_v50 = vadd.f32 %v1293_v48, %v4227_v19  ;;  %2691 = vmatpush3.msra.mxu0 %v2168_v39 }
 0x1e5   : > { %v1295_v52 = vpop.f32.mrf.mxu0  ;;  %v1455_v54 = vpop.f32.mrf.mxu1  ;;  %2692 = vmatprep.subr.mxu0 %v3020_v0 }
 0x1e6   : > { %1932 = vmatmul.mubr.f32.gmra.mxu0 %v420_v4  ;;  %2634 = vmatmul.mubr.msk.f32.vlgmr.msra.gmra.mxu1 %vm800_vm1, %v287_v47  ;;  %v4510_v28 = vadd.f32 %v1453_v49, %v1294_v50  ;;  %v422_v4 = vld [vmem:[%s3166_s17 + $0x4a8] sm:$0xff] }
 0x1e7   : > { %2636 = vmatprep.mubr.msk.f32.mxu1 %vm3021_vm2, %v3020_v0  ;;  %2706 = vmatprep.mubr.msk.f32.mxu0 %vm3021_vm2, %v3020_v0  ;;  %v2167_v50 = vld [vmem:[%s4857_s3 + $0x30] sm:$0xff] }
 0x1e8   : > { %2693 = vmatpush3.msra.mxu0 %v2167_v50 }
 0x1e9   : > { %v1298_v57 = vpop.f32.mrf.mxu0  ;;  %v1458_v59 = vpop.f32.mrf.mxu1  ;;  %2694 = vmatprep.subr.mxu0 %v3020_v0 }
 0x1ea   : > { %2637 = vmatmul.mubr.msk.f32.gmra.mxu1 %vm800_vm1, %v302_v56  ;;  %v1299_v19 = vadd.f32 %v1298_v57, %v4245_v34 }
 0x1eb   : > { %2639 = vmatprep.mubr.msk.f32.mxu1 %vm3021_vm2, %v3020_v0  ;;  %v1300_v62 = vpop.f32.mrf.mxu0  ;;  %v1460_v63 = vpop.f32.mrf.mxu1 }
 0x1ec   : > { %v4522_v1 = vadd.f32 %v1458_v59, %v1299_v19  ;;  %v2166_v62 = vld [vmem:[%s4857_s3 + $0x28] sm:$0xff] }
 0x1ed   : > { %2695 = vmatpush3.msra.mxu0 %v2166_v62 }
 0x1ee   : > { %2640 = vmatmul.mubr.msk.f32.gmra.mxu1 %vm800_vm1, %v317_v61  ;;  %v1303_v3 = vpop.f32.mrf.mxu0  ;;  %v452_v61 = vld [vmem:[%s3166_s17 + $0x598] sm:$0xff]  ;;  %2696 = vmatprep.subr.mxu0 %v3020_v0 }
 0x1ef   : > { %2642 = vmatprep.mubr.msk.f32.mxu1 %vm3021_vm2, %v3020_v0  ;;  %v1304_v55 = vadd.f32 %v1303_v3, %v4258_v45  ;;  %v1463_v34 = vpop.f32.mrf.mxu1 }
 0x1f0   : > { %v1305_v8 = vpop.f32.mrf.mxu0 }
 0x1f1   : > { %v4529_v10 = vadd.f32 %v1463_v34, %v1304_v55  ;;  %v1465_v43 = vpop.f32.mrf.mxu1  ;;  %v467_v55 = vld [vmem:[%s3166_s17 + $0x610] sm:$0xff] }
 0x1f2   : > { %2643 = vmatmul.mubr.msk.f32.gmra.mxu1 %vm800_vm1, %v332_v5  ;;  %v2165_v43 = vld [vmem:[%s4857_s3 + $0x20] sm:$0xff] }
 0x1f3   : > { %2645 = vmatprep.mubr.msk.f32.mxu1 %vm3021_vm2, %v3020_v0  ;;  %2697 = vmatpush3.msra.mxu0 %v2165_v43 }
 0x1f4   : > { %v1308_v13 = vpop.f32.mrf.mxu0  ;;  %v1468_v15 = vpop.f32.mrf.mxu1  ;;  %2698 = vmatprep.subr.mxu0 %v3020_v0 }
 0x1f5   : > { %v1309_v16 = vadd.f32 %v1308_v13, %v4273_v60  ;;  %v482_v13 = vld [vmem:[%s3166_s17 + $0x688] sm:$0xff] }
 0x1f6   : > { %2646 = vmatmul.mubr.msk.f32.gmra.mxu1 %vm800_vm1, %v347_v11  ;;  %v1310_v17 = vpop.f32.mrf.mxu0  ;;  %v1470_v45 = vpop.f32.mrf.mxu1 }
 0x1f7   : > { %2648 = vmatprep.mubr.msk.f32.mxu1 %vm3021_vm2, %v3020_v0  ;;  %v4540_v2 = vadd.f32 %v1468_v15, %v1309_v16  ;;  %v2164_v45 = vld [vmem:[%s4857_s3 + $0x18] sm:$0xff] }
 0x1f8   : > { %2699 = vmatpush3.msra.mxu0 %v2164_v45 }
 0x1f9   : > { %2700 = vmatprep.subr.mxu0 %v3020_v0 }
 0x1fa   : > { %2649 = vmatmul.mubr.msk.f32.gmra.mxu1 %vm800_vm1, %v362_v21  ;;  %v1313_v22 = vpop.f32.mrf.mxu0  ;;  %v1473_v26 = vpop.f32.mrf.mxu1 }
 0x1fb   : > { %2651 = vmatprep.mubr.msk.f32.mxu1 %vm3021_vm2, %v3020_v0  ;;  %v1314_v60 = vadd.f32 %v1313_v22, %v4292_v12  ;;  %v497_v22 = vld [vmem:[%s3166_s17 + $0x700] sm:$0xff] }
 0x1fc   : > { %v1315_v27 = vpop.f32.mrf.mxu0  ;;  %v1475_v53 = vpop.f32.mrf.mxu1 }
 0x1fd   : > { %v4547_v29 = vadd.f32 %v1473_v26, %v1314_v60 }
 0x1fe   : > { %2652 = vmatmul.mubr.msk.f32.gmra.mxu1 %vm800_vm1, %v377_v18  ;;  %v2163_v18 = vld [vmem:[%s4857_s3 + $0x10] sm:$0xff] }
 0x1ff   : > { %2654 = vmatprep.mubr.msk.f32.mxu1 %vm3021_vm2, %v3020_v0  ;;  %v1318_v31 = vpop.f32.mrf.mxu0  ;;  %2701 = vmatpush3.msra.mxu0 %v2163_v18 }
 0x200   : > { %v1319_v33 = vadd.f32 %v1318_v31, %v4305_v24  ;;  %v1478_v36 = vpop.f32.mrf.mxu1  ;;  %2702 = vmatprep.subr.mxu0 %v3020_v0 }
 0x201   : > { %v1320_v14 = vpop.f32.mrf.mxu0 }
 0x202   : > { %2655 = vmatmul.mubr.msk.f32.gmra.mxu1 %vm800_vm1, %v392_v30  ;;  %v4555_v37 = vadd.f32 %v1478_v36, %v1319_v33  ;;  %v1480_v12 = vpop.f32.mrf.mxu1  ;;  %v512_v30 = vld [vmem:[%s3166_s17 + $0x778] sm:$0xff] }
 0x203   : > { %2657 = vmatprep.mubr.msk.f32.mxu1 %vm3021_vm2, %v3020_v0 }
 0x205   : > { %v1323_v44 = vpop.f32.mrf.mxu0  ;;  %v1483_v32 = vpop.f32.mrf.mxu1 }
 0x206   : > { %2658 = vmatmul.mubr.msk.f32.gmra.mxu1 %vm800_vm1, %v407_v38  ;;  %v1324_v24 = vadd.f32 %v1323_v44, %v4320_v40  ;;  %v437_v40 = vld [vmem:[%s3166_s17 + $0x520] sm:$0xff]  ;;  %v527_v38 = vld [vmem:[%s3166_s17 + $0x7f0] sm:$0xff] }
 0x207   : > { %2660 = vmatprep.mubr.msk.f32.mxu1 %vm3021_vm2, %v3020_v0  ;;  %v1325_v47 = vpop.f32.mrf.mxu0  ;;  %v1485_v48 = vpop.f32.mrf.mxu1  ;;  %v2162_v44 = vld [vmem:[%s4857_s3 + $0x8] sm:$0xff] }
 0x208   : > { %v4569_v49 = vadd.f32 %v1483_v32, %v1324_v24  ;;  %2703 = vmatpush3.msra.mxu0 %v2162_v44  ;;  %v542_v48 = vld [vmem:[%s3166_s17 + $0x868] sm:$0xff] }
 0x209   : > { %2704 = vmatprep.subr.mxu0 %v3020_v0 }
 0x20a   : > { %2661 = vmatmul.mubr.msk.f32.gmra.mxu1 %vm800_vm1, %v422_v4 }
 0x20b   : > { %2663 = vmatprep.mubr.msk.f32.mxu1 %vm3021_vm2, %v3020_v0  ;;  %v1328_v52 = vpop.f32.mrf.mxu0  ;;  %v1488_v54 = vpop.f32.mrf.mxu1 }
 0x20c   : > { %v1329_v56 = vadd.f32 %v1328_v52, %v4339_v58 }
 0x20d   : > { %v1330_v57 = vpop.f32.mrf.mxu0  ;;  %v1490_v59 = vpop.f32.mrf.mxu1 }
 0x20e   : > { %2664 = vmatmul.mubr.msk.f32.gmra.mxu1 %vm800_vm1, %v437_v40  ;;  %v4581_v19 = vadd.f32 %v1488_v54, %v1329_v56  ;;  %v557_v57 = vld [vmem:[%s3166_s17 + $0x8e0] sm:$0xff]  ;;  %s267_s17 = smul.u32 19, %s2500_s22 }
 0x20f   : > { %2666 = vmatprep.mubr.msk.f32.mxu1 %vm3021_vm2, %v3020_v0 }
 0x210   : > { %v1333_v63 = vpop.f32.mrf.mxu0  ;;  %p268_p13 = scmp.lt.s32.totalorder %s267_s17, 37 }
 0x211   : > { %v1334_v3 = vadd.f32 %v1333_v63, %v4352_v7  ;;  %v1493_v58 = vpop.f32.mrf.mxu1 }
 0x212   : > { %2667 = vmatmul.mubr.msk.f32.gmra.mxu1 %vm800_vm1, %v452_v61  ;;  %v1335_v5 = vpop.f32.mrf.mxu0  ;;  %s4877_s17 = smov (!%p268_p13, %s267_s17), 37 }
 0x213   : > { %2669 = vmatprep.mubr.msk.f32.mxu1 %vm3021_vm2, %v3020_v0  ;;  %v4595_v34 = vadd.f32 %v1493_v58, %v1334_v3  ;;  %v1495_v8 = vpop.f32.mrf.mxu1  ;;  %s2510_s29 = sshll.u32 %s4877_s17, 3 }
 0x214   : > { %s4782_s13 = scalar_lea.vmem %s4859_s5, %s2510_s29 }
 0x216   : > { %2670 = vmatmul.mubr.msk.f32.gmra.mxu1 %vm800_vm1, %v467_v55  ;;  %v1338_v7 = vpop.f32.mrf.mxu0  ;;  %v1498_v11 = vpop.f32.mrf.mxu1 }
 0x217   : > { %2672 = vmatprep.mubr.msk.f32.mxu1 %vm3021_vm2, %v3020_v0  ;;  %v1339_v15 = vadd.f32 %v1338_v7, %v4367_v25 }
 0x218   : > { %v1340_v16 = vpop.f32.mrf.mxu0  ;;  %v1500_v17 = vpop.f32.mrf.mxu1 }
 0x219   : > { %v4609_v21 = vadd.f32 %v1498_v11, %v1339_v15 }
 0x21a   : > { %2673 = vmatmul.mubr.msk.f32.gmra.mxu1 %vm800_vm1, %v482_v13 }
 0x21b   : > { %2675 = vmatprep.mubr.msk.f32.mxu1 %vm3021_vm2, %v3020_v0 }
 0x21c   : > { %v1568_v26 = vpop.f32.mrf.mxu0  ;;  %v1728_v25 = vpop.f32.mrf.mxu1 }
 0x21d   : > { %v1569_v60 = vadd.f32 %v1568_v26, %v4386_v41 }
 0x21e   : > { %2676 = vmatmul.mubr.msk.f32.gmra.mxu1 %vm800_vm1, %v497_v22  ;;  %v1570_v27 = vpop.f32.mrf.mxu0  ;;  %v1730_v53 = vpop.f32.mrf.mxu1 }
 0x21f   : > { %2678 = vmatprep.mubr.msk.f32.mxu1 %vm3021_vm2, %v3020_v0  ;;  %v4625_v31 = vadd.f32 %v1728_v25, %v1569_v60 }
 0x220   : > { %v1573_v33 = vpop.f32.mrf.mxu0  ;;  %v1733_v36 = vpop.f32.mrf.mxu1 }
 0x221   : > { %v1574_v14 = vadd.f32 %v1573_v33, %v4397_v51 }
 0x222   : > { %2679 = vmatmul.mubr.msk.f32.gmra.mxu1 %vm800_vm1, %v512_v30  ;;  %v1575_v41 = vpop.f32.mrf.mxu0  ;;  %v1735_v12 = vpop.f32.mrf.mxu1 }
 0x223   : > { %2681 = vmatprep.mubr.msk.f32.mxu1 %vm3021_vm2, %v3020_v0  ;;  %v4632_v39 = vadd.f32 %v1733_v36, %v1574_v14 }
 0x224   : > { %v1578_v32 = vpop.f32.mrf.mxu0  ;;  %v1738_v24 = vpop.f32.mrf.mxu1 }
 0x225   : > { %v1579_v51 = vadd.f32 %v1578_v32, %v4411_v6  ;;  %v2161_v6 = vld [vmem:[%s4857_s3] sm:$0xff] }
 0x226   : > { %2682 = vmatmul.mubr.msk.f32.gmra.mxu1 %vm800_vm1, %v527_v38  ;;  %v1580_v4 = vpop.f32.mrf.mxu0  ;;  %v1740_v47 = vpop.f32.mrf.mxu1  ;;  %2705 = vmatpush3.msra.mxu0 %v2161_v6 }
 0x227   : > { %2684 = vmatprep.mubr.msk.f32.mxu1 %vm3021_vm2, %v3020_v0  ;;  %v4643_v50 = vadd.f32 %v1738_v24, %v1579_v51 }
 0x228   : > { %v1583_v40 = vpop.f32.mrf.mxu0 }
 0x229   : > { %v1584_v52 = vadd.f32 %v1583_v40, %v4423_v20  ;;  %v1743_v54 = vpop.f32.mrf.mxu1 }
 0x22a   : > { %2685 = vmatmul.mubr.msk.f32.gmra.mxu1 %vm800_vm1, %v542_v48  ;;  %v1585_v56 = vpop.f32.mrf.mxu0 }
 0x22b   : > { %2687 = vmatprep.mubr.msk.f32.mxu1 %vm3021_vm2, %v3020_v0  ;;  %v4653_v59 = vadd.f32 %v1743_v54, %v1584_v52  ;;  %v1745_v61 = vpop.f32.mrf.mxu1 }
 0x22c   : > { %v1588_v62 = vpop.f32.mrf.mxu0 }
 0x22d   : > { %v1589_v63 = vadd.f32 %v1588_v62, %v4438_v35  ;;  %v1748_v20 = vpop.f32.mrf.mxu1 }
 0x22e   : > { %2688 = vmatmul.mubr.msk.f32.gmra.mxu1 %vm800_vm1, %v557_v57  ;;  %v1590_v3 = vpop.f32.mrf.mxu0 }
 0x22f   : > { %v4657_v58 = vadd.f32 %v1748_v20, %v1589_v63  ;;  %v1750_v5 = vpop.f32.mrf.mxu1 }
 0x232   : > { %v1593_v55 = vpop.f32.mrf.mxu0 }
 0x233   : > { %v1594_v8 = vadd.f32 %v1593_v55, %v4452_v42  ;;  %v1753_v43 = vpop.f32.mrf.mxu1 }
 0x234   : > { %v1595_v7 = vpop.f32.mrf.mxu0 }
 0x235   : > { %v4660_v11 = vadd.f32 %v1753_v43, %v1594_v8  ;;  %v1755_v13 = vpop.f32.mrf.mxu1 }
 0x238   : > { %v1598_v15 = vpop.f32.mrf.mxu0  ;;  %v1758_v16 = vpop.f32.mrf.mxu1 }
 0x239   : > { %v1599_v17 = vadd.f32 %v1598_v15, %v4469_v9 }
 0x23a   : > { %v1600_v35 = vpop.f32.mrf.mxu0  ;;  %v1760_v45 = vpop.f32.mrf.mxu1 }
 0x23b   : > { %v4663_v22 = vadd.f32 %v1758_v16, %v1599_v17 }
 0x23d   : > { %v1603_v26 = vpop.f32.mrf.mxu0 }
 0x23e   : > { %v1604_v25 = vadd.f32 %v1603_v26, %v4483_v23  ;;  %v1763_v18 = vpop.f32.mrf.mxu1 }
 0x23f   : > { %v1605_v60 = vpop.f32.mrf.mxu0 }
 0x240   : > { %v4666_v27 = vadd.f32 %v1763_v18, %v1604_v25  ;;  %v1765_v42 = vpop.f32.mrf.mxu1 }
 0x243   : > { %v1608_v53 = vpop.f32.mrf.mxu0 }
 0x244   : > { %v1609_v30 = vadd.f32 %v1608_v53, %v4501_v46  ;;  %v1768_v33 = vpop.f32.mrf.mxu1 }
 0x245   : > { %v1610_v36 = vpop.f32.mrf.mxu0 }
 0x246   : > { %v4669_v14 = vadd.f32 %v1768_v33, %v1609_v30  ;;  %v1770_v9 = vpop.f32.mrf.mxu1 }
 0x249   : > { %v1613_v41 = vpop.f32.mrf.mxu0  ;;  %v1773_v12 = vpop.f32.mrf.mxu1 }
 0x24a   : > { %v1614_v38 = vadd.f32 %v1613_v41, %v4510_v28 }
 0x24b   : > { %v1615_v44 = vpop.f32.mrf.mxu0  ;;  %v1775_v32 = vpop.f32.mrf.mxu1 }
 0x24c   : > { %v4672_v23 = vadd.f32 %v1773_v12, %v1614_v38 }
 0x24f   : > { %v1618_v24 = vpop.f32.mrf.mxu0  ;;  %v1778_v51 = vpop.f32.mrf.mxu1 }
 0x250   : > { %v1619_v4 = vadd.f32 %v1618_v24, %v4522_v1 }
 0x251   : > { %v1620_v47 = vpop.f32.mrf.mxu0  ;;  %v1780_v48 = vpop.f32.mrf.mxu1 }
 0x252   : > { %v1779_v46 = vadd.f32 %v1778_v51, %v1619_v4 }
 0x254   : > { %v1623_v40 = vpop.f32.mrf.mxu0 }
 0x255   : > { %v1624_v52 = vadd.f32 %v1623_v40, %v4529_v10  ;;  %v1783_v54 = vpop.f32.mrf.mxu1 }
 0x256   : > { %v1625_v6 = vpop.f32.mrf.mxu0 }
 0x257   : > { %v1784_v56 = vadd.f32 %v1783_v54, %v1624_v52  ;;  %v1785_v57 = vpop.f32.mrf.mxu1 }
 0x25a   : > { %v1628_v61 = vpop.f32.mrf.mxu0  ;;  %v1788_v28 = vpop.f32.mrf.mxu1 }
 0x25b   : > { %v1629_v62 = vadd.f32 %v1628_v61, %v4540_v2 }
 0x25c   : > { %v1630_v63 = vpop.f32.mrf.mxu0  ;;  %v1790_v20 = vpop.f32.mrf.mxu1 }
 0x25d   : > { %v1789_v3 = vadd.f32 %v1788_v28, %v1629_v62 }
 0x260   : > { %v1633_v5 = vpop.f32.mrf.mxu0  ;;  %v1793_v55 = vpop.f32.mrf.mxu1 }
 0x261   : > { %v1634_v1 = vadd.f32 %v1633_v5, %v4547_v29 }
 0x262   : > { %v1635_v8 = vpop.f32.mrf.mxu0  ;;  %v1795_v43 = vpop.f32.mrf.mxu1 }
 0x263   : > { %v1794_v7 = vadd.f32 %v1793_v55, %v1634_v1 }
 0x265   : > { %v1638_v13 = vpop.f32.mrf.mxu0 }
 0x266   : > { %v1639_v10 = vadd.f32 %v1638_v13, %v4555_v37  ;;  %v1798_v15 = vpop.f32.mrf.mxu1 }
 0x267   : > { %v1640_v16 = vpop.f32.mrf.mxu0 }
 0x268   : > { %v1799_v17 = vadd.f32 %v1798_v15, %v1639_v10  ;;  %v1800_v35 = vpop.f32.mrf.mxu1 }
 0x26b   : > { %v1643_v45 = vpop.f32.mrf.mxu0  ;;  %v1803_v26 = vpop.f32.mrf.mxu1 }
 0x26c   : > { %v1644_v2 = vadd.f32 %v1643_v45, %v4569_v49 }
 0x26d   : > { %v1645_v25 = vpop.f32.mrf.mxu0  ;;  %v1805_v18 = vpop.f32.mrf.mxu1 }
 0x26e   : > { %v1804_v60 = vadd.f32 %v1803_v26, %v1644_v2 }
 0x271   : > { %v1648_v42 = vpop.f32.mrf.mxu0  ;;  %v1808_v53 = vpop.f32.mrf.mxu1 }
 0x272   : > { %v1649_v29 = vadd.f32 %v1648_v42, %v4581_v19 }
 0x273   : > { %v1650_v30 = vpop.f32.mrf.mxu0  ;;  %v1810_v33 = vpop.f32.mrf.mxu1 }
 0x274   : > { %v1809_v36 = vadd.f32 %v1808_v53, %v1649_v29 }
 0x276   : > { %v1653_v9 = vpop.f32.mrf.mxu0 }
 0x277   : > { %v1654_v37 = vadd.f32 %v1653_v9, %v4595_v34  ;;  %v1813_v41 = vpop.f32.mrf.mxu1 }
 0x278   : > { %v1655_v12 = vpop.f32.mrf.mxu0 }
 0x279   : > { %v1814_v38 = vadd.f32 %v1813_v41, %v1654_v37  ;;  %v1815_v44 = vpop.f32.mrf.mxu1 }
 0x27c   : > { %v1658_v32 = vpop.f32.mrf.mxu0  ;;  %v1818_v24 = vpop.f32.mrf.mxu1 }
 0x27d   : > { %v1659_v49 = vadd.f32 %v1658_v32, %v4609_v21 }
 0x27e   : > { %v1660_v51 = vpop.f32.mrf.mxu0  ;;  %v1820_v4 = vpop.f32.mrf.mxu1 }
 0x27f   : > { %v1819_v47 = vadd.f32 %v1818_v24, %v1659_v49 }
 0x282   : > { %v1888_v48 = vpop.f32.mrf.mxu0  ;;  %v1938_v40 = vpop.f32.mrf.mxu1 }
 0x283   : > { %v4683_v19 = vadd.f32 %v1938_v40, %v1779_v46  ;;  %v1889_v32 = vadd.f32 %v1888_v48, %v4625_v31 }
 0x284   : > { %v1890_v52 = vpop.f32.mrf.mxu0  ;;  %v1940_v54 = vpop.f32.mrf.mxu1 }
 0x286   : > { %v1893_v6 = vpop.f32.mrf.mxu0  ;;  %v1943_v57 = vpop.f32.mrf.mxu1 }
 0x287   : > { %v4685_v34 = vadd.f32 %v1943_v57, %v1784_v56  ;;  %v1894_v40 = vadd.f32 %v1893_v6, %v4632_v39 }
 0x288   : > { %v1895_v61 = vpop.f32.mrf.mxu0  ;;  %v1945_v28 = vpop.f32.mrf.mxu1 }
 0x28a   : > { %v1898_v62 = vpop.f32.mrf.mxu0  ;;  %v1948_v63 = vpop.f32.mrf.mxu1 }
 0x28b   : > { %v4687_v20 = vadd.f32 %v1948_v63, %v1789_v3 }
 0x28c   : > { %v1900_v21 = vpop.f32.mrf.mxu0  ;;  %v1950_v5 = vpop.f32.mrf.mxu1 }
 0x28e   : > { %v1903_v55 = vpop.f32.mrf.mxu0  ;;  %v1953_v1 = vpop.f32.mrf.mxu1 }
 0x28f   : > { %v4689_v8 = vadd.f32 %v1953_v1, %v1794_v7  ;;  %v1904_v39 = vadd.f32 %v1903_v55, %v4653_v59 }
 0x290   : > { %v1905_v46 = vpop.f32.mrf.mxu0  ;;  %v1955_v43 = vpop.f32.mrf.mxu1 }
 0x292   : > { %v1908_v13 = vpop.f32.mrf.mxu0  ;;  %v1958_v10 = vpop.f32.mrf.mxu1 }
 0x293   : > { %v4691_v15 = vadd.f32 %v1958_v10, %v1799_v17 }
 0x294   : > { %v1910_v56 = vpop.f32.mrf.mxu0  ;;  %v1960_v16 = vpop.f32.mrf.mxu1 }
 0x296   : > { %v1913_v35 = vpop.f32.mrf.mxu0  ;;  %v1963_v45 = vpop.f32.mrf.mxu1 }
 0x297   : > { %v4693_v26 = vadd.f32 %v1963_v45, %v1804_v60  ;;  %v1914_v59 = vadd.f32 %v1913_v35, %v4660_v11 }
 0x298   : > { %v1915_v3 = vpop.f32.mrf.mxu0  ;;  %v1965_v2 = vpop.f32.mrf.mxu1 }
 0x29a   : > { %v1918_v25 = vpop.f32.mrf.mxu0  ;;  %v1968_v18 = vpop.f32.mrf.mxu1 }
 0x29b   : > { %v4695_v42 = vadd.f32 %v1968_v18, %v1809_v36 }
 0x29c   : > { %v1920_v7 = vpop.f32.mrf.mxu0  ;;  %v1970_v53 = vpop.f32.mrf.mxu1 }
 0x29e   : > { %v1923_v29 = vpop.f32.mrf.mxu0  ;;  %v1973_v30 = vpop.f32.mrf.mxu1 }
 0x29f   : > { %v4697_v33 = vadd.f32 %v1973_v30, %v1814_v38  ;;  %v1924_v11 = vadd.f32 %v1923_v29, %v4666_v27 }
 0x2a0   : > { %v1925_v17 = vpop.f32.mrf.mxu0  ;;  %v1975_v9 = vpop.f32.mrf.mxu1 }
 0x2a2   : > { %v1928_v37 = vpop.f32.mrf.mxu0  ;;  %v1978_v41 = vpop.f32.mrf.mxu1 }
 0x2a3   : > { %v4699_v12 = vadd.f32 %v1978_v41, %v1819_v47  ;;  %v1899_v47 = vadd.f32 %v1898_v62, %v4643_v50  ;;  %v1909_v50 = vadd.f32 %v1908_v13, %v4657_v58  ;;  %v1919_v58 = vadd.f32 %v1918_v25, %v4663_v22 }
 0x2a4   : > { %v1930_v60 = vpop.f32.mrf.mxu0  ;;  %v1980_v44 = vpop.f32.mrf.mxu1  ;;  %v1929_v22 = vadd.f32 %v1928_v37, %v4669_v14 }
 0x2a6   : > { %v1933_v24 = vpop.f32.mrf.mxu0  ;;  %v2048_v49 = vpop.f32.mrf.mxu1 }
 0x2a7   : > { %v2049_v36 = vadd.f32 %v2048_v49, %v1889_v32  ;;  %v1934_v27 = vadd.f32 %v1933_v24, %v4672_v23 }
 0x2a8   : > { %v2635_v51 = vpop.f32.mrf.mxu1  ;;  %v1935_v4 = vpop.f32.mrf.mxu0 }
 0x2a9   : > { %v2142_v38 = vmax.f32 %v2049_v36, 0.0 }
 0x2aa   : > { %v2053_v52 = vpop.f32.mrf.mxu1 }
 0x2ab   : > { %v2054_v54 = vadd.f32 %v2053_v52, %v1894_v40  ;;  %2707 = vmatmul.mubr.msk.f32.vlgmr.msra.gmra.mxu0 %vm2176_vm3, %v2142_v38 }
 0x2ac   : > { %v2638_v57 = vpop.f32.mrf.mxu1  ;;  %2709 = vmatprep.mubr.msk.f32.mxu0 %vm3021_vm2, %v3020_v0 }
 0x2ad   : > { %v2143_v31 = vmax.f32 %v2054_v54, 0.0 }
 0x2ae   : > { %v2058_v48 = vpop.f32.mrf.mxu1 }
 0x2af   : > { %v2059_v61 = vadd.f32 %v2058_v48, %v1899_v47  ;;  %2710 = vmatmul.mubr.msk.f32.gmra.mxu0 %vm2176_vm3, %v2143_v31 }
 0x2b0   : > { %v2641_v28 = vpop.f32.mrf.mxu1  ;;  %2712 = vmatprep.mubr.msk.f32.mxu0 %vm3021_vm2, %v3020_v0 }
 0x2b1   : > { %v2144_v6 = vmax.f32 %v2059_v61, 0.0 }
 0x2b2   : > { %v2063_v63 = vpop.f32.mrf.mxu1 }
 0x2b3   : > { %v2064_v21 = vadd.f32 %v2063_v63, %v1904_v39  ;;  %2713 = vmatmul.mubr.msk.f32.gmra.mxu0 %vm2176_vm3, %v2144_v6 }
 0x2b4   : > { %v2644_v5 = vpop.f32.mrf.mxu1  ;;  %2715 = vmatprep.mubr.msk.f32.mxu0 %vm3021_vm2, %v3020_v0 }
 0x2b5   : > { %v2145_v62 = vmax.f32 %v2064_v21, 0.0 }
 0x2b6   : > { %v2068_v1 = vpop.f32.mrf.mxu1 }
 0x2b7   : > { %v2069_v46 = vadd.f32 %v2068_v1, %v1909_v50  ;;  %2716 = vmatmul.mubr.msk.f32.gmra.mxu0 %vm2176_vm3, %v2145_v62 }
 0x2b8   : > { %v2647_v43 = vpop.f32.mrf.mxu1  ;;  %2718 = vmatprep.mubr.msk.f32.mxu0 %vm3021_vm2, %v3020_v0 }
 0x2b9   : > { %v2146_v55 = vmax.f32 %v2069_v46, 0.0 }
 0x2ba   : > { %v2073_v10 = vpop.f32.mrf.mxu1 }
 0x2bb   : > { %v2074_v56 = vadd.f32 %v2073_v10, %v1914_v59  ;;  %2719 = vmatmul.mubr.msk.f32.gmra.mxu0 %vm2176_vm3, %v2146_v55 }
 0x2bc   : > { %v2650_v16 = vpop.f32.mrf.mxu1  ;;  %2721 = vmatprep.mubr.msk.f32.mxu0 %vm3021_vm2, %v3020_v0 }
 0x2bd   : > { %v2147_v13 = vmax.f32 %v2074_v56, 0.0 }
 0x2be   : > { %v2078_v45 = vpop.f32.mrf.mxu1 }
 0x2bf   : > { %v2079_v3 = vadd.f32 %v2078_v45, %v1919_v58  ;;  %2722 = vmatmul.mubr.msk.f32.gmra.mxu0 %vm2176_vm3, %v2147_v13 }
 0x2c0   : > { %v2653_v2 = vpop.f32.mrf.mxu1  ;;  %2724 = vmatprep.mubr.msk.f32.mxu0 %vm3021_vm2, %v3020_v0 }
 0x2c1   : > { %v2148_v35 = vmax.f32 %v2079_v3, 0.0 }
 0x2c2   : > { %v2083_v18 = vpop.f32.mrf.mxu1 }
 0x2c3   : > { %v2084_v7 = vadd.f32 %v2083_v18, %v1924_v11  ;;  %2725 = vmatmul.mubr.msk.f32.gmra.mxu0 %vm2176_vm3, %v2148_v35 }
 0x2c4   : > { %v2656_v53 = vpop.f32.mrf.mxu1  ;;  %2727 = vmatprep.mubr.msk.f32.mxu0 %vm3021_vm2, %v3020_v0 }
 0x2c5   : > { %v2149_v25 = vmax.f32 %v2084_v7, 0.0 }
 0x2c6   : > { %v2088_v30 = vpop.f32.mrf.mxu1 }
 0x2c7   : > { %v2089_v17 = vadd.f32 %v2088_v30, %v1929_v22  ;;  %2728 = vmatmul.mubr.msk.f32.gmra.mxu0 %vm2176_vm3, %v2149_v25 }
 0x2c8   : > { %v2659_v9 = vpop.f32.mrf.mxu1  ;;  %2730 = vmatprep.mubr.msk.f32.mxu0 %vm3021_vm2, %v3020_v0 }
 0x2c9   : > { %v2150_v29 = vmax.f32 %v2089_v17, 0.0 }
 0x2ca   : > { %v2093_v41 = vpop.f32.mrf.mxu1 }
 0x2cb   : > { %v2094_v60 = vadd.f32 %v2093_v41, %v1934_v27  ;;  %2731 = vmatmul.mubr.msk.f32.gmra.mxu0 %vm2176_vm3, %v2150_v29 }
 0x2cc   : > { %v2662_v44 = vpop.f32.mrf.mxu1  ;;  %2733 = vmatprep.mubr.msk.f32.mxu0 %vm3021_vm2, %v3020_v0 }
 0x2cd   : > { %v2151_v14 = vmax.f32 %v2094_v60, 0.0 }
 0x2ce   : > { %v2098_v37 = vpop.f32.mrf.mxu1 }
 0x2cf   : > { %v2099_v32 = vadd.f32 %v2098_v37, %v4683_v19  ;;  %2734 = vmatmul.mubr.msk.f32.gmra.mxu0 %vm2176_vm3, %v2151_v14 }
 0x2d0   : > { %v2665_v49 = vpop.f32.mrf.mxu1  ;;  %2736 = vmatprep.mubr.msk.f32.mxu0 %vm3021_vm2, %v3020_v0 }
 0x2d1   : > { %v2152_v23 = vmax.f32 %v2099_v32, 0.0 }
 0x2d2   : > { %v2103_v24 = vpop.f32.mrf.mxu1 }
 0x2d3   : > { %v2104_v36 = vadd.f32 %v2103_v24, %v4685_v34  ;;  %2737 = vmatmul.mubr.msk.f32.gmra.mxu0 %vm2176_vm3, %v2152_v23 }
 0x2d4   : > { %v2668_v51 = vpop.f32.mrf.mxu1  ;;  %2739 = vmatprep.mubr.msk.f32.mxu0 %vm3021_vm2, %v3020_v0 }
 0x2d5   : > { %v2153_v4 = vmax.f32 %v2104_v36, 0.0 }
 0x2d6   : > { %v2108_v40 = vpop.f32.mrf.mxu1 }
 0x2d7   : > { %v2109_v19 = vadd.f32 %v2108_v40, %v4687_v20  ;;  %2740 = vmatmul.mubr.msk.f32.gmra.mxu0 %vm2176_vm3, %v2153_v4 }
 0x2d8   : > { %v2671_v38 = vpop.f32.mrf.mxu1  ;;  %2742 = vmatprep.mubr.msk.f32.mxu0 %vm3021_vm2, %v3020_v0 }
 0x2d9   : > { %v2154_v52 = vmax.f32 %v2109_v19, 0.0 }
 0x2da   : > { %v2113_v54 = vpop.f32.mrf.mxu1 }
 0x2db   : > { %v2114_v34 = vadd.f32 %v2113_v54, %v4689_v8  ;;  %2743 = vmatmul.mubr.msk.f32.gmra.mxu0 %vm2176_vm3, %v2154_v52 }
 0x2dc   : > { %v2674_v57 = vpop.f32.mrf.mxu1  ;;  %2745 = vmatprep.mubr.msk.f32.mxu0 %vm3021_vm2, %v3020_v0 }
 0x2dd   : > { %v2155_v47 = vmax.f32 %v2114_v34, 0.0 }
 0x2de   : > { %v2118_v31 = vpop.f32.mrf.mxu1 }
 0x2df   : > { %v2119_v20 = vadd.f32 %v2118_v31, %v4691_v15  ;;  %2746 = vmatmul.mubr.msk.f32.gmra.mxu0 %vm2176_vm3, %v2155_v47 }
 0x2e0   : > { %v2677_v48 = vpop.f32.mrf.mxu1  ;;  %2748 = vmatprep.mubr.msk.f32.mxu0 %vm3021_vm2, %v3020_v0 }
 0x2e1   : > { %v2156_v61 = vmax.f32 %v2119_v20, 0.0 }
 0x2e2   : > { %v2123_v28 = vpop.f32.mrf.mxu1 }
 0x2e3   : > { %v2124_v8 = vadd.f32 %v2123_v28, %v4693_v26  ;;  %2749 = vmatmul.mubr.msk.f32.gmra.mxu0 %vm2176_vm3, %v2156_v61 }
 0x2e4   : > { %v2680_v39 = vpop.f32.mrf.mxu1  ;;  %2751 = vmatprep.mubr.msk.f32.mxu0 %vm3021_vm2, %v3020_v0 }
 0x2e5   : > { %v2157_v6 = vmax.f32 %v2124_v8, 0.0 }
 0x2e6   : > { %v2128_v63 = vpop.f32.mrf.mxu1 }
 0x2e7   : > { %v2129_v15 = vadd.f32 %v2128_v63, %v4695_v42  ;;  %2752 = vmatmul.mubr.msk.f32.gmra.mxu0 %vm2176_vm3, %v2157_v6 }
 0x2e8   : > { %v2683_v21 = vpop.f32.mrf.mxu1  ;;  %2754 = vmatprep.mubr.msk.f32.mxu0 %vm3021_vm2, %v3020_v0 }
 0x2e9   : > { %v2158_v5 = vmax.f32 %v2129_v15, 0.0 }
 0x2ea   : > { %v2133_v50 = vpop.f32.mrf.mxu1 }
 0x2eb   : > { %v2134_v26 = vadd.f32 %v2133_v50, %v4697_v33  ;;  %2755 = vmatmul.mubr.msk.f32.gmra.mxu0 %vm2176_vm3, %v2158_v5  ;;  %v4777_v33 = vld [vmem:[#allocation6] ss:$0 sm:$0xff] }
 0x2ec   : > { %v2686_v62 = vpop.f32.mrf.mxu1  ;;  %2757 = vmatprep.mubr.msk.f32.mxu0 %vm3021_vm2, %v3020_v0 }
 0x2ed   : > { %v2159_v1 = vmax.f32 %v2134_v26, 0.0 }
 0x2ee   : > { %v2138_v46 = vpop.f32.mrf.mxu1 }
 0x2ef   : > { %v2139_v42 = vadd.f32 %v2138_v46, %v4699_v12  ;;  %2758 = vmatmul.mubr.msk.f32.gmra.mxu0 %vm2176_vm3, %v2159_v1 }
 0x2f0   : > { %v2689_v43 = vpop.f32.mrf.mxu1  ;;  %2760 = vmatprep.mubr.msk.f32.mxu0 %vm3021_vm2, %v3020_v0 }
 0x2f1   : > { %v2160_v59 = vmax.f32 %v2139_v42, 0.0 }
 0x2f3   : > { %2761 = vmatmul.mubr.msk.f32.gmra.mxu0 %vm2176_vm3, %v2160_v59 }
 0x36b   : > { %v2300_v12 = vpop.f32.mrf.mxu0 }
 0x36c   : > { %v2301_v0 = vadd.f32 %v4777_v33, %v2300_v12 }
 0x36d   : > { %v2708_v55 = vpop.f32.mrf.mxu0 }
 0x36e   : > { %2395 = vst.msk [vmem:[%s4782_s13] sm:$0xff] %vm2394_vm4, %v2301_v0 }
 0x36f   : > { %v2305_v10 = vpop.f32.mrf.mxu0 }
 0x370   : > { %v2306_v56 = vadd.f32 %v4777_v33, %v2305_v10 }
 0x371   : > { %v2711_v16 = vpop.f32.mrf.mxu0 }
 0x372   : > { %2396 = vst.msk [vmem:[%s4782_s13 + $0x8] sm:$0xff] %vm2394_vm4, %v2306_v56 }
 0x373   : > { %v2310_v58 = vpop.f32.mrf.mxu0 }
 0x374   : > { %v2311_v13 = vadd.f32 %v4777_v33, %v2310_v58 }
 0x375   : > { %v2714_v45 = vpop.f32.mrf.mxu0 }
 0x376   : > { %2397 = vst.msk [vmem:[%s4782_s13 + $0x10] sm:$0xff] %vm2394_vm4, %v2311_v13 }
 0x377   : > { %v2315_v3 = vpop.f32.mrf.mxu0 }
 0x378   : > { %v2316_v2 = vadd.f32 %v4777_v33, %v2315_v3 }
 0x379   : > { %v2717_v11 = vpop.f32.mrf.mxu0 }
 0x37a   : > { %2398 = vst.msk [vmem:[%s4782_s13 + $0x18] sm:$0xff] %vm2394_vm4, %v2316_v2 }
 0x37b   : > { %v2320_v35 = vpop.f32.mrf.mxu0 }
 0x37c   : > { %v2321_v18 = vadd.f32 %v4777_v33, %v2320_v35 }
 0x37d   : > { %v2720_v7 = vpop.f32.mrf.mxu0 }
 0x37e   : > { %2399 = vst.msk [vmem:[%s4782_s13 + $0x20] sm:$0xff] %vm2394_vm4, %v2321_v18 }
 0x37f   : > { %v2325_v53 = vpop.f32.mrf.mxu0 }
 0x380   : > { %v2326_v22 = vadd.f32 %v4777_v33, %v2325_v53 }
 0x381   : > { %v2723_v25 = vpop.f32.mrf.mxu0 }
 0x382   : > { %2400 = vst.msk [vmem:[%s4782_s13 + $0x28] sm:$0xff] %vm2394_vm4, %v2326_v22 }
 0x383   : > { %v2330_v30 = vpop.f32.mrf.mxu0 }
 0x384   : > { %v2331_v17 = vadd.f32 %v4777_v33, %v2330_v30 }
 0x385   : > { %v2726_v9 = vpop.f32.mrf.mxu0 }
 0x386   : > { %2401 = vst.msk [vmem:[%s4782_s13 + $0x30] sm:$0xff] %vm2394_vm4, %v2331_v17 }
 0x387   : > { %v2335_v27 = vpop.f32.mrf.mxu0 }
 0x388   : > { %v2336_v29 = vadd.f32 %v4777_v33, %v2335_v27 }
 0x389   : > { %v2729_v41 = vpop.f32.mrf.mxu0 }
 0x38a   : > { %2402 = vst.msk [vmem:[%s4782_s13 + $0x38] sm:$0xff] %vm2394_vm4, %v2336_v29 }
 0x38b   : > { %v2340_v60 = vpop.f32.mrf.mxu0 }
 0x38c   : > { %v2341_v44 = vadd.f32 %v4777_v33, %v2340_v60 }
 0x38d   : > { %v2732_v14 = vpop.f32.mrf.mxu0 }
 0x38e   : > { %2403 = vst.msk [vmem:[%s4782_s13 + $0x40] sm:$0xff] %vm2394_vm4, %v2341_v44 }
 0x38f   : > { %v2345_v37 = vpop.f32.mrf.mxu0 }
 0x390   : > { %v2346_v32 = vadd.f32 %v4777_v33, %v2345_v37 }
 0x391   : > { %v2735_v49 = vpop.f32.mrf.mxu0 }
 0x392   : > { %2404 = vst.msk [vmem:[%s4782_s13 + $0x48] sm:$0xff] %vm2394_vm4, %v2346_v32 }
 0x393   : > { %v2350_v23 = vpop.f32.mrf.mxu0 }
 0x394   : > { %v2351_v24 = vadd.f32 %v4777_v33, %v2350_v23 }
 0x395   : > { %v2738_v36 = vpop.f32.mrf.mxu0 }
 0x396   : > { %2405 = vst.msk [vmem:[%s4782_s13 + $0x50] sm:$0xff] %vm2394_vm4, %v2351_v24 }
 0x397   : > { %v2355_v51 = vpop.f32.mrf.mxu0 }
 0x398   : > { %v2356_v4 = vadd.f32 %v4777_v33, %v2355_v51 }
 0x399   : > { %v2741_v40 = vpop.f32.mrf.mxu0 }
 0x39a   : > { %2406 = vst.msk [vmem:[%s4782_s13 + $0x58] sm:$0xff] %vm2394_vm4, %v2356_v4 }
 0x39b   : > { %v2360_v19 = vpop.f32.mrf.mxu0 }
 0x39c   : > { %v2361_v38 = vadd.f32 %v4777_v33, %v2360_v19 }
 0x39d   : > { %v2744_v52 = vpop.f32.mrf.mxu0 }
 0x39e   : > { %2407 = vst.msk [vmem:[%s4782_s13 + $0x60] sm:$0xff] %vm2394_vm4, %v2361_v38 }
 0x39f   : > { %v2365_v54 = vpop.f32.mrf.mxu0 }
 0x3a0   : > { %v2366_v34 = vadd.f32 %v4777_v33, %v2365_v54 }
 0x3a1   : > { %v2747_v57 = vpop.f32.mrf.mxu0 }
 0x3a2   : > { %2408 = vst.msk [vmem:[%s4782_s13 + $0x68] sm:$0xff] %vm2394_vm4, %v2366_v34 }
 0x3a3   : > { %v2370_v47 = vpop.f32.mrf.mxu0 }
 0x3a4   : > { %v2371_v31 = vadd.f32 %v4777_v33, %v2370_v47 }
 0x3a5   : > { %v2750_v20 = vpop.f32.mrf.mxu0 }
 0x3a6   : > { %2409 = vst.msk [vmem:[%s4782_s13 + $0x70] sm:$0xff] %vm2394_vm4, %v2371_v31 }
 0x3a7   : > { %v2375_v48 = vpop.f32.mrf.mxu0 }
 0x3a8   : > { %v2376_v61 = vadd.f32 %v4777_v33, %v2375_v48 }
 0x3a9   : > { %v2753_v28 = vpop.f32.mrf.mxu0 }
 0x3aa   : > { %2410 = vst.msk [vmem:[%s4782_s13 + $0x78] sm:$0xff] %vm2394_vm4, %v2376_v61 }
 0x3ab   : > { %v2380_v8 = vpop.f32.mrf.mxu0 }
 0x3ac   : > { %v2381_v39 = vadd.f32 %v4777_v33, %v2380_v8 }
 0x3ad   : > { %v2756_v6 = vpop.f32.mrf.mxu0 }
 0x3ae   : > { %2411 = vst.msk [vmem:[%s4782_s13 + $0x80] sm:$0xff] %vm2394_vm4, %v2381_v39 }
 0x3af   : > { %v2385_v63 = vpop.f32.mrf.mxu0 }
 0x3b0   : > { %v2386_v15 = vadd.f32 %v4777_v33, %v2385_v63 }
 0x3b1   : > { %v2759_v21 = vpop.f32.mrf.mxu0 }
 0x3b2   : > { %2412 = vst.msk [vmem:[%s4782_s13 + $0x88] sm:$0xff] %vm2394_vm4, %v2386_v15 }
 0x3b3   : > { %v2390_v5 = vpop.f32.mrf.mxu0 }
 0x3b4   : > { %v2391_v50 = vadd.f32 %v4777_v33, %v2390_v5 }
 0x3b5   : > { %v2762_v26 = vpop.f32.mrf.mxu0 }
 0x3b6   : > { %2413 = vst.msk [vmem:[%s4782_s13 + $0x90] sm:$0xff] %vm2394_vm4, %v2391_v50 }
 0x3b7 PF: > { %p16_p10 = scmp.ge.s32.totalorder %s3072_s23, 4   ;;  %s4872_s18 = smov %s3005_s19 }
 0x3b8   : > { %s4873_s19 = smov %s3009_s20  ;;  %s4874_s20 = smov %s3082_s26 }
 0x3b9   : > { %s4875_s21 = smov %s3072_s23  ;;  %18 = sbr.rel (!%p16_p10) target bundleno = 4 (0x4), region = 88 }
 0x3be   :  { %2436 = vsyncpa [#allocation3], 1 }
 0x3bf   :  { %2438 = vsyncpa [#allocation3 + $0x1], 1 }
 0x3c0   :  { %2439 = vsyncpa [#allocation5], 1 }

</bundles_post_ra>
